<compile_context>
chip_gen: v7x
topology: tpu7x:2x2x1
jax: 0.10.0
libtpu: 0.0.40
codegen_flags: <defaults>
</compile_context>

<pallas_src>
import jax
import jax.numpy as jnp
from jax.experimental import pallas as pl
from jax.experimental.pallas import tpu as pltpu

# ---------------------------------------------------------------------------
# Model dimensions (small, consistent with a [B, C, H, W] image-like input).
# ---------------------------------------------------------------------------
B = 2            # batch per branch
C_IN = 4         # input channels
H = 16           # spatial
W = 16
C_CONV = 16      # conv output channels
FEAT = 32        # final embedding size
FEAT_PAD = 128   # lane-dense output store; sliced back to FEAT in the wrapper


# ---------------------------------------------------------------------------
# Pallas kernel: ONE gridless invocation covers the whole stacked Siamese
# batch.  All operands are whole-array VMEM residents (total << 1 MiB).
#
#   conv: 9 shifted static slices of the padded NHWC input, each
#         (2B*HW, Cin) @ (Cin, Cconv), accumulated in f32       (im2col fused)
#   +bias, ReLU                                                  (VPU)
#   pool: reshape -> sum over HW sublanes, * 1/HW                (XLU reduce)
#   fc:   (2B, Cconv) @ (Cconv, 128) + bias                      (lane-dense)
# ---------------------------------------------------------------------------
def _backbone_kernel(x_ref, wc_ref, bc_ref, wf_ref, bf_ref, o_ref):
    nb, hp, wp, c_in = x_ref.shape          # (2B, H+2, W+2, Cin), zero-padded
    h, w = hp - 2, wp - 2
    hw = h * w
    c_conv = wc_ref.shape[-1]

    # Conv as 9 accumulating matmuls over statically shifted windows.
    acc = jnp.zeros((nb * hw, c_conv), jnp.float32)
    for kh in range(3):
        for kw in range(3):
            xs = x_ref[:, kh:kh + h, kw:kw + w, :]          # (2B, H, W, Cin)
            xs = xs.reshape(nb * hw, c_in)                  # (2B*HW, Cin)
            wk = wc_ref[kh * 3 + kw]                        # (Cin, Cconv)
            acc = acc + jnp.dot(xs, wk, preferred_element_type=jnp.float32)

    act = jnp.maximum(acc + bc_ref[...], 0.0)               # (2B*HW, Cconv)

    # Global average pool: sublane reduction (replaces the old pool matmul).
    pooled = jnp.sum(act.reshape(nb, hw, c_conv), axis=1) * (1.0 / hw)  # (2B, Cconv)

    # FC with pre-padded (lane-dense, 128-wide) weights/bias.
    out = jnp.dot(pooled, wf_ref[...], preferred_element_type=jnp.float32) + bf_ref[...]
    o_ref[...] = out.astype(o_ref.dtype)                    # (2B, 128)


def _run_backbone(x_pad, w_conv, b_conv, w_fc_pad, b_fc_pad):
    nb = x_pad.shape[0]
    feat_pad = w_fc_pad.shape[1]
    vmem = pl.BlockSpec(memory_space=pltpu.MemorySpace.VMEM)   # whole array in VMEM
    return pl.pallas_call(
        _backbone_kernel,
        out_shape=jax.ShapeDtypeStruct((nb, feat_pad), jnp.float32),
        in_specs=[vmem, vmem, vmem, vmem, vmem],
        out_specs=vmem,
    )(x_pad, w_conv, b_conv, w_fc_pad, b_fc_pad)


@jax.jit
def siamese_forward(input1, input2, params):
    """Siamese forward: shared weights applied to both inputs; returns a pair."""
    w_conv, b_conv, w_fc_pad, b_fc_pad = params
    assert input1.shape == input2.shape and input1.ndim == 4
    assert input1.shape[1] == C_IN, "params were built for C_IN input channels"
    b1 = input1.shape[0]

    # Stack both branches (shared-weight Siamese semantics == forward_once x2),
    # go to NHWC, and zero-pad the spatial dims for the 3x3 / pad=1 conv.
    # These three tiny (~20 KB) ops fuse in XLA; the heavy 9x-inflated patch
    # materialization of the previous version is gone (im2col is in-kernel).
    x = jnp.concatenate([input1, input2], axis=0)                      # (2B,C,H,W)
    x = jnp.transpose(x, (0, 2, 3, 1))                                 # (2B,H,W,C)
    x = jnp.pad(x, ((0, 0), (1, 1), (1, 1), (0, 0)))                   # (2B,H+2,W+2,C)

    out = _run_backbone(x, w_conv, b_conv, w_fc_pad, b_fc_pad)         # (2B, 128)
    out = out[:, :FEAT]                                                # (2B, F)
    return out[:b1], out[b1:]


def _reference_forward(input1, input2, params):
    """Pure-JAX/XLA reference for the same synthetic backbone (sanity check)."""
    w_conv, b_conv, w_fc_pad, b_fc_pad = params
    w_hwio = w_conv.reshape(3, 3, C_IN, C_CONV)     # (kh, kw, Cin, Cconv)
    w_fc = w_fc_pad[:, :FEAT]
    b_fc = b_fc_pad[:, :FEAT]

    def once(x_nchw):
        x = jnp.transpose(x_nchw, (0, 2, 3, 1))                        # NHWC
        conv = jax.lax.conv_general_dilated(
            x, w_hwio, window_strides=(1, 1), padding="SAME",
            dimension_numbers=("NHWC", "HWIO", "NHWC"))
        act = jnp.maximum(conv + b_conv[0], 0.0)
        pooled = jnp.mean(act, axis=(1, 2))                            # (B, Cconv)
        return pooled @ w_fc + b_fc[0]

    return once(input1), once(input2)


def make_params(key):
    """Shared backbone parameters, built ONCE in kernel-ready (padded) form."""
    k1, k2, k3, k4 = jax.random.split(key, 4)
    w_conv = jax.random.normal(k1, (9, C_IN, C_CONV), jnp.float32) * 0.1  # (kh*3+kw, Cin, Cconv)
    b_conv = jax.random.normal(k2, (1, C_CONV), jnp.float32) * 0.1
    w_fc = jax.random.normal(k3, (C_CONV, FEAT), jnp.float32) * 0.1
    b_fc = jax.random.normal(k4, (1, FEAT), jnp.float32) * 0.1
    # Pre-pad FC weight/bias to 128 lanes so the kernel's output store is
    # lane-dense; done once here instead of per forward call.
    w_fc_pad = jnp.zeros((C_CONV, FEAT_PAD), jnp.float32).at[:, :FEAT].set(w_fc)
    b_fc_pad = jnp.zeros((1, FEAT_PAD), jnp.float32).at[:, :FEAT].set(b_fc)
    return w_conv, b_conv, w_fc_pad, b_fc_pad


if __name__ == "__main__":
    key = jax.random.PRNGKey(0)
    kx1, kx2, kp = jax.random.split(key, 3)

    input1 = jax.random.normal(kx1, (B, C_IN, H, W), jnp.float32)      # NCHW
    input2 = jax.random.normal(kx2, (B, C_IN, H, W), jnp.float32)      # NCHW
    params = make_params(kp)

    out1, out2 = siamese_forward(input1, input2, params)
    jax.block_until_ready((out1, out2))

    ref1, ref2 = _reference_forward(input1, input2, params)
    assert out1.shape == (B, FEAT) and out2.shape == (B, FEAT)
    assert jnp.allclose(out1, ref1, atol=1e-4, rtol=1e-4)
    assert jnp.allclose(out2, ref2, atol=1e-4, rtol=1e-4)

    print("KERNEL_OK")
</pallas_src>

<mosaic_0001>
module attributes {stable_mosaic.version = 11 : i64} {
  func.func @_backbone_kernel(%arg0: memref<4x18x18x4xf32, #tpu.memory_space<vmem>>, %arg1: memref<9x4x16xf32, #tpu.memory_space<vmem>>, %arg2: memref<1x16xf32, #tpu.memory_space<vmem>>, %arg3: memref<16x128xf32, #tpu.memory_space<vmem>>, %arg4: memref<1x128xf32, #tpu.memory_space<vmem>>, %arg5: memref<4x128xf32, #tpu.memory_space<vmem>>) attributes {dimension_semantics = [], scalar_prefetch = 0 : i64, scratch_operands = 0 : i64, tpu.core_type = #tpu.core_type<tc>} {
    %cst = arith.constant 0.000000e+00 : f32
    %0 = vector.broadcast %cst : f32 to vector<1024x16xf32>
    %c0 = arith.constant 0 : index
    %c0_0 = arith.constant 0 : index
    %c0_1 = arith.constant 0 : index
    %c0_2 = arith.constant 0 : index
    %1 = vector.load %arg0[%c0, %c0_0, %c0_1, %c0_2] : memref<4x18x18x4xf32, #tpu.memory_space<vmem>>, vector<4x16x16x4xf32>
    %2 = vector.shape_cast %1 : vector<4x16x16x4xf32> to vector<1024x4xf32>
    %c0_3 = arith.constant 0 : index
    %c0_4 = arith.constant 0 : index
    %c0_5 = arith.constant 0 : index
    %3 = vector.load %arg1[%c0_3, %c0_4, %c0_5] : memref<9x4x16xf32, #tpu.memory_space<vmem>>, vector<1x4x16xf32>
    %4 = vector.shape_cast %3 : vector<1x4x16xf32> to vector<4x16xf32>
    %cst_6 = arith.constant dense<0.000000e+00> : vector<1024x16xf32>
    %5 = tpu.matmul %2, %4, %cst_6 {dimension_numbers = #tpu.dot_dimension_numbers<[1], [0], [0], [1], [0, 0, 1, 1], [], []>} : vector<1024x4xf32>, vector<4x16xf32>, vector<1024x16xf32> -> vector<1024x16xf32>
    %6 = arith.addf %0, %5 : vector<1024x16xf32>
    %c0_7 = arith.constant 0 : index
    %c0_8 = arith.constant 0 : index
    %c1 = arith.constant 1 : index
    %c0_9 = arith.constant 0 : index
    %7 = vector.load %arg0[%c0_7, %c0_8, %c1, %c0_9] : memref<4x18x18x4xf32, #tpu.memory_space<vmem>>, vector<4x16x16x4xf32>
    %8 = vector.shape_cast %7 : vector<4x16x16x4xf32> to vector<1024x4xf32>
    %c1_10 = arith.constant 1 : index
    %c0_11 = arith.constant 0 : index
    %c0_12 = arith.constant 0 : index
    %9 = vector.load %arg1[%c1_10, %c0_11, %c0_12] : memref<9x4x16xf32, #tpu.memory_space<vmem>>, vector<1x4x16xf32>
    %10 = vector.shape_cast %9 : vector<1x4x16xf32> to vector<4x16xf32>
    %cst_13 = arith.constant dense<0.000000e+00> : vector<1024x16xf32>
    %11 = tpu.matmul %8, %10, %cst_13 {dimension_numbers = #tpu.dot_dimension_numbers<[1], [0], [0], [1], [0, 0, 1, 1], [], []>} : vector<1024x4xf32>, vector<4x16xf32>, vector<1024x16xf32> -> vector<1024x16xf32>
    %12 = arith.addf %6, %11 : vector<1024x16xf32>
    %c0_14 = arith.constant 0 : index
    %c0_15 = arith.constant 0 : index
    %c2 = arith.constant 2 : index
    %c0_16 = arith.constant 0 : index
    %13 = vector.load %arg0[%c0_14, %c0_15, %c2, %c0_16] : memref<4x18x18x4xf32, #tpu.memory_space<vmem>>, vector<4x16x16x4xf32>
    %14 = vector.shape_cast %13 : vector<4x16x16x4xf32> to vector<1024x4xf32>
    %c2_17 = arith.constant 2 : index
    %c0_18 = arith.constant 0 : index
    %c0_19 = arith.constant 0 : index
    %15 = vector.load %arg1[%c2_17, %c0_18, %c0_19] : memref<9x4x16xf32, #tpu.memory_space<vmem>>, vector<1x4x16xf32>
    %16 = vector.shape_cast %15 : vector<1x4x16xf32> to vector<4x16xf32>
    %cst_20 = arith.constant dense<0.000000e+00> : vector<1024x16xf32>
    %17 = tpu.matmul %14, %16, %cst_20 {dimension_numbers = #tpu.dot_dimension_numbers<[1], [0], [0], [1], [0, 0, 1, 1], [], []>} : vector<1024x4xf32>, vector<4x16xf32>, vector<1024x16xf32> -> vector<1024x16xf32>
    %18 = arith.addf %12, %17 : vector<1024x16xf32>
    %c0_21 = arith.constant 0 : index
    %c1_22 = arith.constant 1 : index
    %c0_23 = arith.constant 0 : index
    %c0_24 = arith.constant 0 : index
    %19 = vector.load %arg0[%c0_21, %c1_22, %c0_23, %c0_24] : memref<4x18x18x4xf32, #tpu.memory_space<vmem>>, vector<4x16x16x4xf32>
    %20 = vector.shape_cast %19 : vector<4x16x16x4xf32> to vector<1024x4xf32>
    %c3 = arith.constant 3 : index
    %c0_25 = arith.constant 0 : index
    %c0_26 = arith.constant 0 : index
    %21 = vector.load %arg1[%c3, %c0_25, %c0_26] : memref<9x4x16xf32, #tpu.memory_space<vmem>>, vector<1x4x16xf32>
    %22 = vector.shape_cast %21 : vector<1x4x16xf32> to vector<4x16xf32>
    %cst_27 = arith.constant dense<0.000000e+00> : vector<1024x16xf32>
    %23 = tpu.matmul %20, %22, %cst_27 {dimension_numbers = #tpu.dot_dimension_numbers<[1], [0], [0], [1], [0, 0, 1, 1], [], []>} : vector<1024x4xf32>, vector<4x16xf32>, vector<1024x16xf32> -> vector<1024x16xf32>
    %24 = arith.addf %18, %23 : vector<1024x16xf32>
    %c0_28 = arith.constant 0 : index
    %c1_29 = arith.constant 1 : index
    %c1_30 = arith.constant 1 : index
    %c0_31 = arith.constant 0 : index
    %25 = vector.load %arg0[%c0_28, %c1_29, %c1_30, %c0_31] : memref<4x18x18x4xf32, #tpu.memory_space<vmem>>, vector<4x16x16x4xf32>
    %26 = vector.shape_cast %25 : vector<4x16x16x4xf32> to vector<1024x4xf32>
    %c4 = arith.constant 4 : index
    %c0_32 = arith.constant 0 : index
    %c0_33 = arith.constant 0 : index
    %27 = vector.load %arg1[%c4, %c0_32, %c0_33] : memref<9x4x16xf32, #tpu.memory_space<vmem>>, vector<1x4x16xf32>
    %28 = vector.shape_cast %27 : vector<1x4x16xf32> to vector<4x16xf32>
    %cst_34 = arith.constant dense<0.000000e+00> : vector<1024x16xf32>
    %29 = tpu.matmul %26, %28, %cst_34 {dimension_numbers = #tpu.dot_dimension_numbers<[1], [0], [0], [1], [0, 0, 1, 1], [], []>} : vector<1024x4xf32>, vector<4x16xf32>, vector<1024x16xf32> -> vector<1024x16xf32>
    %30 = arith.addf %24, %29 : vector<1024x16xf32>
    %c0_35 = arith.constant 0 : index
    %c1_36 = arith.constant 1 : index
    %c2_37 = arith.constant 2 : index
    %c0_38 = arith.constant 0 : index
    %31 = vector.load %arg0[%c0_35, %c1_36, %c2_37, %c0_38] : memref<4x18x18x4xf32, #tpu.memory_space<vmem>>, vector<4x16x16x4xf32>
    %32 = vector.shape_cast %31 : vector<4x16x16x4xf32> to vector<1024x4xf32>
    %c5 = arith.constant 5 : index
    %c0_39 = arith.constant 0 : index
    %c0_40 = arith.constant 0 : index
    %33 = vector.load %arg1[%c5, %c0_39, %c0_40] : memref<9x4x16xf32, #tpu.memory_space<vmem>>, vector<1x4x16xf32>
    %34 = vector.shape_cast %33 : vector<1x4x16xf32> to vector<4x16xf32>
    %cst_41 = arith.constant dense<0.000000e+00> : vector<1024x16xf32>
    %35 = tpu.matmul %32, %34, %cst_41 {dimension_numbers = #tpu.dot_dimension_numbers<[1], [0], [0], [1], [0, 0, 1, 1], [], []>} : vector<1024x4xf32>, vector<4x16xf32>, vector<1024x16xf32> -> vector<1024x16xf32>
    %36 = arith.addf %30, %35 : vector<1024x16xf32>
    %c0_42 = arith.constant 0 : index
    %c2_43 = arith.constant 2 : index
    %c0_44 = arith.constant 0 : index
    %c0_45 = arith.constant 0 : index
    %37 = vector.load %arg0[%c0_42, %c2_43, %c0_44, %c0_45] : memref<4x18x18x4xf32, #tpu.memory_space<vmem>>, vector<4x16x16x4xf32>
    %38 = vector.shape_cast %37 : vector<4x16x16x4xf32> to vector<1024x4xf32>
    %c6 = arith.constant 6 : index
    %c0_46 = arith.constant 0 : index
    %c0_47 = arith.constant 0 : index
    %39 = vector.load %arg1[%c6, %c0_46, %c0_47] : memref<9x4x16xf32, #tpu.memory_space<vmem>>, vector<1x4x16xf32>
    %40 = vector.shape_cast %39 : vector<1x4x16xf32> to vector<4x16xf32>
    %cst_48 = arith.constant dense<0.000000e+00> : vector<1024x16xf32>
    %41 = tpu.matmul %38, %40, %cst_48 {dimension_numbers = #tpu.dot_dimension_numbers<[1], [0], [0], [1], [0, 0, 1, 1], [], []>} : vector<1024x4xf32>, vector<4x16xf32>, vector<1024x16xf32> -> vector<1024x16xf32>
    %42 = arith.addf %36, %41 : vector<1024x16xf32>
    %c0_49 = arith.constant 0 : index
    %c2_50 = arith.constant 2 : index
    %c1_51 = arith.constant 1 : index
    %c0_52 = arith.constant 0 : index
    %43 = vector.load %arg0[%c0_49, %c2_50, %c1_51, %c0_52] : memref<4x18x18x4xf32, #tpu.memory_space<vmem>>, vector<4x16x16x4xf32>
    %44 = vector.shape_cast %43 : vector<4x16x16x4xf32> to vector<1024x4xf32>
    %c7 = arith.constant 7 : index
    %c0_53 = arith.constant 0 : index
    %c0_54 = arith.constant 0 : index
    %45 = vector.load %arg1[%c7, %c0_53, %c0_54] : memref<9x4x16xf32, #tpu.memory_space<vmem>>, vector<1x4x16xf32>
    %46 = vector.shape_cast %45 : vector<1x4x16xf32> to vector<4x16xf32>
    %cst_55 = arith.constant dense<0.000000e+00> : vector<1024x16xf32>
    %47 = tpu.matmul %44, %46, %cst_55 {dimension_numbers = #tpu.dot_dimension_numbers<[1], [0], [0], [1], [0, 0, 1, 1], [], []>} : vector<1024x4xf32>, vector<4x16xf32>, vector<1024x16xf32> -> vector<1024x16xf32>
    %48 = arith.addf %42, %47 : vector<1024x16xf32>
    %c0_56 = arith.constant 0 : index
    %c2_57 = arith.constant 2 : index
    %c2_58 = arith.constant 2 : index
    %c0_59 = arith.constant 0 : index
    %49 = vector.load %arg0[%c0_56, %c2_57, %c2_58, %c0_59] : memref<4x18x18x4xf32, #tpu.memory_space<vmem>>, vector<4x16x16x4xf32>
    %50 = vector.shape_cast %49 : vector<4x16x16x4xf32> to vector<1024x4xf32>
    %c8 = arith.constant 8 : index
    %c0_60 = arith.constant 0 : index
    %c0_61 = arith.constant 0 : index
    %51 = vector.load %arg1[%c8, %c0_60, %c0_61] : memref<9x4x16xf32, #tpu.memory_space<vmem>>, vector<1x4x16xf32>
    %52 = vector.shape_cast %51 : vector<1x4x16xf32> to vector<4x16xf32>
    %cst_62 = arith.constant dense<0.000000e+00> : vector<1024x16xf32>
    %53 = tpu.matmul %50, %52, %cst_62 {dimension_numbers = #tpu.dot_dimension_numbers<[1], [0], [0], [1], [0, 0, 1, 1], [], []>} : vector<1024x4xf32>, vector<4x16xf32>, vector<1024x16xf32> -> vector<1024x16xf32>
    %54 = arith.addf %48, %53 : vector<1024x16xf32>
    %c0_63 = arith.constant 0 : index
    %c0_64 = arith.constant 0 : index
    %55 = vector.load %arg2[%c0_63, %c0_64] : memref<1x16xf32, #tpu.memory_space<vmem>>, vector<1x16xf32>
    %56 = vector.broadcast %55 : vector<1x16xf32> to vector<1024x16xf32>
    %57 = arith.addf %54, %56 : vector<1024x16xf32>
    %cst_65 = arith.constant 0.000000e+00 : f32
    %58 = vector.broadcast %cst_65 : f32 to vector<1024x16xf32>
    %59 = arith.maximumf %57, %58 : vector<1024x16xf32>
    %60 = vector.shape_cast %59 : vector<1024x16xf32> to vector<4x256x16xf32>
    %cst_66 = arith.constant dense<0.000000e+00> : vector<4x16xf32>
    %61 = vector.multi_reduction <add>, %60, %cst_66 [1] : vector<4x256x16xf32> to vector<4x16xf32>
    %cst_67 = arith.constant 3.906250e-03 : f32
    %62 = vector.broadcast %cst_67 : f32 to vector<4x16xf32>
    %63 = arith.mulf %61, %62 : vector<4x16xf32>
    %c0_68 = arith.constant 0 : index
    %c0_69 = arith.constant 0 : index
    %64 = vector.load %arg3[%c0_68, %c0_69] : memref<16x128xf32, #tpu.memory_space<vmem>>, vector<16x128xf32>
    %cst_70 = arith.constant dense<0.000000e+00> : vector<4x128xf32>
    %65 = tpu.matmul %63, %64, %cst_70 {dimension_numbers = #tpu.dot_dimension_numbers<[1], [0], [0], [1], [0, 0, 1, 1], [], []>} : vector<4x16xf32>, vector<16x128xf32>, vector<4x128xf32> -> vector<4x128xf32>
    %c0_71 = arith.constant 0 : index
    %c0_72 = arith.constant 0 : index
    %66 = vector.load %arg4[%c0_71, %c0_72] : memref<1x128xf32, #tpu.memory_space<vmem>>, vector<1x128xf32>
    %67 = vector.broadcast %66 : vector<1x128xf32> to vector<4x128xf32>
    %68 = arith.addf %65, %67 : vector<4x128xf32>
    %c0_73 = arith.constant 0 : index
    %c0_74 = arith.constant 0 : index
    %69 = vector.load %arg5[%c0_73, %c0_74] : memref<4x128xf32, #tpu.memory_space<vmem>>, vector<4x128xf32>
    tpu.vector_store %arg5[%c0_73, %c0_74], %68 {strides = array<i32>} : memref<4x128xf32, #tpu.memory_space<vmem>>, vector<4x128xf32>,
    return
  }
}

</mosaic_0001>

<bundles_post_ra>
// kernel: siamese_forward.1
= control target key start
LH: loop header
LB: loop body
LE: loop exit
PB: predicated region body
PF: predicated region fallthrough
CT: control target
= control target key end

     0   :  { %vm664_vm0 = vcmask 1043456   ;;  %vm279_vm1 = vcmask 31744   ;;  %vm12180_vm2 = vcmask 130048   ;;  %vm18449_vm3 = vmmov 0   ;;  %s23576_s1 = inlined_call_operand.vmem [shape: f32[9,4,16], index: 1, kind: input, shape index: {}]   ;;  %s23577_s0 = inlined_call_operand.vmem [shape: f32[4,18,18,4], index: 0, kind: input, shape index: {}]   ;;  %s23578_s2 = inlined_call_operand.vmem [shape: f32[1,16], index: 2, kind: input, shape index: {}]   ;;  %s23579_s3 = inlined_call_operand.vmem [shape: f32[16,128], index: 3, kind: input, shape index: {}]   ;;  %s23580_s4 = inlined_call_operand.vmem [shape: f32[1,128], index: 4, kind: input, shape index: {}]   ;;  %s23581_s5 = inlined_call_operand.vmem [shape: f32[4,128], index: 5, kind: output, shape index: {}]  }
   0x1   :  { %v12557_v0 = vld [vmem:[%s23576_s1 + $0x4] sm:$0xf]  ;;  %v13332_v1 = vld [vmem:[%s23576_s1 + $0x10] sm:$0xf]  ;;  %v13204_v3 = vld [vmem:[%s23577_s0 + $0x19] sm:$0xff]  ;;  %vm12474_vm4 = vcmask 1041409  }
   0x2   :  { %v149_v2 = vld [vmem:[%s23577_s0 + $0x1] sm:$0xff]  ;;  %15661 = vmatprep.subr.msk.mxu1 %vm664_vm0, %v12557_v0  ;;  %16437 = vmatprep.subr.msk.mxu0 %vm664_vm0, %v13332_v1  ;;  %v150_v4 = vld [vmem:[%s23577_s0 + $0x9] sm:$0xff]  ;;  %v13590_v6 = vld [vmem:[%s23576_s1 + $0x14] sm:$0xf]  ;;  %vm12476_vm5 = vcmask 1042434   ;;  %vm12478_vm6 = vcmask 1043459  }
   0x3   :  { %v13205_v5 = vld [vmem:[%s23577_s0 + $0x21] sm:$0xff]  ;;  %15662 = vmatpush3.msk.msra.mxu1 %vm664_vm0, %v12557_v0  ;;  %15663 = vmatprep.mubr.msk.f32.mxu1 %vm279_vm1, %v149_v2  ;;  %v13206_v7 = vld [vmem:[%s23577_s0 + $0x31] sm:$0xff]  ;;  %v13207_v9 = vld [vmem:[%s23577_s0 + $0x39] sm:$0xff] }
   0x4   :  { %16438 = vmatpush3.msk.msra.mxu0 %vm664_vm0, %v13332_v1  ;;  %16439 = vmatprep.mubr.msk.f32.mxu0 %vm279_vm1, %v13204_v3  ;;  %v148_v8 = vld [vmem:[%s23576_s1] sm:$0xf]  ;;  %v13208_v10 = vld [vmem:[%s23577_s0 + $0x49] sm:$0xff]  ;;  %v13209_v11 = vld [vmem:[%s23577_s0 + $0x51] sm:$0xff] }
   0x5   :  { %15664 = vmatmul.mubr.msk.f32.vlgmr.msra.gmra.mrb[0].mxu1 %vm279_vm1, %v150_v4  ;;  %16440 = vmatmul.mubr.msk.f32.vlgmr.msra.gmra.mrb[0].mxu0 %vm279_vm1, %v13205_v5  ;;  %v13210_v12 = vld [vmem:[%s23577_s0 + $0x61] sm:$0xff]  ;;  %v13211_v13 = vld [vmem:[%s23577_s0 + $0x69] sm:$0xff]  ;;  %v13212_v14 = vld [vmem:[%s23577_s0 + $0x79] sm:$0xff] }
   0x6   :  { %16631 = vmatprep.subr.msk.mxu0 %vm664_vm0, %v13590_v6  ;;  %15666 = vmatprep.mubr.msk.f32.mxu1 %vm279_vm1, %v13204_v3  ;;  %v13213_v15 = vld [vmem:[%s23577_s0 + $0x81] sm:$0xff]  ;;  %v13214_v16 = vld [vmem:[%s23577_s0 + $0x91] sm:$0xff]  ;;  %v13215_v17 = vld [vmem:[%s23577_s0 + $0x99] sm:$0xff] }
   0x7   :  { %16632 = vmatpush3.msk.msra.mxu0 %vm664_vm0, %v13590_v6  ;;  %16442 = vmatprep.mubr.msk.f32.mxu0 %vm279_vm1, %v13206_v7  ;;  %v13216_v18 = vld [vmem:[%s23577_s0 + $0xa9] sm:$0xff]  ;;  %v13217_v19 = vld [vmem:[%s23577_s0 + $0xb1] sm:$0xff]  ;;  %v13218_v20 = vld [vmem:[%s23577_s0 + $0xc1] sm:$0xff] }
   0x8   :  { %15855 = vmatprep.subr.msk.mxu1 %vm664_vm0, %v148_v8  ;;  %v18581_v21 = vld [vmem:[%s23576_s1 + $0x18] sm:$0xf]  ;;  %v13219_v22 = vld [vmem:[%s23577_s0 + $0xc9] sm:$0xff]  ;;  %v13221_v24 = vld [vmem:[%s23577_s0 + $0xe1] sm:$0xff] }
   0x9   :  { %15667 = vmatmul.mubr.msk.f32.gmra.mrb[2].mxu1 %vm279_vm1, %v13205_v5  ;;  %16443 = vmatmul.mubr.msk.f32.gmra.mrb[2].mxu0 %vm279_vm1, %v13207_v9  ;;  %v13220_v23 = vld [vmem:[%s23577_s0 + $0xd9] sm:$0xff]  ;;  %v13222_v25 = vld [vmem:[%s23577_s0 + $0xf1] sm:$0xff]  ;;  %v13224_v27 = vld [vmem:[%s23577_s0 + $0x109] sm:$0xff] }
   0xa   :  { %15669 = vmatprep.mubr.msk.f32.mxu1 %vm279_vm1, %v13206_v7  ;;  %16445 = vmatprep.mubr.msk.f32.mxu0 %vm279_vm1, %v13208_v10  ;;  %v13223_v26 = vld [vmem:[%s23577_s0 + $0xf9] sm:$0xff]  ;;  %v13225_v28 = vld [vmem:[%s23577_s0 + $0x111] sm:$0xff]  ;;  %v13226_v29 = vld [vmem:[%s23577_s0 + $0x121] sm:$0xff] }
   0xb   :  { %15856 = vmatpush3.msk.msra.mxu1 %vm664_vm0, %v148_v8  ;;  %16825 = vmatprep.subr.msk.mxu0 %vm664_vm0, %v18581_v21  ;;  %v13227_v30 = vld [vmem:[%s23577_s0 + $0x129] sm:$0xff]  ;;  %v13228_v31 = vld [vmem:[%s23577_s0 + $0x139] sm:$0xff]  ;;  %v13229_v32 = vld [vmem:[%s23577_s0 + $0x141] sm:$0xff] }
   0xc   :  { %v13230_v33 = vld [vmem:[%s23577_s0 + $0x151] sm:$0xff]  ;;  %v13231_v34 = vld [vmem:[%s23577_s0 + $0x159] sm:$0xff]  ;;  %v13232_v35 = vld [vmem:[%s23577_s0 + $0x169] sm:$0xff] }
   0xd   :  { %15670 = vmatmul.mubr.msk.f32.gmra.mrb[4].mxu1 %vm279_vm1, %v13207_v9  ;;  %16446 = vmatmul.mubr.msk.f32.gmra.mrb[4].mxu0 %vm279_vm1, %v13209_v11  ;;  %v13233_v36 = vld [vmem:[%s23577_s0 + $0x171] sm:$0xff]  ;;  %v13234_v37 = vld [vmem:[%s23577_s0 + $0x181] sm:$0xff]  ;;  %v13235_v38 = vld [vmem:[%s23577_s0 + $0x189] sm:$0xff] }
   0xe   :  { %15672 = vmatprep.mubr.msk.f32.mxu1 %vm279_vm1, %v13208_v10  ;;  %16448 = vmatprep.mubr.msk.f32.mxu0 %vm279_vm1, %v13210_v12  ;;  %v181_v39 = vld [vmem:[%s23577_s0 + $0x1b1] sm:$0xff]  ;;  %v13236_v40 = vld [vmem:[%s23577_s0 + $0x1c9] sm:$0xff]  ;;  %v182_v41 = vld [vmem:[%s23577_s0 + $0x1b9] sm:$0xff] }
   0xf   :  { %v13237_v42 = vld [vmem:[%s23577_s0 + $0x1d1] sm:$0xff]  ;;  %v13238_v43 = vld [vmem:[%s23577_s0 + $0x1e1] sm:$0xff]  ;;  %v13239_v44 = vld [vmem:[%s23577_s0 + $0x1e9] sm:$0xff] }
  0x10   :  { %v13240_v45 = vld [vmem:[%s23577_s0 + $0x1f9] sm:$0xff]  ;;  %v13241_v46 = vld [vmem:[%s23577_s0 + $0x201] sm:$0xff]  ;;  %v13242_v47 = vld [vmem:[%s23577_s0 + $0x211] sm:$0xff] }
  0x11   :  { %15673 = vmatmul.mubr.msk.f32.gmra.mrb[6].mxu1 %vm279_vm1, %v13209_v11  ;;  %16449 = vmatmul.mubr.msk.f32.gmra.mrb[6].mxu0 %vm279_vm1, %v13211_v13  ;;  %v13243_v48 = vld [vmem:[%s23577_s0 + $0x219] sm:$0xff]  ;;  %v13244_v49 = vld [vmem:[%s23577_s0 + $0x229] sm:$0xff]  ;;  %v13245_v50 = vld [vmem:[%s23577_s0 + $0x231] sm:$0xff] }
  0x12   :  { %15675 = vmatprep.mubr.msk.f32.mxu1 %vm279_vm1, %v13210_v12  ;;  %16451 = vmatprep.mubr.msk.f32.mxu0 %vm279_vm1, %v13212_v14  ;;  %v13246_v51 = vld [vmem:[%s23577_s0 + $0x241] sm:$0xff]  ;;  %v13247_v52 = vld [vmem:[%s23577_s0 + $0x249] sm:$0xff]  ;;  %v13248_v53 = vld [vmem:[%s23577_s0 + $0x259] sm:$0xff] }
  0x13   :  { %v13249_v54 = vld [vmem:[%s23577_s0 + $0x261] sm:$0xff]  ;;  %v13250_v55 = vld [vmem:[%s23577_s0 + $0x271] sm:$0xff]  ;;  %v13251_v56 = vld [vmem:[%s23577_s0 + $0x279] sm:$0xff] }
  0x14   :  { %v13252_v57 = vld [vmem:[%s23577_s0 + $0x289] sm:$0xff]  ;;  %v13253_v58 = vld [vmem:[%s23577_s0 + $0x291] sm:$0xff]  ;;  %v13254_v59 = vld [vmem:[%s23577_s0 + $0x2a1] sm:$0xff] }
  0x15   :  { %15676 = vmatmul.mubr.msk.f32.gmra.mrb[8].mxu1 %vm279_vm1, %v13211_v13  ;;  %16452 = vmatmul.mubr.msk.f32.gmra.mrb[8].mxu0 %vm279_vm1, %v13213_v15  ;;  %v13255_v60 = vld [vmem:[%s23577_s0 + $0x2a9] sm:$0xff]  ;;  %v13256_v61 = vld [vmem:[%s23577_s0 + $0x2b9] sm:$0xff]  ;;  %v13257_v62 = vld [vmem:[%s23577_s0 + $0x2c1] sm:$0xff] }
  0x16   :  { %15678 = vmatprep.mubr.msk.f32.mxu1 %vm279_vm1, %v13212_v14  ;;  %16454 = vmatprep.mubr.msk.f32.mxu0 %vm279_vm1, %v13214_v16  ;;  %v13258_v63 = vld [vmem:[%s23577_s0 + $0x2d1] sm:$0xff]  ;;  %v13259_v0 = vld [vmem:[%s23577_s0 + $0x2d9] sm:$0xff]  ;;  %v13260_v1 = vld [vmem:[%s23577_s0 + $0x2e9] sm:$0xff] }
  0x17   :  { %v13261_v2 = vld [vmem:[%s23577_s0 + $0x2f1] sm:$0xff]  ;;  %v13262_v3 = vld [vmem:[%s23577_s0 + $0x301] sm:$0xff]  ;;  %v13263_v4 = vld [vmem:[%s23577_s0 + $0x309] sm:$0xff] }
  0x18   :  { %v13264_v5 = vld [vmem:[%s23577_s0 + $0x319] sm:$0xff]  ;;  %v13265_v6 = vld [vmem:[%s23577_s0 + $0x321] sm:$0xff]  ;;  %v13266_v7 = vld [vmem:[%s23577_s0 + $0x331] sm:$0xff] }
  0x19   :  { %15679 = vmatmul.mubr.msk.f32.gmra.mrb[10].mxu1 %vm279_vm1, %v13213_v15  ;;  %16455 = vmatmul.mubr.msk.f32.gmra.mrb[10].mxu0 %vm279_vm1, %v13215_v17  ;;  %v13267_v8 = vld [vmem:[%s23577_s0 + $0x339] sm:$0xff]  ;;  %v213_v9 = vld [vmem:[%s23577_s0 + $0x361] sm:$0xff]  ;;  %v214_v11 = vld [vmem:[%s23577_s0 + $0x369] sm:$0xff] }
  0x1a   :  { %15681 = vmatprep.mubr.msk.f32.mxu1 %vm279_vm1, %v13214_v16  ;;  %16457 = vmatprep.mubr.msk.f32.mxu0 %vm279_vm1, %v13216_v18  ;;  %v13268_v10 = vld [vmem:[%s23577_s0 + $0x379] sm:$0xff]  ;;  %v13269_v12 = vld [vmem:[%s23577_s0 + $0x381] sm:$0xff]  ;;  %v217_v15 = vld [vmem:[%s23577_s0 + $0x391] sm:$0xff] }
  0x1b   :  { %v13462_v13 = vld [vmem:[%s23577_s0 + $0x1a] sm:$0xff]  ;;  %v13463_v14 = vld [vmem:[%s23577_s0 + $0x22] sm:$0xff]  ;;  %v13464_v16 = vld [vmem:[%s23577_s0 + $0x32] sm:$0xff] }
  0x1d   :  { %15682 = vmatmul.mubr.msk.f32.gmra.mrb[12].mxu1 %vm279_vm1, %v13215_v17  ;;  %16458 = vmatmul.mubr.msk.f32.gmra.mrb[12].mxu0 %vm279_vm1, %v13217_v19  ;;  %v218_v17 = vld [vmem:[%s23577_s0 + $0x399] sm:$0xff] }
  0x1e   :  { %15684 = vmatprep.mubr.msk.f32.mxu1 %vm279_vm1, %v13216_v18  ;;  %16460 = vmatprep.mubr.msk.f32.mxu0 %vm279_vm1, %v13218_v20  ;;  %v13465_v18 = vld [vmem:[%s23577_s0 + $0x3a] sm:$0xff] }
  0x21   :  { %15685 = vmatmul.mubr.msk.f32.gmra.mrb[14].mxu1 %vm279_vm1, %v13217_v19  ;;  %16461 = vmatmul.mubr.msk.f32.gmra.mrb[14].mxu0 %vm279_vm1, %v13219_v22  ;;  %v219_v19 = vld [vmem:[%s23577_s0 + $0x3a9] sm:$0xff] }
  0x22   :  { %15687 = vmatprep.mubr.msk.f32.mxu1 %vm279_vm1, %v13218_v20  ;;  %16463 = vmatprep.mubr.msk.f32.mxu0 %vm279_vm1, %v13220_v23  ;;  %v13466_v20 = vld [vmem:[%s23577_s0 + $0x4a] sm:$0xff] }
  0x25   :  { %15688 = vmatmul.mubr.msk.f32.gmra.mrb[16].mxu1 %vm279_vm1, %v13219_v22  ;;  %16464 = vmatmul.mubr.msk.f32.gmra.mrb[16].mxu0 %vm279_vm1, %v13221_v24  ;;  %v220_v22 = vld [vmem:[%s23577_s0 + $0x3b1] sm:$0xff] }
  0x26   :  { %15690 = vmatprep.mubr.msk.f32.mxu1 %vm279_vm1, %v13220_v23  ;;  %16466 = vmatprep.mubr.msk.f32.mxu0 %vm279_vm1, %v13222_v25  ;;  %v13467_v23 = vld [vmem:[%s23577_s0 + $0x52] sm:$0xff] }
  0x29   :  { %15691 = vmatmul.mubr.msk.f32.gmra.mrb[18].mxu1 %vm279_vm1, %v13221_v24  ;;  %16467 = vmatmul.mubr.msk.f32.gmra.mrb[18].mxu0 %vm279_vm1, %v13223_v26  ;;  %v221_v24 = vld [vmem:[%s23577_s0 + $0x3c1] sm:$0xff] }
  0x2a   :  { %15693 = vmatprep.mubr.msk.f32.mxu1 %vm279_vm1, %v13222_v25  ;;  %16469 = vmatprep.mubr.msk.f32.mxu0 %vm279_vm1, %v13224_v27  ;;  %v13468_v25 = vld [vmem:[%s23577_s0 + $0x62] sm:$0xff] }
  0x2d   :  { %15694 = vmatmul.mubr.msk.f32.gmra.mrb[20].mxu1 %vm279_vm1, %v13223_v26  ;;  %16470 = vmatmul.mubr.msk.f32.gmra.mrb[20].mxu0 %vm279_vm1, %v13225_v28  ;;  %v222_v26 = vld [vmem:[%s23577_s0 + $0x3c9] sm:$0xff] }
  0x2e   :  { %15696 = vmatprep.mubr.msk.f32.mxu1 %vm279_vm1, %v13224_v27  ;;  %16472 = vmatprep.mubr.msk.f32.mxu0 %vm279_vm1, %v13226_v29  ;;  %v13469_v27 = vld [vmem:[%s23577_s0 + $0x6a] sm:$0xff] }
  0x31   :  { %15697 = vmatmul.mubr.msk.f32.gmra.mrb[22].mxu1 %vm279_vm1, %v13225_v28  ;;  %16473 = vmatmul.mubr.msk.f32.gmra.mrb[22].mxu0 %vm279_vm1, %v13227_v30  ;;  %v223_v28 = vld [vmem:[%s23577_s0 + $0x3d9] sm:$0xff] }
  0x32   :  { %15699 = vmatprep.mubr.msk.f32.mxu1 %vm279_vm1, %v13226_v29  ;;  %16475 = vmatprep.mubr.msk.f32.mxu0 %vm279_vm1, %v13228_v31  ;;  %v13470_v29 = vld [vmem:[%s23577_s0 + $0x7a] sm:$0xff] }
  0x35   :  { %15700 = vmatmul.mubr.msk.f32.gmra.mrb[24].mxu1 %vm279_vm1, %v13227_v30  ;;  %16476 = vmatmul.mubr.msk.f32.gmra.mrb[24].mxu0 %vm279_vm1, %v13229_v32  ;;  %v224_v30 = vld [vmem:[%s23577_s0 + $0x3e1] sm:$0xff] }
  0x36   :  { %15702 = vmatprep.mubr.msk.f32.mxu1 %vm279_vm1, %v13228_v31  ;;  %16478 = vmatprep.mubr.msk.f32.mxu0 %vm279_vm1, %v13230_v33  ;;  %v13471_v31 = vld [vmem:[%s23577_s0 + $0x82] sm:$0xff] }
  0x39   :  { %15703 = vmatmul.mubr.msk.f32.gmra.mrb[26].mxu1 %vm279_vm1, %v13229_v32  ;;  %16479 = vmatmul.mubr.msk.f32.gmra.mrb[26].mxu0 %vm279_vm1, %v13231_v34  ;;  %v225_v32 = vld [vmem:[%s23577_s0 + $0x3f1] sm:$0xff] }
  0x3a   :  { %15705 = vmatprep.mubr.msk.f32.mxu1 %vm279_vm1, %v13230_v33  ;;  %16481 = vmatprep.mubr.msk.f32.mxu0 %vm279_vm1, %v13232_v35  ;;  %v13472_v33 = vld [vmem:[%s23577_s0 + $0x92] sm:$0xff] }
  0x3d   :  { %15706 = vmatmul.mubr.msk.f32.gmra.mrb[28].mxu1 %vm279_vm1, %v13231_v34  ;;  %16482 = vmatmul.mubr.msk.f32.gmra.mrb[28].mxu0 %vm279_vm1, %v13233_v36  ;;  %v226_v34 = vld [vmem:[%s23577_s0 + $0x3f9] sm:$0xff] }
  0x3e   :  { %15708 = vmatprep.mubr.msk.f32.mxu1 %vm279_vm1, %v13232_v35  ;;  %16484 = vmatprep.mubr.msk.f32.mxu0 %vm279_vm1, %v13234_v37  ;;  %v13473_v35 = vld [vmem:[%s23577_s0 + $0x9a] sm:$0xff]  ;;  %v13474_v37 = vld [vmem:[%s23577_s0 + $0xaa] sm:$0xff] }
  0x41   :  { %15709 = vmatmul.mubr.msk.f32.gmra.mrb[30].mxu1 %vm279_vm1, %v13233_v36  ;;  %16485 = vmatmul.mubr.msk.f32.gmra.mrb[30].mxu0 %vm279_vm1, %v13235_v38  ;;  %v227_v36 = vld [vmem:[%s23577_s0 + $0x409] sm:$0xff]  ;;  %v228_v38 = vld [vmem:[%s23577_s0 + $0x411] sm:$0xff] }
  0x42   :  { %15711 = vmatprep.mubr.msk.f32.mxu1 %vm279_vm1, %v181_v39  ;;  %16487 = vmatprep.mubr.msk.f32.mxu0 %vm279_vm1, %v13236_v40  ;;  %v13475_v39 = vld [vmem:[%s23577_s0 + $0xb2] sm:$0xff] }
  0x45   :  { %15712 = vmatmul.mubr.msk.f32.gmra.mrb[32].mxu1 %vm279_vm1, %v182_v41  ;;  %16488 = vmatmul.mubr.msk.f32.gmra.mrb[32].mxu0 %vm279_vm1, %v13237_v42  ;;  %v13476_v41 = vld [vmem:[%s23577_s0 + $0xc2] sm:$0xff] }
  0x46   :  { %15714 = vmatprep.mubr.msk.f32.mxu1 %vm279_vm1, %v13236_v40  ;;  %16490 = vmatprep.mubr.msk.f32.mxu0 %vm279_vm1, %v13238_v43  ;;  %v229_v40 = vld [vmem:[%s23577_s0 + $0x421] sm:$0xff] }
  0x49   :  { %15715 = vmatmul.mubr.msk.f32.gmra.mrb[34].mxu1 %vm279_vm1, %v13237_v42  ;;  %16491 = vmatmul.mubr.msk.f32.gmra.mrb[34].mxu0 %vm279_vm1, %v13239_v44  ;;  %v230_v42 = vld [vmem:[%s23577_s0 + $0x429] sm:$0xff] }
  0x4a   :  { %15717 = vmatprep.mubr.msk.f32.mxu1 %vm279_vm1, %v13238_v43  ;;  %16493 = vmatprep.mubr.msk.f32.mxu0 %vm279_vm1, %v13240_v45  ;;  %v13477_v43 = vld [vmem:[%s23577_s0 + $0xca] sm:$0xff] }
  0x4d   :  { %15718 = vmatmul.mubr.msk.f32.gmra.mrb[36].mxu1 %vm279_vm1, %v13239_v44  ;;  %16494 = vmatmul.mubr.msk.f32.gmra.mrb[36].mxu0 %vm279_vm1, %v13241_v46  ;;  %v231_v44 = vld [vmem:[%s23577_s0 + $0x439] sm:$0xff] }
  0x4e   :  { %15720 = vmatprep.mubr.msk.f32.mxu1 %vm279_vm1, %v13240_v45  ;;  %16496 = vmatprep.mubr.msk.f32.mxu0 %vm279_vm1, %v13242_v47  ;;  %v13478_v45 = vld [vmem:[%s23577_s0 + $0xda] sm:$0xff] }
  0x51   :  { %15721 = vmatmul.mubr.msk.f32.gmra.mrb[38].mxu1 %vm279_vm1, %v13241_v46  ;;  %16497 = vmatmul.mubr.msk.f32.gmra.mrb[38].mxu0 %vm279_vm1, %v13243_v48  ;;  %v232_v46 = vld [vmem:[%s23577_s0 + $0x441] sm:$0xff] }
  0x52   :  { %15723 = vmatprep.mubr.msk.f32.mxu1 %vm279_vm1, %v13242_v47  ;;  %16499 = vmatprep.mubr.msk.f32.mxu0 %vm279_vm1, %v13244_v49  ;;  %v13479_v47 = vld [vmem:[%s23577_s0 + $0xe2] sm:$0xff] }
  0x55   :  { %15724 = vmatmul.mubr.msk.f32.gmra.mrb[40].mxu1 %vm279_vm1, %v13243_v48  ;;  %16500 = vmatmul.mubr.msk.f32.gmra.mrb[40].mxu0 %vm279_vm1, %v13245_v50  ;;  %v233_v48 = vld [vmem:[%s23577_s0 + $0x451] sm:$0xff] }
  0x56   :  { %15726 = vmatprep.mubr.msk.f32.mxu1 %vm279_vm1, %v13244_v49  ;;  %16502 = vmatprep.mubr.msk.f32.mxu0 %vm279_vm1, %v13246_v51  ;;  %v13480_v49 = vld [vmem:[%s23577_s0 + $0xf2] sm:$0xff] }
  0x59   :  { %15727 = vmatmul.mubr.msk.f32.gmra.mrb[42].mxu1 %vm279_vm1, %v13245_v50  ;;  %16503 = vmatmul.mubr.msk.f32.gmra.mrb[42].mxu0 %vm279_vm1, %v13247_v52  ;;  %v234_v50 = vld [vmem:[%s23577_s0 + $0x459] sm:$0xff] }
  0x5a   :  { %15729 = vmatprep.mubr.msk.f32.mxu1 %vm279_vm1, %v13246_v51  ;;  %16505 = vmatprep.mubr.msk.f32.mxu0 %vm279_vm1, %v13248_v53  ;;  %v13481_v51 = vld [vmem:[%s23577_s0 + $0xfa] sm:$0xff] }
  0x5d   :  { %15730 = vmatmul.mubr.msk.f32.gmra.mrb[44].mxu1 %vm279_vm1, %v13247_v52  ;;  %16506 = vmatmul.mubr.msk.f32.gmra.mrb[44].mxu0 %vm279_vm1, %v13249_v54  ;;  %v235_v52 = vld [vmem:[%s23577_s0 + $0x469] sm:$0xff] }
  0x5e   :  { %15732 = vmatprep.mubr.msk.f32.mxu1 %vm279_vm1, %v13248_v53  ;;  %16508 = vmatprep.mubr.msk.f32.mxu0 %vm279_vm1, %v13250_v55  ;;  %v13482_v53 = vld [vmem:[%s23577_s0 + $0x10a] sm:$0xff] }
  0x61   :  { %15733 = vmatmul.mubr.msk.f32.gmra.mrb[46].mxu1 %vm279_vm1, %v13249_v54  ;;  %16509 = vmatmul.mubr.msk.f32.gmra.mrb[46].mxu0 %vm279_vm1, %v13251_v56  ;;  %v236_v54 = vld [vmem:[%s23577_s0 + $0x471] sm:$0xff] }
  0x62   :  { %15735 = vmatprep.mubr.msk.f32.mxu1 %vm279_vm1, %v13250_v55  ;;  %16511 = vmatprep.mubr.msk.f32.mxu0 %vm279_vm1, %v13252_v57  ;;  %v13483_v55 = vld [vmem:[%s23577_s0 + $0x112] sm:$0xff] }
  0x65   :  { %15736 = vmatmul.mubr.msk.f32.gmra.mrb[48].mxu1 %vm279_vm1, %v13251_v56  ;;  %16512 = vmatmul.mubr.msk.f32.gmra.mrb[48].mxu0 %vm279_vm1, %v13253_v58  ;;  %v237_v56 = vld [vmem:[%s23577_s0 + $0x481] sm:$0xff] }
  0x66   :  { %15738 = vmatprep.mubr.msk.f32.mxu1 %vm279_vm1, %v13252_v57  ;;  %16514 = vmatprep.mubr.msk.f32.mxu0 %vm279_vm1, %v13254_v59  ;;  %v13484_v57 = vld [vmem:[%s23577_s0 + $0x122] sm:$0xff] }
  0x69   :  { %15739 = vmatmul.mubr.msk.f32.gmra.mrb[50].mxu1 %vm279_vm1, %v13253_v58  ;;  %16515 = vmatmul.mubr.msk.f32.gmra.mrb[50].mxu0 %vm279_vm1, %v13255_v60  ;;  %v238_v58 = vld [vmem:[%s23577_s0 + $0x489] sm:$0xff] }
  0x6a   :  { %15741 = vmatprep.mubr.msk.f32.mxu1 %vm279_vm1, %v13254_v59  ;;  %16517 = vmatprep.mubr.msk.f32.mxu0 %vm279_vm1, %v13256_v61  ;;  %v13485_v59 = vld [vmem:[%s23577_s0 + $0x12a] sm:$0xff] }
  0x6d   :  { %15742 = vmatmul.mubr.msk.f32.gmra.mrb[52].mxu1 %vm279_vm1, %v13255_v60  ;;  %16518 = vmatmul.mubr.msk.f32.gmra.mrb[52].mxu0 %vm279_vm1, %v13257_v62  ;;  %v239_v60 = vld [vmem:[%s23577_s0 + $0x499] sm:$0xff] }
  0x6e   :  { %15744 = vmatprep.mubr.msk.f32.mxu1 %vm279_vm1, %v13256_v61  ;;  %16520 = vmatprep.mubr.msk.f32.mxu0 %vm279_vm1, %v13258_v63  ;;  %v13486_v61 = vld [vmem:[%s23577_s0 + $0x13a] sm:$0xff] }
  0x71   :  { %15745 = vmatmul.mubr.msk.f32.gmra.mrb[54].mxu1 %vm279_vm1, %v13257_v62  ;;  %16521 = vmatmul.mubr.msk.f32.gmra.mrb[54].mxu0 %vm279_vm1, %v13259_v0  ;;  %v240_v62 = vld [vmem:[%s23577_s0 + $0x4a1] sm:$0xff] }
  0x72   :  { %15747 = vmatprep.mubr.msk.f32.mxu1 %vm279_vm1, %v13258_v63  ;;  %16523 = vmatprep.mubr.msk.f32.mxu0 %vm279_vm1, %v13260_v1  ;;  %v13487_v63 = vld [vmem:[%s23577_s0 + $0x142] sm:$0xff] }
  0x75   :  { %15748 = vmatmul.mubr.msk.f32.gmra.mrb[56].mxu1 %vm279_vm1, %v13259_v0  ;;  %16524 = vmatmul.mubr.msk.f32.gmra.mrb[56].mxu0 %vm279_vm1, %v13261_v2  ;;  %v241_v0 = vld [vmem:[%s23577_s0 + $0x4b1] sm:$0xff] }
  0x76   :  { %15750 = vmatprep.mubr.msk.f32.mxu1 %vm279_vm1, %v13260_v1  ;;  %16526 = vmatprep.mubr.msk.f32.mxu0 %vm279_vm1, %v13262_v3  ;;  %v13488_v1 = vld [vmem:[%s23577_s0 + $0x152] sm:$0xff] }
  0x79   :  { %15751 = vmatmul.mubr.msk.f32.gmra.mrb[58].mxu1 %vm279_vm1, %v13261_v2  ;;  %16527 = vmatmul.mubr.msk.f32.gmra.mrb[58].mxu0 %vm279_vm1, %v13263_v4  ;;  %v242_v2 = vld [vmem:[%s23577_s0 + $0x4b9] sm:$0xff] }
  0x7a   :  { %15753 = vmatprep.mubr.msk.f32.mxu1 %vm279_vm1, %v13262_v3  ;;  %16529 = vmatprep.mubr.msk.f32.mxu0 %vm279_vm1, %v13264_v5  ;;  %v13489_v3 = vld [vmem:[%s23577_s0 + $0x15a] sm:$0xff] }
  0x7d   :  { %15754 = vmatmul.mubr.msk.f32.gmra.mrb[60].mxu1 %vm279_vm1, %v13263_v4  ;;  %16530 = vmatmul.mubr.msk.f32.gmra.mrb[60].mxu0 %vm279_vm1, %v13265_v6  ;;  %v243_v4 = vld [vmem:[%s23577_s0 + $0x4c9] sm:$0xff] }
  0x7e   :  { %15756 = vmatprep.mubr.msk.f32.mxu1 %vm279_vm1, %v13264_v5  ;;  %16532 = vmatprep.mubr.msk.f32.mxu0 %vm279_vm1, %v13266_v7  ;;  %v13490_v5 = vld [vmem:[%s23577_s0 + $0x16a] sm:$0xff]  ;;  %v13491_v7 = vld [vmem:[%s23577_s0 + $0x172] sm:$0xff] }
  0x81   :  { %15757 = vmatmul.mubr.msk.f32.gmra.mrb[62].mxu1 %vm279_vm1, %v13265_v6  ;;  %16533 = vmatmul.mubr.msk.f32.gmra.mrb[62].mxu0 %vm279_vm1, %v13267_v8  ;;  %v244_v6 = vld [vmem:[%s23577_s0 + $0x4d1] sm:$0xff] }
  0x82   :  { %15759 = vmatprep.mubr.msk.f32.mxu1 %vm279_vm1, %v213_v9  ;;  %16535 = vmatprep.mubr.msk.f32.mxu0 %vm279_vm1, %v13268_v10  ;;  %v245_v8 = vld [vmem:[%s23577_s0 + $0x511] sm:$0xff]  ;;  %v13492_v9 = vld [vmem:[%s23577_s0 + $0x182] sm:$0xff] }
  0x85   :  { %15760 = vmatmul.mubr.msk.f32.gmra.mrb[64].mxu1 %vm279_vm1, %v214_v11  ;;  %16536 = vmatmul.mubr.msk.f32.gmra.mrb[64].mxu0 %vm279_vm1, %v13269_v12  ;;  %v13493_v11 = vld [vmem:[%s23577_s0 + $0x18a] sm:$0xff] }
  0x86   :  { %15762 = vmatprep.mubr.msk.f32.mxu1 %vm279_vm1, %v13268_v10  ;;  %16633 = vmatprep.mubr.msk.f32.mxu0 %vm279_vm1, %v13462_v13  ;;  %v246_v10 = vld [vmem:[%s23577_s0 + $0x519] sm:$0xff]  ;;  %v13494_v13 = vld [vmem:[%s23577_s0 + $0x1ca] sm:$0xff] }
  0x89   :  { %15763 = vmatmul.mubr.msk.f32.gmra.mrb[66].mxu1 %vm279_vm1, %v13269_v12  ;;  %16634 = vmatmul.mubr.msk.f32.vlgmr.msra.gmra.mrb[0].mxu0 %vm279_vm1, %v13463_v14  ;;  %v247_v12 = vld [vmem:[%s23577_s0 + $0x529] sm:$0xff]  ;;  %v248_v14 = vld [vmem:[%s23577_s0 + $0x531] sm:$0xff] }
  0x8a   :  { %16826 = vmatpush3.msk.msra.mxu0 %vm664_vm0, %v18581_v21  ;;  %15765 = vmatprep.mubr.msk.f32.mxu1 %vm279_vm1, %v217_v15  ;;  %v18893_v21 = vld [vmem:[%s23576_s1 + $0x8] sm:$0xf]  ;;  %v13495_v15 = vld [vmem:[%s23577_s0 + $0x1d2] sm:$0xff] }
  0x8b   :  { %16636 = vmatprep.mubr.msk.f32.mxu0 %vm279_vm1, %v13464_v16  ;;  %16049 = vmatprep.subr.msk.mxu1 %vm664_vm0, %v18893_v21  ;;  %v249_v16 = vld [vmem:[%s23577_s0 + $0x541] sm:$0xff] }
  0x8d   :  { %15766 = vmatmul.mubr.msk.f32.gmra.mrb[68].mxu1 %vm279_vm1, %v218_v17  ;;  %16637 = vmatmul.mubr.msk.f32.gmra.mrb[2].mxu0 %vm279_vm1, %v13465_v18  ;;  %v13496_v17 = vld [vmem:[%s23577_s0 + $0x1e2] sm:$0xff] }
  0x8e   :  { %15768 = vmatprep.mubr.msk.f32.mxu1 %vm279_vm1, %v219_v19  ;;  %16639 = vmatprep.mubr.msk.f32.mxu0 %vm279_vm1, %v13466_v20  ;;  %v250_v18 = vld [vmem:[%s23577_s0 + $0x549] sm:$0xff]  ;;  %v251_v20 = vld [vmem:[%s23577_s0 + $0x559] sm:$0xff] }
  0x8f   :  { %v13497_v19 = vld [vmem:[%s23577_s0 + $0x1ea] sm:$0xff] }
  0x91   :  { %15769 = vmatmul.mubr.msk.f32.gmra.mrb[70].mxu1 %vm279_vm1, %v220_v22  ;;  %16640 = vmatmul.mubr.msk.f32.gmra.mrb[4].mxu0 %vm279_vm1, %v13467_v23  ;;  %v13498_v22 = vld [vmem:[%s23577_s0 + $0x1fa] sm:$0xff] }
  0x92   :  { %15771 = vmatprep.mubr.msk.f32.mxu1 %vm279_vm1, %v221_v24  ;;  %16642 = vmatprep.mubr.msk.f32.mxu0 %vm279_vm1, %v13468_v25  ;;  %v252_v23 = vld [vmem:[%s23577_s0 + $0x561] sm:$0xff]  ;;  %v253_v25 = vld [vmem:[%s23577_s0 + $0x571] sm:$0xff] }
  0x93   :  { %v13499_v24 = vld [vmem:[%s23577_s0 + $0x202] sm:$0xff] }
  0x95   :  { %15772 = vmatmul.mubr.msk.f32.gmra.mrb[72].mxu1 %vm279_vm1, %v222_v26  ;;  %16643 = vmatmul.mubr.msk.f32.gmra.mrb[6].mxu0 %vm279_vm1, %v13469_v27  ;;  %v13500_v26 = vld [vmem:[%s23577_s0 + $0x212] sm:$0xff] }
  0x96   :  { %15774 = vmatprep.mubr.msk.f32.mxu1 %vm279_vm1, %v223_v28  ;;  %16645 = vmatprep.mubr.msk.f32.mxu0 %vm279_vm1, %v13470_v29  ;;  %v254_v27 = vld [vmem:[%s23577_s0 + $0x579] sm:$0xff]  ;;  %v255_v29 = vld [vmem:[%s23577_s0 + $0x589] sm:$0xff] }
  0x97   :  { %v13501_v28 = vld [vmem:[%s23577_s0 + $0x21a] sm:$0xff] }
  0x99   :  { %15775 = vmatmul.mubr.msk.f32.gmra.mrb[74].mxu1 %vm279_vm1, %v224_v30  ;;  %16646 = vmatmul.mubr.msk.f32.gmra.mrb[8].mxu0 %vm279_vm1, %v13471_v31  ;;  %v13502_v30 = vld [vmem:[%s23577_s0 + $0x22a] sm:$0xff] }
  0x9a   :  { %15777 = vmatprep.mubr.msk.f32.mxu1 %vm279_vm1, %v225_v32  ;;  %16648 = vmatprep.mubr.msk.f32.mxu0 %vm279_vm1, %v13472_v33  ;;  %v256_v31 = vld [vmem:[%s23577_s0 + $0x591] sm:$0xff]  ;;  %v257_v33 = vld [vmem:[%s23577_s0 + $0x5a1] sm:$0xff] }
  0x9b   :  { %v13503_v32 = vld [vmem:[%s23577_s0 + $0x232] sm:$0xff] }
  0x9d   :  { %15778 = vmatmul.mubr.msk.f32.gmra.mrb[76].mxu1 %vm279_vm1, %v226_v34  ;;  %16649 = vmatmul.mubr.msk.f32.gmra.mrb[10].mxu0 %vm279_vm1, %v13473_v35  ;;  %v13504_v34 = vld [vmem:[%s23577_s0 + $0x242] sm:$0xff] }
  0x9e   :  { %15780 = vmatprep.mubr.msk.f32.mxu1 %vm279_vm1, %v227_v36  ;;  %16651 = vmatprep.mubr.msk.f32.mxu0 %vm279_vm1, %v13474_v37  ;;  %v258_v35 = vld [vmem:[%s23577_s0 + $0x5a9] sm:$0xff]  ;;  %v259_v37 = vld [vmem:[%s23577_s0 + $0x5b9] sm:$0xff] }
  0x9f   :  { %v13505_v36 = vld [vmem:[%s23577_s0 + $0x24a] sm:$0xff] }
  0xa1   :  { %15781 = vmatmul.mubr.msk.f32.gmra.mrb[78].mxu1 %vm279_vm1, %v228_v38  ;;  %16652 = vmatmul.mubr.msk.f32.gmra.mrb[12].mxu0 %vm279_vm1, %v13475_v39  ;;  %v13506_v38 = vld [vmem:[%s23577_s0 + $0x25a] sm:$0xff] }
  0xa2   :  { %15783 = vmatprep.mubr.msk.f32.mxu1 %vm279_vm1, %v229_v40  ;;  %16654 = vmatprep.mubr.msk.f32.mxu0 %vm279_vm1, %v13476_v41  ;;  %v260_v39 = vld [vmem:[%s23577_s0 + $0x5c1] sm:$0xff]  ;;  %v261_v41 = vld [vmem:[%s23577_s0 + $0x5d1] sm:$0xff] }
  0xa3   :  { %v13507_v40 = vld [vmem:[%s23577_s0 + $0x262] sm:$0xff] }
  0xa5   :  { %15784 = vmatmul.mubr.msk.f32.gmra.mrb[80].mxu1 %vm279_vm1, %v230_v42  ;;  %16655 = vmatmul.mubr.msk.f32.gmra.mrb[14].mxu0 %vm279_vm1, %v13477_v43  ;;  %v13508_v42 = vld [vmem:[%s23577_s0 + $0x272] sm:$0xff] }
  0xa6   :  { %15786 = vmatprep.mubr.msk.f32.mxu1 %vm279_vm1, %v231_v44  ;;  %16657 = vmatprep.mubr.msk.f32.mxu0 %vm279_vm1, %v13478_v45  ;;  %v262_v43 = vld [vmem:[%s23577_s0 + $0x5d9] sm:$0xff]  ;;  %v263_v45 = vld [vmem:[%s23577_s0 + $0x5e9] sm:$0xff] }
  0xa7   :  { %v13509_v44 = vld [vmem:[%s23577_s0 + $0x27a] sm:$0xff] }
  0xa9   :  { %15787 = vmatmul.mubr.msk.f32.gmra.mrb[82].mxu1 %vm279_vm1, %v232_v46  ;;  %16658 = vmatmul.mubr.msk.f32.gmra.mrb[16].mxu0 %vm279_vm1, %v13479_v47  ;;  %v13510_v46 = vld [vmem:[%s23577_s0 + $0x28a] sm:$0xff] }
  0xaa   :  { %15789 = vmatprep.mubr.msk.f32.mxu1 %vm279_vm1, %v233_v48  ;;  %16660 = vmatprep.mubr.msk.f32.mxu0 %vm279_vm1, %v13480_v49  ;;  %v264_v47 = vld [vmem:[%s23577_s0 + $0x5f1] sm:$0xff]  ;;  %v265_v49 = vld [vmem:[%s23577_s0 + $0x601] sm:$0xff] }
  0xab   :  { %v13511_v48 = vld [vmem:[%s23577_s0 + $0x292] sm:$0xff] }
  0xad   :  { %15790 = vmatmul.mubr.msk.f32.gmra.mrb[84].mxu1 %vm279_vm1, %v234_v50  ;;  %16661 = vmatmul.mubr.msk.f32.gmra.mrb[18].mxu0 %vm279_vm1, %v13481_v51  ;;  %v13512_v50 = vld [vmem:[%s23577_s0 + $0x2a2] sm:$0xff] }
  0xae   :  { %15792 = vmatprep.mubr.msk.f32.mxu1 %vm279_vm1, %v235_v52  ;;  %16663 = vmatprep.mubr.msk.f32.mxu0 %vm279_vm1, %v13482_v53  ;;  %v266_v51 = vld [vmem:[%s23577_s0 + $0x609] sm:$0xff]  ;;  %v267_v53 = vld [vmem:[%s23577_s0 + $0x619] sm:$0xff] }
  0xaf   :  { %v13513_v52 = vld [vmem:[%s23577_s0 + $0x2aa] sm:$0xff] }
  0xb1   :  { %15793 = vmatmul.mubr.msk.f32.gmra.mrb[86].mxu1 %vm279_vm1, %v236_v54  ;;  %16664 = vmatmul.mubr.msk.f32.gmra.mrb[20].mxu0 %vm279_vm1, %v13483_v55  ;;  %v13514_v54 = vld [vmem:[%s23577_s0 + $0x2ba] sm:$0xff] }
  0xb2   :  { %15795 = vmatprep.mubr.msk.f32.mxu1 %vm279_vm1, %v237_v56  ;;  %16666 = vmatprep.mubr.msk.f32.mxu0 %vm279_vm1, %v13484_v57  ;;  %v268_v55 = vld [vmem:[%s23577_s0 + $0x621] sm:$0xff]  ;;  %v269_v57 = vld [vmem:[%s23577_s0 + $0x631] sm:$0xff] }
  0xb3   :  { %v13515_v56 = vld [vmem:[%s23577_s0 + $0x2c2] sm:$0xff] }
  0xb5   :  { %15796 = vmatmul.mubr.msk.f32.gmra.mrb[88].mxu1 %vm279_vm1, %v238_v58  ;;  %16667 = vmatmul.mubr.msk.f32.gmra.mrb[22].mxu0 %vm279_vm1, %v13485_v59  ;;  %v13516_v58 = vld [vmem:[%s23577_s0 + $0x2d2] sm:$0xff] }
  0xb6   :  { %15798 = vmatprep.mubr.msk.f32.mxu1 %vm279_vm1, %v239_v60  ;;  %16669 = vmatprep.mubr.msk.f32.mxu0 %vm279_vm1, %v13486_v61  ;;  %v270_v59 = vld [vmem:[%s23577_s0 + $0x639] sm:$0xff]  ;;  %v271_v61 = vld [vmem:[%s23577_s0 + $0x649] sm:$0xff] }
  0xb7   :  { %v13517_v60 = vld [vmem:[%s23577_s0 + $0x2da] sm:$0xff] }
  0xb9   :  { %15799 = vmatmul.mubr.msk.f32.gmra.mrb[90].mxu1 %vm279_vm1, %v240_v62  ;;  %16670 = vmatmul.mubr.msk.f32.gmra.mrb[24].mxu0 %vm279_vm1, %v13487_v63  ;;  %v13518_v62 = vld [vmem:[%s23577_s0 + $0x2ea] sm:$0xff] }
  0xba   :  { %15801 = vmatprep.mubr.msk.f32.mxu1 %vm279_vm1, %v241_v0  ;;  %16672 = vmatprep.mubr.msk.f32.mxu0 %vm279_vm1, %v13488_v1  ;;  %v272_v63 = vld [vmem:[%s23577_s0 + $0x651] sm:$0xff]  ;;  %v273_v1 = vld [vmem:[%s23577_s0 + $0x661] sm:$0xff] }
  0xbb   :  { %v13519_v0 = vld [vmem:[%s23577_s0 + $0x2f2] sm:$0xff] }
  0xbd   :  { %15802 = vmatmul.mubr.msk.f32.gmra.mrb[92].mxu1 %vm279_vm1, %v242_v2  ;;  %16673 = vmatmul.mubr.msk.f32.gmra.mrb[26].mxu0 %vm279_vm1, %v13489_v3  ;;  %v13520_v2 = vld [vmem:[%s23577_s0 + $0x302] sm:$0xff] }
  0xbe   :  { %15804 = vmatprep.mubr.msk.f32.mxu1 %vm279_vm1, %v243_v4  ;;  %16675 = vmatprep.mubr.msk.f32.mxu0 %vm279_vm1, %v13490_v5  ;;  %v274_v3 = vld [vmem:[%s23577_s0 + $0x669] sm:$0xff]  ;;  %v275_v5 = vld [vmem:[%s23577_s0 + $0x679] sm:$0xff] }
  0xbf   :  { %v13521_v4 = vld [vmem:[%s23577_s0 + $0x30a] sm:$0xff] }
  0xc1   :  { %15805 = vmatmul.mubr.msk.f32.gmra.mrb[94].mxu1 %vm279_vm1, %v244_v6  ;;  %16676 = vmatmul.mubr.msk.f32.gmra.mrb[28].mxu0 %vm279_vm1, %v13491_v7  ;;  %v13522_v6 = vld [vmem:[%s23577_s0 + $0x31a] sm:$0xff] }
  0xc2   :  { %15807 = vmatprep.mubr.msk.f32.mxu1 %vm279_vm1, %v245_v8  ;;  %16678 = vmatprep.mubr.msk.f32.mxu0 %vm279_vm1, %v13492_v9  ;;  %v276_v7 = vld [vmem:[%s23577_s0 + $0x681] sm:$0xff] }
  0xc3   :  { %v13523_v8 = vld [vmem:[%s23577_s0 + $0x322] sm:$0xff] }
  0xc4   :  { %v20_v9 = vld [vmem:[%s23577_s0] sm:$0xff] }
  0xc5   :  { %15808 = vmatmul.mubr.msk.f32.gmra.mrb[96].mxu1 %vm279_vm1, %v246_v10  ;;  %16679 = vmatmul.mubr.msk.f32.gmra.mrb[30].mxu0 %vm279_vm1, %v13493_v11  ;;  %v13524_v10 = vld [vmem:[%s23577_s0 + $0x332] sm:$0xff]  ;;  %v21_v11 = vld [vmem:[%s23577_s0 + $0x8] sm:$0xff] }
  0xc6   :  { %15810 = vmatprep.mubr.msk.f32.mxu1 %vm279_vm1, %v247_v12  ;;  %16681 = vmatprep.mubr.msk.f32.mxu0 %vm279_vm1, %v13494_v13  ;;  %v13525_v12 = vld [vmem:[%s23577_s0 + $0x33a] sm:$0xff] }
  0xc7   :  { %v22_v13 = vld [vmem:[%s23577_s0 + $0x18] sm:$0xff] }
  0xc9   :  { %15811 = vmatmul.mubr.msk.f32.gmra.mrb[98].mxu1 %vm279_vm1, %v248_v14  ;;  %16682 = vmatmul.mubr.msk.f32.gmra.mrb[32].mxu0 %vm279_vm1, %v13495_v15  ;;  %v13526_v14 = vld [vmem:[%s23577_s0 + $0x37a] sm:$0xff] }
  0xca   :  { %15813 = vmatprep.mubr.msk.f32.mxu1 %vm279_vm1, %v249_v16  ;;  %16684 = vmatprep.mubr.msk.f32.mxu0 %vm279_vm1, %v13496_v17  ;;  %v23_v15 = vld [vmem:[%s23577_s0 + $0x20] sm:$0xff]  ;;  %v19388_v17 = vld [vmem:[%s23577_s0 + $0x30] sm:$0xff] }
  0xcb   :  { %v13527_v16 = vld [vmem:[%s23577_s0 + $0x382] sm:$0xff] }
  0xcd   :  { %15814 = vmatmul.mubr.msk.f32.gmra.mrb[100].mxu1 %vm279_vm1, %v250_v18  ;;  %16685 = vmatmul.mubr.msk.f32.gmra.mrb[34].mxu0 %vm279_vm1, %v13497_v19  ;;  %v13528_v18 = vld [vmem:[%s23577_s0 + $0x392] sm:$0xff]  ;;  %v19400_v19 = vld [vmem:[%s23576_s1 + $0x1c] sm:$0xf] }
  0xce   :  { %15816 = vmatprep.mubr.msk.f32.mxu1 %vm279_vm1, %v251_v20  ;;  %16687 = vmatprep.mubr.msk.f32.mxu0 %vm279_vm1, %v13498_v22  ;;  %v19408_v20 = vld [vmem:[%s23577_s0 + $0x38] sm:$0xff]  ;;  %v19416_v22 = vld [vmem:[%s23577_s0 + $0x48] sm:$0xff] }
  0xcf   :  { %17019 = vmatprep.subr.msk.mxu0 %vm664_vm0, %v19400_v19 }
  0xd1   :  { %15817 = vmatmul.mubr.msk.f32.gmra.mrb[102].mxu1 %vm279_vm1, %v252_v23  ;;  %16688 = vmatmul.mubr.msk.f32.gmra.mrb[36].mxu0 %vm279_vm1, %v13499_v24  ;;  %v13530_v23 = vld [vmem:[%s23577_s0 + $0x3aa] sm:$0xff] }
  0xd2   :  { %15819 = vmatprep.mubr.msk.f32.mxu1 %vm279_vm1, %v253_v25  ;;  %16690 = vmatprep.mubr.msk.f32.mxu0 %vm279_vm1, %v13500_v26  ;;  %v19432_v24 = vld [vmem:[%s23577_s0 + $0x50] sm:$0xff]  ;;  %v19440_v26 = vld [vmem:[%s23577_s0 + $0x60] sm:$0xff] }
  0xd3   :  { %v13531_v25 = vld [vmem:[%s23577_s0 + $0x3b2] sm:$0xff] }
  0xd5   :  { %15820 = vmatmul.mubr.msk.f32.gmra.mrb[104].mxu1 %vm279_vm1, %v254_v27  ;;  %16691 = vmatmul.mubr.msk.f32.gmra.mrb[38].mxu0 %vm279_vm1, %v13501_v28  ;;  %v13532_v27 = vld [vmem:[%s23577_s0 + $0x3c2] sm:$0xff] }
  0xd6   :  { %15822 = vmatprep.mubr.msk.f32.mxu1 %vm279_vm1, %v255_v29  ;;  %16693 = vmatprep.mubr.msk.f32.mxu0 %vm279_vm1, %v13502_v30  ;;  %v19454_v28 = vld [vmem:[%s23577_s0 + $0x68] sm:$0xff]  ;;  %v19462_v30 = vld [vmem:[%s23577_s0 + $0x78] sm:$0xff] }
  0xd7   :  { %v13533_v29 = vld [vmem:[%s23577_s0 + $0x3ca] sm:$0xff] }
  0xd9   :  { %15823 = vmatmul.mubr.msk.f32.gmra.mrb[106].mxu1 %vm279_vm1, %v256_v31  ;;  %16694 = vmatmul.mubr.msk.f32.gmra.mrb[40].mxu0 %vm279_vm1, %v13503_v32  ;;  %v13534_v31 = vld [vmem:[%s23577_s0 + $0x3da] sm:$0xff] }
  0xda   :  { %15825 = vmatprep.mubr.msk.f32.mxu1 %vm279_vm1, %v257_v33  ;;  %16696 = vmatprep.mubr.msk.f32.mxu0 %vm279_vm1, %v13504_v34  ;;  %v19476_v32 = vld [vmem:[%s23577_s0 + $0x80] sm:$0xff]  ;;  %v19484_v34 = vld [vmem:[%s23577_s0 + $0x90] sm:$0xff] }
  0xdb   :  { %v13535_v33 = vld [vmem:[%s23577_s0 + $0x3e2] sm:$0xff] }
  0xdd   :  { %15826 = vmatmul.mubr.msk.f32.gmra.mrb[108].mxu1 %vm279_vm1, %v258_v35  ;;  %16697 = vmatmul.mubr.msk.f32.gmra.mrb[42].mxu0 %vm279_vm1, %v13505_v36  ;;  %v13536_v35 = vld [vmem:[%s23577_s0 + $0x3f2] sm:$0xff] }
  0xde   :  { %15828 = vmatprep.mubr.msk.f32.mxu1 %vm279_vm1, %v259_v37  ;;  %16699 = vmatprep.mubr.msk.f32.mxu0 %vm279_vm1, %v13506_v38  ;;  %v19498_v36 = vld [vmem:[%s23577_s0 + $0x98] sm:$0xff]  ;;  %v19506_v38 = vld [vmem:[%s23577_s0 + $0xa8] sm:$0xff] }
  0xdf   :  { %v13537_v37 = vld [vmem:[%s23577_s0 + $0x3fa] sm:$0xff] }
  0xe1   :  { %15829 = vmatmul.mubr.msk.f32.gmra.mrb[110].mxu1 %vm279_vm1, %v260_v39  ;;  %16700 = vmatmul.mubr.msk.f32.gmra.mrb[44].mxu0 %vm279_vm1, %v13507_v40  ;;  %v13538_v39 = vld [vmem:[%s23577_s0 + $0x40a] sm:$0xff] }
  0xe2   :  { %15831 = vmatprep.mubr.msk.f32.mxu1 %vm279_vm1, %v261_v41  ;;  %16702 = vmatprep.mubr.msk.f32.mxu0 %vm279_vm1, %v13508_v42  ;;  %v19520_v40 = vld [vmem:[%s23577_s0 + $0xb0] sm:$0xff]  ;;  %v19528_v42 = vld [vmem:[%s23577_s0 + $0xc0] sm:$0xff] }
  0xe3   :  { %v13539_v41 = vld [vmem:[%s23577_s0 + $0x412] sm:$0xff] }
  0xe5   :  { %15832 = vmatmul.mubr.msk.f32.gmra.mrb[112].mxu1 %vm279_vm1, %v262_v43  ;;  %16703 = vmatmul.mubr.msk.f32.gmra.mrb[46].mxu0 %vm279_vm1, %v13509_v44  ;;  %v13540_v43 = vld [vmem:[%s23577_s0 + $0x422] sm:$0xff] }
  0xe6   :  { %15834 = vmatprep.mubr.msk.f32.mxu1 %vm279_vm1, %v263_v45  ;;  %16705 = vmatprep.mubr.msk.f32.mxu0 %vm279_vm1, %v13510_v46  ;;  %v19542_v44 = vld [vmem:[%s23577_s0 + $0xc8] sm:$0xff]  ;;  %v19550_v46 = vld [vmem:[%s23577_s0 + $0xd8] sm:$0xff] }
  0xe7   :  { %v13541_v45 = vld [vmem:[%s23577_s0 + $0x42a] sm:$0xff] }
  0xe9   :  { %15835 = vmatmul.mubr.msk.f32.gmra.mrb[114].mxu1 %vm279_vm1, %v264_v47  ;;  %16706 = vmatmul.mubr.msk.f32.gmra.mrb[48].mxu0 %vm279_vm1, %v13511_v48  ;;  %v13542_v47 = vld [vmem:[%s23577_s0 + $0x43a] sm:$0xff] }
  0xea   :  { %15837 = vmatprep.mubr.msk.f32.mxu1 %vm279_vm1, %v265_v49  ;;  %16708 = vmatprep.mubr.msk.f32.mxu0 %vm279_vm1, %v13512_v50  ;;  %v19564_v48 = vld [vmem:[%s23577_s0 + $0xe0] sm:$0xff]  ;;  %v19572_v50 = vld [vmem:[%s23577_s0 + $0xf0] sm:$0xff] }
  0xeb   :  { %v13543_v49 = vld [vmem:[%s23577_s0 + $0x442] sm:$0xff] }
  0xed   :  { %15838 = vmatmul.mubr.msk.f32.gmra.mrb[116].mxu1 %vm279_vm1, %v266_v51  ;;  %16709 = vmatmul.mubr.msk.f32.gmra.mrb[50].mxu0 %vm279_vm1, %v13513_v52  ;;  %v13544_v51 = vld [vmem:[%s23577_s0 + $0x452] sm:$0xff] }
  0xee   :  { %15840 = vmatprep.mubr.msk.f32.mxu1 %vm279_vm1, %v267_v53  ;;  %16711 = vmatprep.mubr.msk.f32.mxu0 %vm279_vm1, %v13514_v54  ;;  %v19586_v52 = vld [vmem:[%s23577_s0 + $0xf8] sm:$0xff]  ;;  %v19594_v54 = vld [vmem:[%s23577_s0 + $0x108] sm:$0xff] }
  0xef   :  { %v13545_v53 = vld [vmem:[%s23577_s0 + $0x45a] sm:$0xff] }
  0xf1   :  { %15841 = vmatmul.mubr.msk.f32.gmra.mrb[118].mxu1 %vm279_vm1, %v268_v55  ;;  %16712 = vmatmul.mubr.msk.f32.gmra.mrb[52].mxu0 %vm279_vm1, %v13515_v56  ;;  %v13546_v55 = vld [vmem:[%s23577_s0 + $0x46a] sm:$0xff] }
  0xf2   :  { %15843 = vmatprep.mubr.msk.f32.mxu1 %vm279_vm1, %v269_v57  ;;  %16714 = vmatprep.mubr.msk.f32.mxu0 %vm279_vm1, %v13516_v58  ;;  %v19608_v56 = vld [vmem:[%s23577_s0 + $0x110] sm:$0xff]  ;;  %v19616_v58 = vld [vmem:[%s23577_s0 + $0x120] sm:$0xff] }
  0xf3   :  { %v13547_v57 = vld [vmem:[%s23577_s0 + $0x472] sm:$0xff] }
  0xf5   :  { %15844 = vmatmul.mubr.msk.f32.gmra.mrb[120].mxu1 %vm279_vm1, %v270_v59  ;;  %16715 = vmatmul.mubr.msk.f32.gmra.mrb[54].mxu0 %vm279_vm1, %v13517_v60  ;;  %v13548_v59 = vld [vmem:[%s23577_s0 + $0x482] sm:$0xff] }
  0xf6   :  { %15846 = vmatprep.mubr.msk.f32.mxu1 %vm279_vm1, %v271_v61  ;;  %16717 = vmatprep.mubr.msk.f32.mxu0 %vm279_vm1, %v13518_v62  ;;  %v19630_v60 = vld [vmem:[%s23577_s0 + $0x128] sm:$0xff]  ;;  %v19638_v62 = vld [vmem:[%s23577_s0 + $0x138] sm:$0xff] }
  0xf7   :  { %v13549_v61 = vld [vmem:[%s23577_s0 + $0x48a] sm:$0xff] }
  0xf9   :  { %15847 = vmatmul.mubr.msk.f32.gmra.mrb[122].mxu1 %vm279_vm1, %v272_v63  ;;  %16718 = vmatmul.mubr.msk.f32.gmra.mrb[56].mxu0 %vm279_vm1, %v13519_v0  ;;  %v13550_v63 = vld [vmem:[%s23577_s0 + $0x49a] sm:$0xff] }
  0xfa   :  { %15849 = vmatprep.mubr.msk.f32.mxu1 %vm279_vm1, %v273_v1  ;;  %16720 = vmatprep.mubr.msk.f32.mxu0 %vm279_vm1, %v13520_v2  ;;  %v19652_v0 = vld [vmem:[%s23577_s0 + $0x140] sm:$0xff]  ;;  %v19660_v2 = vld [vmem:[%s23577_s0 + $0x150] sm:$0xff] }
  0xfb   :  { %v13551_v1 = vld [vmem:[%s23577_s0 + $0x4a2] sm:$0xff] }
  0xfd   :  { %15850 = vmatmul.mubr.msk.f32.gmra.mrb[124].mxu1 %vm279_vm1, %v274_v3  ;;  %16721 = vmatmul.mubr.msk.f32.gmra.mrb[58].mxu0 %vm279_vm1, %v13521_v4  ;;  %v13552_v3 = vld [vmem:[%s23577_s0 + $0x4b2] sm:$0xff] }
  0xfe   :  { %15852 = vmatprep.mubr.msk.f32.mxu1 %vm279_vm1, %v275_v5  ;;  %16723 = vmatprep.mubr.msk.f32.mxu0 %vm279_vm1, %v13522_v6  ;;  %v19674_v4 = vld [vmem:[%s23577_s0 + $0x158] sm:$0xff]  ;;  %v19682_v6 = vld [vmem:[%s23577_s0 + $0x168] sm:$0xff] }
  0xff   :  { %v13553_v5 = vld [vmem:[%s23577_s0 + $0x4ba] sm:$0xff] }
 0x101   :  { %15853 = vmatmul.mubr.msk.f32.gmra.mrb[126].mxu1 %vm279_vm1, %v276_v7  ;;  %16724 = vmatmul.mubr.msk.f32.gmra.mrb[60].mxu0 %vm279_vm1, %v13523_v8  ;;  %v13554_v7 = vld [vmem:[%s23577_s0 + $0x4ca] sm:$0xff] }
 0x102   :  { %15857 = vmatprep.mubr.msk.f32.mxu1 %vm279_vm1, %v20_v9  ;;  %16726 = vmatprep.mubr.msk.f32.mxu0 %vm279_vm1, %v13524_v10  ;;  %v19696_v8 = vld [vmem:[%s23577_s0 + $0x170] sm:$0xff] }
 0x103   :  { %v13555_v9 = vld [vmem:[%s23577_s0 + $0x4d2] sm:$0xff] }
 0x104   :  { %v52_v10 = vld [vmem:[%s23577_s0 + $0x1b0] sm:$0xff] }
 0x105   :  { %15858 = vmatmul.mubr.msk.f32.vlgmr.msra.gmra.mrb[0].mxu1 %vm279_vm1, %v21_v11  ;;  %16727 = vmatmul.mubr.msk.f32.gmra.mrb[62].mxu0 %vm279_vm1, %v13525_v12  ;;  %v13556_v11 = vld [vmem:[%s23577_s0 + $0x4e2] sm:$0xff]  ;;  %v53_v12 = vld [vmem:[%s23577_s0 + $0x1b8] sm:$0xff] }
 0x106   :  { %15860 = vmatprep.mubr.msk.f32.mxu1 %vm279_vm1, %v22_v13  ;;  %16729 = vmatprep.mubr.msk.f32.mxu0 %vm279_vm1, %v13526_v14  ;;  %v13557_v13 = vld [vmem:[%s23577_s0 + $0x4ea] sm:$0xff] }
 0x107   :  { %16050 = vmatpush3.msk.msra.mxu1 %vm664_vm0, %v18893_v21  ;;  %v13529_v21 = vld [vmem:[%s23577_s0 + $0x39a] sm:$0xff]  ;;  %v54_v14 = vld [vmem:[%s23577_s0 + $0x1c8] sm:$0xff] }
 0x109   :  { %15861 = vmatmul.mubr.msk.f32.gmra.mrb[2].mxu1 %vm279_vm1, %v23_v15  ;;  %16730 = vmatmul.mubr.msk.f32.gmra.mrb[64].mxu0 %vm279_vm1, %v13527_v16  ;;  %v13558_v15 = vld [vmem:[%s23577_s0 + $0x52a] sm:$0xff] }
 0x10a   :  { %15863 = vmatprep.mubr.msk.f32.mxu1 %vm279_vm1, %v19388_v17  ;;  %16732 = vmatprep.mubr.msk.f32.mxu0 %vm279_vm1, %v13528_v18  ;;  %v55_v16 = vld [vmem:[%s23577_s0 + $0x1d0] sm:$0xff] }
 0x10b   :  { %v13559_v18 = vld [vmem:[%s23577_s0 + $0x532] sm:$0xff] }
 0x10d   :  { %15864 = vmatmul.mubr.msk.f32.gmra.mrb[4].mxu1 %vm279_vm1, %v19408_v20  ;;  %16733 = vmatmul.mubr.msk.f32.gmra.mrb[66].mxu0 %vm279_vm1, %v13529_v21  ;;  %v19737_v21 = vld [vmem:[%s23577_s0 + $0x1e0] sm:$0xff] }
 0x10e   :  { %15866 = vmatprep.mubr.msk.f32.mxu1 %vm279_vm1, %v19416_v22  ;;  %16735 = vmatprep.mubr.msk.f32.mxu0 %vm279_vm1, %v13530_v23  ;;  %v13560_v23 = vld [vmem:[%s23577_s0 + $0x542] sm:$0xff] }
 0x111   :  { %15867 = vmatmul.mubr.msk.f32.gmra.mrb[6].mxu1 %vm279_vm1, %v19432_v24  ;;  %16736 = vmatmul.mubr.msk.f32.gmra.mrb[68].mxu0 %vm279_vm1, %v13531_v25  ;;  %v19750_v25 = vld [vmem:[%s23577_s0 + $0x1e8] sm:$0xff] }
 0x112   :  { %15869 = vmatprep.mubr.msk.f32.mxu1 %vm279_vm1, %v19440_v26  ;;  %16738 = vmatprep.mubr.msk.f32.mxu0 %vm279_vm1, %v13532_v27  ;;  %v13561_v27 = vld [vmem:[%s23577_s0 + $0x54a] sm:$0xff] }
 0x115   :  { %15870 = vmatmul.mubr.msk.f32.gmra.mrb[8].mxu1 %vm279_vm1, %v19454_v28  ;;  %16739 = vmatmul.mubr.msk.f32.gmra.mrb[70].mxu0 %vm279_vm1, %v13533_v29  ;;  %v19758_v29 = vld [vmem:[%s23577_s0 + $0x1f8] sm:$0xff] }
 0x116   :  { %15872 = vmatprep.mubr.msk.f32.mxu1 %vm279_vm1, %v19462_v30  ;;  %16741 = vmatprep.mubr.msk.f32.mxu0 %vm279_vm1, %v13534_v31  ;;  %v13562_v31 = vld [vmem:[%s23577_s0 + $0x55a] sm:$0xff] }
 0x119   :  { %15873 = vmatmul.mubr.msk.f32.gmra.mrb[10].mxu1 %vm279_vm1, %v19476_v32  ;;  %16742 = vmatmul.mubr.msk.f32.gmra.mrb[72].mxu0 %vm279_vm1, %v13535_v33  ;;  %v19772_v33 = vld [vmem:[%s23577_s0 + $0x200] sm:$0xff] }
 0x11a   :  { %15875 = vmatprep.mubr.msk.f32.mxu1 %vm279_vm1, %v19484_v34  ;;  %16744 = vmatprep.mubr.msk.f32.mxu0 %vm279_vm1, %v13536_v35  ;;  %v13563_v35 = vld [vmem:[%s23577_s0 + $0x562] sm:$0xff] }
 0x11d   :  { %15876 = vmatmul.mubr.msk.f32.gmra.mrb[12].mxu1 %vm279_vm1, %v19498_v36  ;;  %16745 = vmatmul.mubr.msk.f32.gmra.mrb[74].mxu0 %vm279_vm1, %v13537_v37  ;;  %v19780_v37 = vld [vmem:[%s23577_s0 + $0x210] sm:$0xff] }
 0x11e   :  { %15878 = vmatprep.mubr.msk.f32.mxu1 %vm279_vm1, %v19506_v38  ;;  %16747 = vmatprep.mubr.msk.f32.mxu0 %vm279_vm1, %v13538_v39  ;;  %v13564_v39 = vld [vmem:[%s23577_s0 + $0x572] sm:$0xff] }
 0x121   :  { %15879 = vmatmul.mubr.msk.f32.gmra.mrb[14].mxu1 %vm279_vm1, %v19520_v40  ;;  %16748 = vmatmul.mubr.msk.f32.gmra.mrb[76].mxu0 %vm279_vm1, %v13539_v41  ;;  %v19794_v41 = vld [vmem:[%s23577_s0 + $0x218] sm:$0xff] }
 0x122   :  { %15881 = vmatprep.mubr.msk.f32.mxu1 %vm279_vm1, %v19528_v42  ;;  %16750 = vmatprep.mubr.msk.f32.mxu0 %vm279_vm1, %v13540_v43  ;;  %v13565_v43 = vld [vmem:[%s23577_s0 + $0x57a] sm:$0xff] }
 0x125   :  { %15882 = vmatmul.mubr.msk.f32.gmra.mrb[16].mxu1 %vm279_vm1, %v19542_v44  ;;  %16751 = vmatmul.mubr.msk.f32.gmra.mrb[78].mxu0 %vm279_vm1, %v13541_v45  ;;  %v19802_v45 = vld [vmem:[%s23577_s0 + $0x228] sm:$0xff] }
 0x126   :  { %15884 = vmatprep.mubr.msk.f32.mxu1 %vm279_vm1, %v19550_v46  ;;  %16753 = vmatprep.mubr.msk.f32.mxu0 %vm279_vm1, %v13542_v47  ;;  %v13566_v47 = vld [vmem:[%s23577_s0 + $0x58a] sm:$0xff] }
 0x129   :  { %15885 = vmatmul.mubr.msk.f32.gmra.mrb[18].mxu1 %vm279_vm1, %v19564_v48  ;;  %16754 = vmatmul.mubr.msk.f32.gmra.mrb[80].mxu0 %vm279_vm1, %v13543_v49  ;;  %v19816_v49 = vld [vmem:[%s23577_s0 + $0x230] sm:$0xff] }
 0x12a   :  { %15887 = vmatprep.mubr.msk.f32.mxu1 %vm279_vm1, %v19572_v50  ;;  %16756 = vmatprep.mubr.msk.f32.mxu0 %vm279_vm1, %v13544_v51  ;;  %v13567_v51 = vld [vmem:[%s23577_s0 + $0x592] sm:$0xff] }
 0x12d   :  { %15888 = vmatmul.mubr.msk.f32.gmra.mrb[20].mxu1 %vm279_vm1, %v19586_v52  ;;  %16757 = vmatmul.mubr.msk.f32.gmra.mrb[82].mxu0 %vm279_vm1, %v13545_v53  ;;  %v19824_v53 = vld [vmem:[%s23577_s0 + $0x240] sm:$0xff] }
 0x12e   :  { %15890 = vmatprep.mubr.msk.f32.mxu1 %vm279_vm1, %v19594_v54  ;;  %16759 = vmatprep.mubr.msk.f32.mxu0 %vm279_vm1, %v13546_v55  ;;  %v13568_v55 = vld [vmem:[%s23577_s0 + $0x5a2] sm:$0xff] }
 0x131   :  { %15891 = vmatmul.mubr.msk.f32.gmra.mrb[22].mxu1 %vm279_vm1, %v19608_v56  ;;  %16760 = vmatmul.mubr.msk.f32.gmra.mrb[84].mxu0 %vm279_vm1, %v13547_v57  ;;  %v19838_v57 = vld [vmem:[%s23577_s0 + $0x248] sm:$0xff] }
 0x132   :  { %15893 = vmatprep.mubr.msk.f32.mxu1 %vm279_vm1, %v19616_v58  ;;  %16762 = vmatprep.mubr.msk.f32.mxu0 %vm279_vm1, %v13548_v59  ;;  %v13569_v59 = vld [vmem:[%s23577_s0 + $0x5aa] sm:$0xff] }
 0x135   :  { %15894 = vmatmul.mubr.msk.f32.gmra.mrb[24].mxu1 %vm279_vm1, %v19630_v60  ;;  %16763 = vmatmul.mubr.msk.f32.gmra.mrb[86].mxu0 %vm279_vm1, %v13549_v61  ;;  %v19846_v61 = vld [vmem:[%s23577_s0 + $0x258] sm:$0xff] }
 0x136   :  { %15896 = vmatprep.mubr.msk.f32.mxu1 %vm279_vm1, %v19638_v62  ;;  %16765 = vmatprep.mubr.msk.f32.mxu0 %vm279_vm1, %v13550_v63  ;;  %v13570_v63 = vld [vmem:[%s23577_s0 + $0x5ba] sm:$0xff] }
 0x139   :  { %15897 = vmatmul.mubr.msk.f32.gmra.mrb[26].mxu1 %vm279_vm1, %v19652_v0  ;;  %16766 = vmatmul.mubr.msk.f32.gmra.mrb[88].mxu0 %vm279_vm1, %v13551_v1  ;;  %v19860_v1 = vld [vmem:[%s23577_s0 + $0x260] sm:$0xff] }
 0x13a   :  { %15899 = vmatprep.mubr.msk.f32.mxu1 %vm279_vm1, %v19660_v2  ;;  %16768 = vmatprep.mubr.msk.f32.mxu0 %vm279_vm1, %v13552_v3  ;;  %v13571_v3 = vld [vmem:[%s23577_s0 + $0x5c2] sm:$0xff] }
 0x13d   :  { %15900 = vmatmul.mubr.msk.f32.gmra.mrb[28].mxu1 %vm279_vm1, %v19674_v4  ;;  %16769 = vmatmul.mubr.msk.f32.gmra.mrb[90].mxu0 %vm279_vm1, %v13553_v5  ;;  %v19868_v5 = vld [vmem:[%s23577_s0 + $0x270] sm:$0xff] }
 0x13e   :  { %15902 = vmatprep.mubr.msk.f32.mxu1 %vm279_vm1, %v19682_v6  ;;  %16771 = vmatprep.mubr.msk.f32.mxu0 %vm279_vm1, %v13554_v7  ;;  %v13572_v7 = vld [vmem:[%s23577_s0 + $0x5d2] sm:$0xff] }
 0x141   :  { %15903 = vmatmul.mubr.msk.f32.gmra.mrb[30].mxu1 %vm279_vm1, %v19696_v8  ;;  %16772 = vmatmul.mubr.msk.f32.gmra.mrb[92].mxu0 %vm279_vm1, %v13555_v9  ;;  %v19882_v9 = vld [vmem:[%s23577_s0 + $0x278] sm:$0xff] }
 0x142   :  { %15905 = vmatprep.mubr.msk.f32.mxu1 %vm279_vm1, %v52_v10  ;;  %16774 = vmatprep.mubr.msk.f32.mxu0 %vm279_vm1, %v13556_v11  ;;  %v13573_v10 = vld [vmem:[%s23577_s0 + $0x5da] sm:$0xff]  ;;  %v19890_v11 = vld [vmem:[%s23577_s0 + $0x288] sm:$0xff] }
 0x145   :  { %15906 = vmatmul.mubr.msk.f32.gmra.mrb[32].mxu1 %vm279_vm1, %v53_v12  ;;  %16775 = vmatmul.mubr.msk.f32.gmra.mrb[94].mxu0 %vm279_vm1, %v13557_v13  ;;  %v13574_v12 = vld [vmem:[%s23577_s0 + $0x5ea] sm:$0xff] }
 0x146   :  { %15908 = vmatprep.mubr.msk.f32.mxu1 %vm279_vm1, %v54_v14  ;;  %16777 = vmatprep.mubr.msk.f32.mxu0 %vm279_vm1, %v13558_v15  ;;  %v19904_v13 = vld [vmem:[%s23577_s0 + $0x290] sm:$0xff]  ;;  %v19912_v15 = vld [vmem:[%s23577_s0 + $0x2a0] sm:$0xff] }
 0x147   :  { %v13575_v14 = vld [vmem:[%s23577_s0 + $0x5f2] sm:$0xff] }
 0x149   :  { %15909 = vmatmul.mubr.msk.f32.gmra.mrb[34].mxu1 %vm279_vm1, %v55_v16  ;;  %16778 = vmatmul.mubr.msk.f32.gmra.mrb[96].mxu0 %vm279_vm1, %v13559_v18  ;;  %v13576_v16 = vld [vmem:[%s23577_s0 + $0x602] sm:$0xff] }
 0x14a   :  { %15911 = vmatprep.mubr.msk.f32.mxu1 %vm279_vm1, %v19737_v21  ;;  %16780 = vmatprep.mubr.msk.f32.mxu0 %vm279_vm1, %v13560_v23  ;;  %v19926_v18 = vld [vmem:[%s23577_s0 + $0x2a8] sm:$0xff] }
 0x14b   :  { %v13577_v23 = vld [vmem:[%s23577_s0 + $0x60a] sm:$0xff] }
 0x14d   :  { %15912 = vmatmul.mubr.msk.f32.gmra.mrb[36].mxu1 %vm279_vm1, %v19750_v25  ;;  %16781 = vmatmul.mubr.msk.f32.gmra.mrb[98].mxu0 %vm279_vm1, %v13561_v27  ;;  %v19934_v27 = vld [vmem:[%s23577_s0 + $0x2b8] sm:$0xff] }
 0x14e   :  { %15914 = vmatprep.mubr.msk.f32.mxu1 %vm279_vm1, %v19758_v29  ;;  %16783 = vmatprep.mubr.msk.f32.mxu0 %vm279_vm1, %v13562_v31  ;;  %v13578_v31 = vld [vmem:[%s23577_s0 + $0x61a] sm:$0xff] }
 0x151   :  { %15915 = vmatmul.mubr.msk.f32.gmra.mrb[38].mxu1 %vm279_vm1, %v19772_v33  ;;  %16784 = vmatmul.mubr.msk.f32.gmra.mrb[100].mxu0 %vm279_vm1, %v13563_v35  ;;  %v19948_v35 = vld [vmem:[%s23577_s0 + $0x2c0] sm:$0xff] }
 0x152   :  { %15917 = vmatprep.mubr.msk.f32.mxu1 %vm279_vm1, %v19780_v37  ;;  %16786 = vmatprep.mubr.msk.f32.mxu0 %vm279_vm1, %v13564_v39  ;;  %v13579_v39 = vld [vmem:[%s23577_s0 + $0x622] sm:$0xff] }
 0x155   :  { %15918 = vmatmul.mubr.msk.f32.gmra.mrb[40].mxu1 %vm279_vm1, %v19794_v41  ;;  %16787 = vmatmul.mubr.msk.f32.gmra.mrb[102].mxu0 %vm279_vm1, %v13565_v43  ;;  %v19956_v43 = vld [vmem:[%s23577_s0 + $0x2d0] sm:$0xff] }
 0x156   :  { %15920 = vmatprep.mubr.msk.f32.mxu1 %vm279_vm1, %v19802_v45  ;;  %16789 = vmatprep.mubr.msk.f32.mxu0 %vm279_vm1, %v13566_v47  ;;  %v13580_v47 = vld [vmem:[%s23577_s0 + $0x632] sm:$0xff] }
 0x159   :  { %15921 = vmatmul.mubr.msk.f32.gmra.mrb[42].mxu1 %vm279_vm1, %v19816_v49  ;;  %16790 = vmatmul.mubr.msk.f32.gmra.mrb[104].mxu0 %vm279_vm1, %v13567_v51  ;;  %v19970_v51 = vld [vmem:[%s23577_s0 + $0x2d8] sm:$0xff] }
 0x15a   :  { %15923 = vmatprep.mubr.msk.f32.mxu1 %vm279_vm1, %v19824_v53  ;;  %16792 = vmatprep.mubr.msk.f32.mxu0 %vm279_vm1, %v13568_v55  ;;  %v13581_v55 = vld [vmem:[%s23577_s0 + $0x63a] sm:$0xff] }
 0x15d   :  { %15924 = vmatmul.mubr.msk.f32.gmra.mrb[44].mxu1 %vm279_vm1, %v19838_v57  ;;  %16793 = vmatmul.mubr.msk.f32.gmra.mrb[106].mxu0 %vm279_vm1, %v13569_v59  ;;  %v19978_v59 = vld [vmem:[%s23577_s0 + $0x2e8] sm:$0xff] }
 0x15e   :  { %15926 = vmatprep.mubr.msk.f32.mxu1 %vm279_vm1, %v19846_v61  ;;  %16795 = vmatprep.mubr.msk.f32.mxu0 %vm279_vm1, %v13570_v63  ;;  %v13582_v63 = vld [vmem:[%s23577_s0 + $0x64a] sm:$0xff] }
 0x161   :  { %15927 = vmatmul.mubr.msk.f32.gmra.mrb[46].mxu1 %vm279_vm1, %v19860_v1  ;;  %16796 = vmatmul.mubr.msk.f32.gmra.mrb[108].mxu0 %vm279_vm1, %v13571_v3  ;;  %v19992_v3 = vld [vmem:[%s23577_s0 + $0x2f0] sm:$0xff] }
 0x162   :  { %15929 = vmatprep.mubr.msk.f32.mxu1 %vm279_vm1, %v19868_v5  ;;  %16798 = vmatprep.mubr.msk.f32.mxu0 %vm279_vm1, %v13572_v7  ;;  %v13583_v7 = vld [vmem:[%s23577_s0 + $0x652] sm:$0xff] }
 0x165   :  { %15930 = vmatmul.mubr.msk.f32.gmra.mrb[48].mxu1 %vm279_vm1, %v19882_v9  ;;  %16799 = vmatmul.mubr.msk.f32.gmra.mrb[110].mxu0 %vm279_vm1, %v13573_v10  ;;  %v20000_v10 = vld [vmem:[%s23577_s0 + $0x300] sm:$0xff] }
 0x166   :  { %15932 = vmatprep.mubr.msk.f32.mxu1 %vm279_vm1, %v19890_v11  ;;  %16801 = vmatprep.mubr.msk.f32.mxu0 %vm279_vm1, %v13574_v12  ;;  %v13584_v12 = vld [vmem:[%s23577_s0 + $0x662] sm:$0xff] }
 0x169   :  { %15933 = vmatmul.mubr.msk.f32.gmra.mrb[50].mxu1 %vm279_vm1, %v19904_v13  ;;  %16802 = vmatmul.mubr.msk.f32.gmra.mrb[112].mxu0 %vm279_vm1, %v13575_v14  ;;  %v20014_v14 = vld [vmem:[%s23577_s0 + $0x308] sm:$0xff] }
 0x16a   :  { %15935 = vmatprep.mubr.msk.f32.mxu1 %vm279_vm1, %v19912_v15  ;;  %16804 = vmatprep.mubr.msk.f32.mxu0 %vm279_vm1, %v13576_v16  ;;  %v13585_v16 = vld [vmem:[%s23577_s0 + $0x66a] sm:$0xff] }
 0x16d   :  { %15936 = vmatmul.mubr.msk.f32.gmra.mrb[52].mxu1 %vm279_vm1, %v19926_v18  ;;  %16805 = vmatmul.mubr.msk.f32.gmra.mrb[114].mxu0 %vm279_vm1, %v13577_v23  ;;  %v20022_v23 = vld [vmem:[%s23577_s0 + $0x318] sm:$0xff] }
 0x16e   :  { %15938 = vmatprep.mubr.msk.f32.mxu1 %vm279_vm1, %v19934_v27  ;;  %16807 = vmatprep.mubr.msk.f32.mxu0 %vm279_vm1, %v13578_v31  ;;  %v13586_v31 = vld [vmem:[%s23577_s0 + $0x67a] sm:$0xff] }
 0x171   :  { %15939 = vmatmul.mubr.msk.f32.gmra.mrb[54].mxu1 %vm279_vm1, %v19948_v35  ;;  %16808 = vmatmul.mubr.msk.f32.gmra.mrb[116].mxu0 %vm279_vm1, %v13579_v39  ;;  %v20036_v39 = vld [vmem:[%s23577_s0 + $0x320] sm:$0xff] }
 0x172   :  { %15941 = vmatprep.mubr.msk.f32.mxu1 %vm279_vm1, %v19956_v43  ;;  %16810 = vmatprep.mubr.msk.f32.mxu0 %vm279_vm1, %v13580_v47  ;;  %v13587_v47 = vld [vmem:[%s23577_s0 + $0x682] sm:$0xff] }
 0x175   :  { %15942 = vmatmul.mubr.msk.f32.gmra.mrb[56].mxu1 %vm279_vm1, %v19970_v51  ;;  %16811 = vmatmul.mubr.msk.f32.gmra.mrb[118].mxu0 %vm279_vm1, %v13581_v55  ;;  %v84_v55 = vld [vmem:[%s23577_s0 + $0x360] sm:$0xff] }
 0x176   :  { %15944 = vmatprep.mubr.msk.f32.mxu1 %vm279_vm1, %v19978_v59  ;;  %16813 = vmatprep.mubr.msk.f32.mxu0 %vm279_vm1, %v13582_v63  ;;  %v13588_v63 = vld [vmem:[%s23577_s0 + $0x692] sm:$0xff] }
 0x179   :  { %15945 = vmatmul.mubr.msk.f32.gmra.mrb[58].mxu1 %vm279_vm1, %v19992_v3  ;;  %16814 = vmatmul.mubr.msk.f32.gmra.mrb[120].mxu0 %vm279_vm1, %v13583_v7  ;;  %v85_v7 = vld [vmem:[%s23577_s0 + $0x368] sm:$0xff] }
 0x17a   :  { %15947 = vmatprep.mubr.msk.f32.mxu1 %vm279_vm1, %v20000_v10  ;;  %16816 = vmatprep.mubr.msk.f32.mxu0 %vm279_vm1, %v13584_v12  ;;  %v13589_v12 = vld [vmem:[%s23577_s0 + $0x69a] sm:$0xff] }
 0x17d   :  { %15948 = vmatmul.mubr.msk.f32.gmra.mrb[60].mxu1 %vm279_vm1, %v20014_v14  ;;  %16817 = vmatmul.mubr.msk.f32.gmra.mrb[122].mxu0 %vm279_vm1, %v13585_v16  ;;  %v86_v16 = vld [vmem:[%s23577_s0 + $0x378] sm:$0xff] }
 0x17e   :  { %15950 = vmatprep.mubr.msk.f32.mxu1 %vm279_vm1, %v20022_v23  ;;  %16819 = vmatprep.mubr.msk.f32.mxu0 %vm279_vm1, %v13586_v31  ;;  %v87_v31 = vld [vmem:[%s23577_s0 + $0x380] sm:$0xff] }
 0x181   :  { %15951 = vmatmul.mubr.msk.f32.gmra.mrb[62].mxu1 %vm279_vm1, %v20036_v39  ;;  %16820 = vmatmul.mubr.msk.f32.gmra.mrb[124].mxu0 %vm279_vm1, %v13587_v47  ;;  %v20072_v47 = vld [vmem:[%s23577_s0 + $0x390] sm:$0xff] }
 0x182   :  { %15953 = vmatprep.mubr.msk.f32.mxu1 %vm279_vm1, %v84_v55  ;;  %16822 = vmatprep.mubr.msk.f32.mxu0 %vm279_vm1, %v13588_v63  ;;  %v20091_v55 = vld [vmem:[%s23577_s0 + $0x3a8] sm:$0xff] }
 0x183   :  { %v13749_v63 = vld [vmem:[%s23577_s0 + $0x188] sm:$0xff] }
 0x185   :  { %15954 = vmatmul.mubr.msk.f32.gmra.mrb[64].mxu1 %vm279_vm1, %v85_v7  ;;  %16823 = vmatmul.mubr.msk.f32.gmra.mrb[126].mxu0 %vm279_vm1, %v13589_v12  ;;  %v116_v7 = vld [vmem:[%s23577_s0 + $0x510] sm:$0xff]  ;;  %v117_v12 = vld [vmem:[%s23577_s0 + $0x518] sm:$0xff] }
 0x186   :  { %15956 = vmatprep.mubr.msk.f32.mxu1 %vm279_vm1, %v86_v16  ;;  %16827 = vmatprep.mubr.msk.f32.mxu0 %vm279_vm1, %v19388_v17  ;;  %v20084_v17 = vld [vmem:[%s23577_s0 + $0x398] sm:$0xff]  ;;  %v13751_v16 = vld [vmem:[%s23577_s0 + $0x1a0] sm:$0xff] }
 0x189   :  { %15957 = vmatmul.mubr.msk.f32.gmra.mrb[66].mxu1 %vm279_vm1, %v87_v31  ;;  %16828 = vmatmul.mubr.msk.f32.vlgmr.msra.gmra.mrb[0].mxu0 %vm279_vm1, %v19408_v20  ;;  %v20109_v20 = vld [vmem:[%s23577_s0 + $0x3b0] sm:$0xff]  ;;  %v118_v31 = vld [vmem:[%s23577_s0 + $0x528] sm:$0xff] }
 0x18a   :  { %17020 = vmatpush3.msk.msra.mxu0 %vm664_vm0, %v19400_v19  ;;  %15959 = vmatprep.mubr.msk.f32.mxu1 %vm279_vm1, %v20072_v47  ;;  %v20100_v19 = vld [vmem:[%s23576_s1 + $0xc] sm:$0xf] }
 0x18b   :  { %16830 = vmatprep.mubr.msk.f32.mxu0 %vm279_vm1, %v19416_v22  ;;  %v20114_v22 = vld [vmem:[%s23577_s0 + $0x3c0] sm:$0xff]  ;;  %16243 = vmatprep.subr.msk.mxu1 %vm664_vm0, %v20100_v19 }
 0x18d   :  { %15960 = vmatmul.mubr.msk.f32.gmra.mrb[68].mxu1 %vm279_vm1, %v20084_v17  ;;  %16831 = vmatmul.mubr.msk.f32.gmra.mrb[2].mxu0 %vm279_vm1, %v19432_v24  ;;  %v20129_v24 = vld [vmem:[%s23577_s0 + $0x3c8] sm:$0xff] }
 0x18e   :  { %15962 = vmatprep.mubr.msk.f32.mxu1 %vm279_vm1, %v20091_v55  ;;  %16833 = vmatprep.mubr.msk.f32.mxu0 %vm279_vm1, %v19440_v26  ;;  %v20134_v26 = vld [vmem:[%s23577_s0 + $0x3d8] sm:$0xff] }
 0x191   :  { %15963 = vmatmul.mubr.msk.f32.gmra.mrb[70].mxu1 %vm279_vm1, %v20109_v20  ;;  %16834 = vmatmul.mubr.msk.f32.gmra.mrb[4].mxu0 %vm279_vm1, %v19454_v28  ;;  %v20147_v28 = vld [vmem:[%s23577_s0 + $0x3e0] sm:$0xff] }
 0x192   :  { %15965 = vmatprep.mubr.msk.f32.mxu1 %vm279_vm1, %v20114_v22  ;;  %16836 = vmatprep.mubr.msk.f32.mxu0 %vm279_vm1, %v19462_v30  ;;  %v20152_v30 = vld [vmem:[%s23577_s0 + $0x3f0] sm:$0xff] }
 0x195   :  { %15966 = vmatmul.mubr.msk.f32.gmra.mrb[72].mxu1 %vm279_vm1, %v20129_v24  ;;  %16837 = vmatmul.mubr.msk.f32.gmra.mrb[6].mxu0 %vm279_vm1, %v19476_v32  ;;  %v20165_v32 = vld [vmem:[%s23577_s0 + $0x3f8] sm:$0xff] }
 0x196   :  { %15968 = vmatprep.mubr.msk.f32.mxu1 %vm279_vm1, %v20134_v26  ;;  %16839 = vmatprep.mubr.msk.f32.mxu0 %vm279_vm1, %v19484_v34  ;;  %v20170_v34 = vld [vmem:[%s23577_s0 + $0x408] sm:$0xff] }
 0x199   :  { %15969 = vmatmul.mubr.msk.f32.gmra.mrb[74].mxu1 %vm279_vm1, %v20147_v28  ;;  %16840 = vmatmul.mubr.msk.f32.gmra.mrb[8].mxu0 %vm279_vm1, %v19498_v36  ;;  %v20183_v36 = vld [vmem:[%s23577_s0 + $0x410] sm:$0xff] }
 0x19a   :  { %15971 = vmatprep.mubr.msk.f32.mxu1 %vm279_vm1, %v20152_v30  ;;  %16842 = vmatprep.mubr.msk.f32.mxu0 %vm279_vm1, %v19506_v38  ;;  %v20188_v38 = vld [vmem:[%s23577_s0 + $0x420] sm:$0xff] }
 0x19d   :  { %15972 = vmatmul.mubr.msk.f32.gmra.mrb[76].mxu1 %vm279_vm1, %v20165_v32  ;;  %16843 = vmatmul.mubr.msk.f32.gmra.mrb[10].mxu0 %vm279_vm1, %v19520_v40  ;;  %v20201_v40 = vld [vmem:[%s23577_s0 + $0x428] sm:$0xff] }
 0x19e   :  { %15974 = vmatprep.mubr.msk.f32.mxu1 %vm279_vm1, %v20170_v34  ;;  %16845 = vmatprep.mubr.msk.f32.mxu0 %vm279_vm1, %v19528_v42  ;;  %v20206_v42 = vld [vmem:[%s23577_s0 + $0x438] sm:$0xff] }
 0x1a1   :  { %15975 = vmatmul.mubr.msk.f32.gmra.mrb[78].mxu1 %vm279_vm1, %v20183_v36  ;;  %16846 = vmatmul.mubr.msk.f32.gmra.mrb[12].mxu0 %vm279_vm1, %v19542_v44  ;;  %v20219_v44 = vld [vmem:[%s23577_s0 + $0x440] sm:$0xff] }
 0x1a2   :  { %15977 = vmatprep.mubr.msk.f32.mxu1 %vm279_vm1, %v20188_v38  ;;  %16848 = vmatprep.mubr.msk.f32.mxu0 %vm279_vm1, %v19550_v46  ;;  %v20224_v46 = vld [vmem:[%s23577_s0 + $0x450] sm:$0xff] }
 0x1a5   :  { %15978 = vmatmul.mubr.msk.f32.gmra.mrb[80].mxu1 %vm279_vm1, %v20201_v40  ;;  %16849 = vmatmul.mubr.msk.f32.gmra.mrb[14].mxu0 %vm279_vm1, %v19564_v48  ;;  %v20237_v48 = vld [vmem:[%s23577_s0 + $0x458] sm:$0xff] }
 0x1a6   :  { %15980 = vmatprep.mubr.msk.f32.mxu1 %vm279_vm1, %v20206_v42  ;;  %16851 = vmatprep.mubr.msk.f32.mxu0 %vm279_vm1, %v19572_v50  ;;  %v20242_v50 = vld [vmem:[%s23577_s0 + $0x468] sm:$0xff] }
 0x1a9   :  { %15981 = vmatmul.mubr.msk.f32.gmra.mrb[82].mxu1 %vm279_vm1, %v20219_v44  ;;  %16852 = vmatmul.mubr.msk.f32.gmra.mrb[16].mxu0 %vm279_vm1, %v19586_v52  ;;  %v20255_v52 = vld [vmem:[%s23577_s0 + $0x470] sm:$0xff] }
 0x1aa   :  { %15983 = vmatprep.mubr.msk.f32.mxu1 %vm279_vm1, %v20224_v46  ;;  %16854 = vmatprep.mubr.msk.f32.mxu0 %vm279_vm1, %v19594_v54  ;;  %v20260_v54 = vld [vmem:[%s23577_s0 + $0x480] sm:$0xff] }
 0x1ad   :  { %15984 = vmatmul.mubr.msk.f32.gmra.mrb[84].mxu1 %vm279_vm1, %v20237_v48  ;;  %16855 = vmatmul.mubr.msk.f32.gmra.mrb[18].mxu0 %vm279_vm1, %v19608_v56  ;;  %v20273_v56 = vld [vmem:[%s23577_s0 + $0x488] sm:$0xff] }
 0x1ae   :  { %15986 = vmatprep.mubr.msk.f32.mxu1 %vm279_vm1, %v20242_v50  ;;  %16857 = vmatprep.mubr.msk.f32.mxu0 %vm279_vm1, %v19616_v58  ;;  %v20278_v58 = vld [vmem:[%s23577_s0 + $0x498] sm:$0xff] }
 0x1b1   :  { %15987 = vmatmul.mubr.msk.f32.gmra.mrb[86].mxu1 %vm279_vm1, %v20255_v52  ;;  %16858 = vmatmul.mubr.msk.f32.gmra.mrb[20].mxu0 %vm279_vm1, %v19630_v60  ;;  %v20291_v60 = vld [vmem:[%s23577_s0 + $0x4a0] sm:$0xff] }
 0x1b2   :  { %15989 = vmatprep.mubr.msk.f32.mxu1 %vm279_vm1, %v20260_v54  ;;  %16860 = vmatprep.mubr.msk.f32.mxu0 %vm279_vm1, %v19638_v62  ;;  %v20296_v62 = vld [vmem:[%s23577_s0 + $0x4b0] sm:$0xff] }
 0x1b5   :  { %15990 = vmatmul.mubr.msk.f32.gmra.mrb[88].mxu1 %vm279_vm1, %v20273_v56  ;;  %16861 = vmatmul.mubr.msk.f32.gmra.mrb[22].mxu0 %vm279_vm1, %v19652_v0  ;;  %v20309_v0 = vld [vmem:[%s23577_s0 + $0x4b8] sm:$0xff] }
 0x1b6   :  { %15992 = vmatprep.mubr.msk.f32.mxu1 %vm279_vm1, %v20278_v58  ;;  %16863 = vmatprep.mubr.msk.f32.mxu0 %vm279_vm1, %v19660_v2  ;;  %v20314_v2 = vld [vmem:[%s23577_s0 + $0x4c8] sm:$0xff] }
 0x1b9   :  { %15993 = vmatmul.mubr.msk.f32.gmra.mrb[90].mxu1 %vm279_vm1, %v20291_v60  ;;  %16864 = vmatmul.mubr.msk.f32.gmra.mrb[24].mxu0 %vm279_vm1, %v19674_v4  ;;  %v13748_v4 = vld [vmem:[%s23577_s0 + $0x180] sm:$0xff] }
 0x1ba   :  { %15995 = vmatprep.mubr.msk.f32.mxu1 %vm279_vm1, %v20296_v62  ;;  %16866 = vmatprep.mubr.msk.f32.mxu0 %vm279_vm1, %v19682_v6  ;;  %v20329_v6 = vld [vmem:[%s23577_s0 + $0x4d0] sm:$0xff] }
 0x1bd   :  { %15996 = vmatmul.mubr.msk.f32.gmra.mrb[92].mxu1 %vm279_vm1, %v20309_v0  ;;  %16867 = vmatmul.mubr.msk.f32.gmra.mrb[26].mxu0 %vm279_vm1, %v19696_v8  ;;  %v13750_v8 = vld [vmem:[%s23577_s0 + $0x198] sm:$0xff] }
 0x1be   :  { %15998 = vmatprep.mubr.msk.f32.mxu1 %vm279_vm1, %v20314_v2  ;;  %16869 = vmatprep.mubr.msk.f32.mxu0 %vm279_vm1, %v13748_v4  ;;  %v119_v4 = vld [vmem:[%s23577_s0 + $0x530] sm:$0xff] }
 0x1c1   :  { %15999 = vmatmul.mubr.msk.f32.gmra.mrb[94].mxu1 %vm279_vm1, %v20329_v6  ;;  %16870 = vmatmul.mubr.msk.f32.gmra.mrb[28].mxu0 %vm279_vm1, %v13749_v63  ;;  %v20365_v63 = vld [vmem:[%s23577_s0 + $0x540] sm:$0xff] }
 0x1c2   :  { %16001 = vmatprep.mubr.msk.f32.mxu1 %vm279_vm1, %v116_v7  ;;  %16872 = vmatprep.mubr.msk.f32.mxu0 %vm279_vm1, %v13750_v8  ;;  %v20382_v7 = vld [vmem:[%s23577_s0 + $0x558] sm:$0xff] }
 0x1c3   :  { %v13781_v8 = vld [vmem:[%s23577_s0 + $0x338] sm:$0xff] }
 0x1c5   :  { %16002 = vmatmul.mubr.msk.f32.gmra.mrb[96].mxu1 %vm279_vm1, %v117_v12  ;;  %16873 = vmatmul.mubr.msk.f32.gmra.mrb[30].mxu0 %vm279_vm1, %v13751_v16  ;;  %v2465_v12 = vld [vmem:[%s23577_s0 + $0x2] sm:$0xff]  ;;  %v2466_v16 = vld [vmem:[%s23577_s0 + $0xa] sm:$0xff] }
 0x1c6   :  { %16004 = vmatprep.mubr.msk.f32.mxu1 %vm279_vm1, %v118_v31  ;;  %16875 = vmatprep.mubr.msk.f32.mxu0 %vm279_vm1, %v19737_v21  ;;  %v20377_v21 = vld [vmem:[%s23577_s0 + $0x548] sm:$0xff]  ;;  %v13783_v31 = vld [vmem:[%s23577_s0 + $0x350] sm:$0xff] }
 0x1c9   :  { %16005 = vmatmul.mubr.msk.f32.gmra.mrb[98].mxu1 %vm279_vm1, %v119_v4  ;;  %16876 = vmatmul.mubr.msk.f32.gmra.mrb[32].mxu0 %vm279_vm1, %v19750_v25  ;;  %v20395_v25 = vld [vmem:[%s23577_s0 + $0x560] sm:$0xff] }
 0x1ca   :  { %16007 = vmatprep.mubr.msk.f32.mxu1 %vm279_vm1, %v20365_v63  ;;  %16878 = vmatprep.mubr.msk.f32.mxu0 %vm279_vm1, %v19758_v29  ;;  %v20400_v29 = vld [vmem:[%s23577_s0 + $0x570] sm:$0xff]  ;;  %v2467_v4 = vld [vmem:[%s23577_s0 + $0x1a] sm:$0xff] }
 0x1cd   :  { %16008 = vmatmul.mubr.msk.f32.gmra.mrb[100].mxu1 %vm279_vm1, %v20377_v21  ;;  %16879 = vmatmul.mubr.msk.f32.gmra.mrb[34].mxu0 %vm279_vm1, %v19772_v33  ;;  %v20413_v33 = vld [vmem:[%s23577_s0 + $0x578] sm:$0xff] }
 0x1ce   :  { %16010 = vmatprep.mubr.msk.f32.mxu1 %vm279_vm1, %v20382_v7  ;;  %16881 = vmatprep.mubr.msk.f32.mxu0 %vm279_vm1, %v19780_v37  ;;  %v20418_v37 = vld [vmem:[%s23577_s0 + $0x588] sm:$0xff] }
 0x1d1   :  { %16011 = vmatmul.mubr.msk.f32.gmra.mrb[102].mxu1 %vm279_vm1, %v20395_v25  ;;  %16882 = vmatmul.mubr.msk.f32.gmra.mrb[36].mxu0 %vm279_vm1, %v19794_v41  ;;  %v20431_v41 = vld [vmem:[%s23577_s0 + $0x590] sm:$0xff] }
 0x1d2   :  { %16013 = vmatprep.mubr.msk.f32.mxu1 %vm279_vm1, %v20400_v29  ;;  %16884 = vmatprep.mubr.msk.f32.mxu0 %vm279_vm1, %v19802_v45  ;;  %v20436_v45 = vld [vmem:[%s23577_s0 + $0x5a0] sm:$0xff] }
 0x1d5   :  { %16014 = vmatmul.mubr.msk.f32.gmra.mrb[104].mxu1 %vm279_vm1, %v20413_v33  ;;  %16885 = vmatmul.mubr.msk.f32.gmra.mrb[38].mxu0 %vm279_vm1, %v19816_v49  ;;  %v20449_v49 = vld [vmem:[%s23577_s0 + $0x5a8] sm:$0xff] }
 0x1d6   :  { %16016 = vmatprep.mubr.msk.f32.mxu1 %vm279_vm1, %v20418_v37  ;;  %16887 = vmatprep.mubr.msk.f32.mxu0 %vm279_vm1, %v19824_v53  ;;  %v20454_v53 = vld [vmem:[%s23577_s0 + $0x5b8] sm:$0xff] }
 0x1d9   :  { %16017 = vmatmul.mubr.msk.f32.gmra.mrb[106].mxu1 %vm279_vm1, %v20431_v41  ;;  %16888 = vmatmul.mubr.msk.f32.gmra.mrb[40].mxu0 %vm279_vm1, %v19838_v57  ;;  %v20467_v57 = vld [vmem:[%s23577_s0 + $0x5c0] sm:$0xff] }
 0x1da   :  { %16019 = vmatprep.mubr.msk.f32.mxu1 %vm279_vm1, %v20436_v45  ;;  %16890 = vmatprep.mubr.msk.f32.mxu0 %vm279_vm1, %v19846_v61  ;;  %v20472_v61 = vld [vmem:[%s23577_s0 + $0x5d0] sm:$0xff] }
 0x1dd   :  { %16020 = vmatmul.mubr.msk.f32.gmra.mrb[108].mxu1 %vm279_vm1, %v20449_v49  ;;  %16891 = vmatmul.mubr.msk.f32.gmra.mrb[42].mxu0 %vm279_vm1, %v19860_v1  ;;  %v20485_v1 = vld [vmem:[%s23577_s0 + $0x5d8] sm:$0xff] }
 0x1de   :  { %16022 = vmatprep.mubr.msk.f32.mxu1 %vm279_vm1, %v20454_v53  ;;  %16893 = vmatprep.mubr.msk.f32.mxu0 %vm279_vm1, %v19868_v5  ;;  %v20490_v5 = vld [vmem:[%s23577_s0 + $0x5e8] sm:$0xff] }
 0x1e1   :  { %16023 = vmatmul.mubr.msk.f32.gmra.mrb[110].mxu1 %vm279_vm1, %v20467_v57  ;;  %16894 = vmatmul.mubr.msk.f32.gmra.mrb[44].mxu0 %vm279_vm1, %v19882_v9  ;;  %v20503_v9 = vld [vmem:[%s23577_s0 + $0x5f0] sm:$0xff] }
 0x1e2   :  { %16025 = vmatprep.mubr.msk.f32.mxu1 %vm279_vm1, %v20472_v61  ;;  %16896 = vmatprep.mubr.msk.f32.mxu0 %vm279_vm1, %v19890_v11  ;;  %v20508_v11 = vld [vmem:[%s23577_s0 + $0x600] sm:$0xff] }
 0x1e5   :  { %16026 = vmatmul.mubr.msk.f32.gmra.mrb[112].mxu1 %vm279_vm1, %v20485_v1  ;;  %16897 = vmatmul.mubr.msk.f32.gmra.mrb[46].mxu0 %vm279_vm1, %v19904_v13  ;;  %v20521_v13 = vld [vmem:[%s23577_s0 + $0x608] sm:$0xff] }
 0x1e6   :  { %16028 = vmatprep.mubr.msk.f32.mxu1 %vm279_vm1, %v20490_v5  ;;  %16899 = vmatprep.mubr.msk.f32.mxu0 %vm279_vm1, %v19912_v15  ;;  %v20526_v15 = vld [vmem:[%s23577_s0 + $0x618] sm:$0xff] }
 0x1e9   :  { %16029 = vmatmul.mubr.msk.f32.gmra.mrb[114].mxu1 %vm279_vm1, %v20503_v9  ;;  %16900 = vmatmul.mubr.msk.f32.gmra.mrb[48].mxu0 %vm279_vm1, %v19926_v18  ;;  %v20539_v18 = vld [vmem:[%s23577_s0 + $0x620] sm:$0xff] }
 0x1ea   :  { %16031 = vmatprep.mubr.msk.f32.mxu1 %vm279_vm1, %v20508_v11  ;;  %16902 = vmatprep.mubr.msk.f32.mxu0 %vm279_vm1, %v19934_v27  ;;  %v20544_v27 = vld [vmem:[%s23577_s0 + $0x630] sm:$0xff] }
 0x1ed   :  { %16032 = vmatmul.mubr.msk.f32.gmra.mrb[116].mxu1 %vm279_vm1, %v20521_v13  ;;  %16903 = vmatmul.mubr.msk.f32.gmra.mrb[50].mxu0 %vm279_vm1, %v19948_v35  ;;  %v20557_v35 = vld [vmem:[%s23577_s0 + $0x638] sm:$0xff] }
 0x1ee   :  { %16034 = vmatprep.mubr.msk.f32.mxu1 %vm279_vm1, %v20526_v15  ;;  %16905 = vmatprep.mubr.msk.f32.mxu0 %vm279_vm1, %v19956_v43  ;;  %v20562_v43 = vld [vmem:[%s23577_s0 + $0x648] sm:$0xff] }
 0x1f1   :  { %16035 = vmatmul.mubr.msk.f32.gmra.mrb[118].mxu1 %vm279_vm1, %v20539_v18  ;;  %16906 = vmatmul.mubr.msk.f32.gmra.mrb[52].mxu0 %vm279_vm1, %v19970_v51  ;;  %v20575_v51 = vld [vmem:[%s23577_s0 + $0x650] sm:$0xff] }
 0x1f2   :  { %16037 = vmatprep.mubr.msk.f32.mxu1 %vm279_vm1, %v20544_v27  ;;  %16908 = vmatprep.mubr.msk.f32.mxu0 %vm279_vm1, %v19978_v59  ;;  %v20580_v59 = vld [vmem:[%s23577_s0 + $0x660] sm:$0xff] }
 0x1f5   :  { %16038 = vmatmul.mubr.msk.f32.gmra.mrb[120].mxu1 %vm279_vm1, %v20557_v35  ;;  %16909 = vmatmul.mubr.msk.f32.gmra.mrb[54].mxu0 %vm279_vm1, %v19992_v3  ;;  %v20593_v3 = vld [vmem:[%s23577_s0 + $0x668] sm:$0xff] }
 0x1f6   :  { %16040 = vmatprep.mubr.msk.f32.mxu1 %vm279_vm1, %v20562_v43  ;;  %16911 = vmatprep.mubr.msk.f32.mxu0 %vm279_vm1, %v20000_v10  ;;  %v20598_v10 = vld [vmem:[%s23577_s0 + $0x678] sm:$0xff] }
 0x1f9   :  { %16041 = vmatmul.mubr.msk.f32.gmra.mrb[122].mxu1 %vm279_vm1, %v20575_v51  ;;  %16912 = vmatmul.mubr.msk.f32.gmra.mrb[56].mxu0 %vm279_vm1, %v20014_v14  ;;  %v13780_v14 = vld [vmem:[%s23577_s0 + $0x330] sm:$0xff] }
 0x1fa   :  { %16043 = vmatprep.mubr.msk.f32.mxu1 %vm279_vm1, %v20580_v59  ;;  %16914 = vmatprep.mubr.msk.f32.mxu0 %vm279_vm1, %v20022_v23  ;;  %v20613_v23 = vld [vmem:[%s23577_s0 + $0x680] sm:$0xff] }
 0x1fd   :  { %16044 = vmatmul.mubr.msk.f32.gmra.mrb[124].mxu1 %vm279_vm1, %v20593_v3  ;;  %16915 = vmatmul.mubr.msk.f32.gmra.mrb[58].mxu0 %vm279_vm1, %v20036_v39  ;;  %v13782_v39 = vld [vmem:[%s23577_s0 + $0x348] sm:$0xff] }
 0x1fe   :  { %16046 = vmatprep.mubr.msk.f32.mxu1 %vm279_vm1, %v20598_v10  ;;  %16917 = vmatprep.mubr.msk.f32.mxu0 %vm279_vm1, %v13780_v14  ;;  %v2468_v14 = vld [vmem:[%s23577_s0 + $0x22] sm:$0xff] }
 0x201   :  { %16047 = vmatmul.mubr.msk.f32.gmra.mrb[126].mxu1 %vm279_vm1, %v20613_v23  ;;  %16918 = vmatmul.mubr.msk.f32.gmra.mrb[60].mxu0 %vm279_vm1, %v13781_v8  ;;  %v2469_v8 = vld [vmem:[%s23577_s0 + $0x32] sm:$0xff] }
 0x202   :  { %16051 = vmatprep.mubr.msk.f32.mxu1 %vm279_vm1, %v2465_v12  ;;  %16920 = vmatprep.mubr.msk.f32.mxu0 %vm279_vm1, %v13782_v39  ;;  %v20654_v12 = vld [vmem:[%s23576_s1 + $0x10] sm:$0xf] }
 0x203   :  { %v2471_v39 = vld [vmem:[%s23577_s0 + $0x4a] sm:$0xff] }
 0x205   :  { %16052 = vmatmul.mubr.msk.f32.vlgmr.msra.gmra.mrb[0].mxu1 %vm279_vm1, %v2466_v16  ;;  %16921 = vmatmul.mubr.msk.f32.gmra.mrb[62].mxu0 %vm279_vm1, %v13783_v31  ;;  %v13812_v16 = vld [vmem:[%s23577_s0 + $0x4e0] sm:$0xff]  ;;  %v2497_v31 = vld [vmem:[%s23577_s0 + $0x1b2] sm:$0xff] }
 0x206   :  { %16054 = vmatprep.mubr.msk.f32.mxu1 %vm279_vm1, %v2467_v4  ;;  %16923 = vmatprep.mubr.msk.f32.mxu0 %vm279_vm1, %v20072_v47  ;;  %v20664_v47 = vld [vmem:[%s23576_s1 + $0x20] sm:$0xf] }
 0x207   :  { %16244 = vmatpush3.msk.msra.mxu1 %vm664_vm0, %v20100_v19  ;;  %v2470_v19 = vld [vmem:[%s23577_s0 + $0x3a] sm:$0xff]  ;;  %17213 = vmatprep.subr.msk.mxu0 %vm664_vm0, %v20664_v47 }
 0x208   :  { %17417 = vmatprep.subr.msk.mxu1 %vm664_vm0, %v20654_v12  ;;  %v2498_v4 = vld [vmem:[%s23577_s0 + $0x1ba] sm:$0xff] }
 0x209   :  { %16055 = vmatmul.mubr.msk.f32.gmra.mrb[2].mxu1 %vm279_vm1, %v2468_v14  ;;  %16924 = vmatmul.mubr.msk.f32.gmra.mrb[64].mxu0 %vm279_vm1, %v20084_v17  ;;  %v2472_v17 = vld [vmem:[%s23577_s0 + $0x52] sm:$0xff]  ;;  %v13815_v14 = vld [vmem:[%s23577_s0 + $0x500] sm:$0xff] }
 0x20a   :  { %16057 = vmatprep.mubr.msk.f32.mxu1 %vm279_vm1, %v2469_v8  ;;  %16926 = vmatprep.mubr.msk.f32.mxu0 %vm279_vm1, %v20091_v55  ;;  %v2473_v55 = vld [vmem:[%s23577_s0 + $0x62] sm:$0xff]  ;;  %v2499_v8 = vld [vmem:[%s23577_s0 + $0x1ca] sm:$0xff] }
 0x20d   :  { %16058 = vmatmul.mubr.msk.f32.gmra.mrb[4].mxu1 %vm279_vm1, %v2470_v19  ;;  %16927 = vmatmul.mubr.msk.f32.gmra.mrb[66].mxu0 %vm279_vm1, %v20109_v20  ;;  %v2474_v20 = vld [vmem:[%s23577_s0 + $0x6a] sm:$0xff]  ;;  %v2500_v19 = vld [vmem:[%s23577_s0 + $0x1d2] sm:$0xff] }
 0x20e   :  { %16060 = vmatprep.mubr.msk.f32.mxu1 %vm279_vm1, %v2471_v39  ;;  %16929 = vmatprep.mubr.msk.f32.mxu0 %vm279_vm1, %v20114_v22  ;;  %v2475_v22 = vld [vmem:[%s23577_s0 + $0x7a] sm:$0xff]  ;;  %v2501_v39 = vld [vmem:[%s23577_s0 + $0x1e2] sm:$0xff] }
 0x211   :  { %16061 = vmatmul.mubr.msk.f32.gmra.mrb[6].mxu1 %vm279_vm1, %v2472_v17  ;;  %16930 = vmatmul.mubr.msk.f32.gmra.mrb[68].mxu0 %vm279_vm1, %v20129_v24  ;;  %v2476_v24 = vld [vmem:[%s23577_s0 + $0x82] sm:$0xff]  ;;  %v2503_v17 = vld [vmem:[%s23577_s0 + $0x1fa] sm:$0xff] }
 0x212   :  { %16063 = vmatprep.mubr.msk.f32.mxu1 %vm279_vm1, %v2473_v55  ;;  %16932 = vmatprep.mubr.msk.f32.mxu0 %vm279_vm1, %v20134_v26  ;;  %v2477_v26 = vld [vmem:[%s23577_s0 + $0x92] sm:$0xff] }
 0x213   :  { %v13844_v55 = vld [vmem:[%s23577_s0 + $0x690] sm:$0xff] }
 0x215   :  { %16064 = vmatmul.mubr.msk.f32.gmra.mrb[8].mxu1 %vm279_vm1, %v2474_v20  ;;  %16933 = vmatmul.mubr.msk.f32.gmra.mrb[70].mxu0 %vm279_vm1, %v20147_v28  ;;  %v2478_v28 = vld [vmem:[%s23577_s0 + $0x9a] sm:$0xff]  ;;  %v2529_v20 = vld [vmem:[%s23577_s0 + $0x362] sm:$0xff] }
 0x216   :  { %16066 = vmatprep.mubr.msk.f32.mxu1 %vm279_vm1, %v2475_v22  ;;  %16935 = vmatprep.mubr.msk.f32.mxu0 %vm279_vm1, %v20152_v30  ;;  %v2479_v30 = vld [vmem:[%s23577_s0 + $0xaa] sm:$0xff] }
 0x217   :  { %v2530_v22 = vld [vmem:[%s23577_s0 + $0x36a] sm:$0xff] }
 0x219   :  { %16067 = vmatmul.mubr.msk.f32.gmra.mrb[10].mxu1 %vm279_vm1, %v2476_v24  ;;  %16936 = vmatmul.mubr.msk.f32.gmra.mrb[72].mxu0 %vm279_vm1, %v20165_v32  ;;  %v2480_v32 = vld [vmem:[%s23577_s0 + $0xb2] sm:$0xff] }
 0x21a   :  { %16069 = vmatprep.mubr.msk.f32.mxu1 %vm279_vm1, %v2477_v26  ;;  %16938 = vmatprep.mubr.msk.f32.mxu0 %vm279_vm1, %v20170_v34  ;;  %v2481_v34 = vld [vmem:[%s23577_s0 + $0xc2] sm:$0xff]  ;;  %v13847_v24 = vld [vmem:[%s23577_s0 + $0x6b0] sm:$0xff]  ;;  %v2531_v26 = vld [vmem:[%s23577_s0 + $0x37a] sm:$0xff] }
 0x21d   :  { %16070 = vmatmul.mubr.msk.f32.gmra.mrb[12].mxu1 %vm279_vm1, %v2478_v28  ;;  %16939 = vmatmul.mubr.msk.f32.gmra.mrb[74].mxu0 %vm279_vm1, %v20183_v36  ;;  %v2482_v36 = vld [vmem:[%s23577_s0 + $0xca] sm:$0xff] }
 0x21e   :  { %16072 = vmatprep.mubr.msk.f32.mxu1 %vm279_vm1, %v2479_v30  ;;  %16941 = vmatprep.mubr.msk.f32.mxu0 %vm279_vm1, %v20188_v38  ;;  %v2483_v38 = vld [vmem:[%s23577_s0 + $0xda] sm:$0xff]  ;;  %v13978_v28 = vld [vmem:[%s23577_s0 + $0x31] sm:$0xff]  ;;  %v2532_v30 = vld [vmem:[%s23577_s0 + $0x382] sm:$0xff] }
 0x221   :  { %16073 = vmatmul.mubr.msk.f32.gmra.mrb[14].mxu1 %vm279_vm1, %v2480_v32  ;;  %16942 = vmatmul.mubr.msk.f32.gmra.mrb[76].mxu0 %vm279_vm1, %v20201_v40  ;;  %v2484_v40 = vld [vmem:[%s23577_s0 + $0xe2] sm:$0xff]  ;;  %v13979_v32 = vld [vmem:[%s23577_s0 + $0x39] sm:$0xff] }
 0x222   :  { %16075 = vmatprep.mubr.msk.f32.mxu1 %vm279_vm1, %v2481_v34  ;;  %16944 = vmatprep.mubr.msk.f32.mxu0 %vm279_vm1, %v20206_v42  ;;  %v2485_v42 = vld [vmem:[%s23577_s0 + $0xf2] sm:$0xff] }
 0x223   :  { %v2533_v34 = vld [vmem:[%s23577_s0 + $0x392] sm:$0xff] }
 0x225   :  { %16076 = vmatmul.mubr.msk.f32.gmra.mrb[16].mxu1 %vm279_vm1, %v2482_v36  ;;  %16945 = vmatmul.mubr.msk.f32.gmra.mrb[78].mxu0 %vm279_vm1, %v20219_v44  ;;  %v2486_v44 = vld [vmem:[%s23577_s0 + $0xfa] sm:$0xff]  ;;  %v13980_v36 = vld [vmem:[%s23577_s0 + $0x49] sm:$0xff] }
 0x226   :  { %16078 = vmatprep.mubr.msk.f32.mxu1 %vm279_vm1, %v2483_v38  ;;  %16947 = vmatprep.mubr.msk.f32.mxu0 %vm279_vm1, %v20224_v46  ;;  %v2487_v46 = vld [vmem:[%s23577_s0 + $0x10a] sm:$0xff]  ;;  %v2534_v38 = vld [vmem:[%s23577_s0 + $0x39a] sm:$0xff] }
 0x229   :  { %16079 = vmatmul.mubr.msk.f32.gmra.mrb[18].mxu1 %vm279_vm1, %v2484_v40  ;;  %16948 = vmatmul.mubr.msk.f32.gmra.mrb[80].mxu0 %vm279_vm1, %v20237_v48  ;;  %v2488_v48 = vld [vmem:[%s23577_s0 + $0x112] sm:$0xff] }
 0x22a   :  { %16081 = vmatprep.mubr.msk.f32.mxu1 %vm279_vm1, %v2485_v42  ;;  %16950 = vmatprep.mubr.msk.f32.mxu0 %vm279_vm1, %v20242_v50  ;;  %v2489_v50 = vld [vmem:[%s23577_s0 + $0x122] sm:$0xff]  ;;  %v13981_v40 = vld [vmem:[%s23577_s0 + $0x51] sm:$0xff] }
 0x22b   :  { %v2535_v42 = vld [vmem:[%s23577_s0 + $0x3aa] sm:$0xff] }
 0x22d   :  { %16082 = vmatmul.mubr.msk.f32.gmra.mrb[20].mxu1 %vm279_vm1, %v2486_v44  ;;  %16951 = vmatmul.mubr.msk.f32.gmra.mrb[82].mxu0 %vm279_vm1, %v20255_v52  ;;  %v2490_v52 = vld [vmem:[%s23577_s0 + $0x12a] sm:$0xff]  ;;  %v2536_v44 = vld [vmem:[%s23577_s0 + $0x3b2] sm:$0xff] }
 0x22e   :  { %16084 = vmatprep.mubr.msk.f32.mxu1 %vm279_vm1, %v2487_v46  ;;  %16953 = vmatprep.mubr.msk.f32.mxu0 %vm279_vm1, %v20260_v54  ;;  %v2491_v54 = vld [vmem:[%s23577_s0 + $0x13a] sm:$0xff]  ;;  %v13983_v46 = vld [vmem:[%s23577_s0 + $0x69] sm:$0xff] }
 0x231   :  { %16085 = vmatmul.mubr.msk.f32.gmra.mrb[22].mxu1 %vm279_vm1, %v2488_v48  ;;  %16954 = vmatmul.mubr.msk.f32.gmra.mrb[84].mxu0 %vm279_vm1, %v20273_v56  ;;  %v2492_v56 = vld [vmem:[%s23577_s0 + $0x142] sm:$0xff] }
 0x232   :  { %16087 = vmatprep.mubr.msk.f32.mxu1 %vm279_vm1, %v2489_v50  ;;  %16956 = vmatprep.mubr.msk.f32.mxu0 %vm279_vm1, %v20278_v58  ;;  %v2493_v58 = vld [vmem:[%s23577_s0 + $0x152] sm:$0xff]  ;;  %v2537_v48 = vld [vmem:[%s23577_s0 + $0x3c2] sm:$0xff] }
 0x233   :  { %v13984_v50 = vld [vmem:[%s23577_s0 + $0x79] sm:$0xff] }
 0x235   :  { %16088 = vmatmul.mubr.msk.f32.gmra.mrb[24].mxu1 %vm279_vm1, %v2490_v52  ;;  %16957 = vmatmul.mubr.msk.f32.gmra.mrb[86].mxu0 %vm279_vm1, %v20291_v60  ;;  %v2494_v60 = vld [vmem:[%s23577_s0 + $0x15a] sm:$0xff]  ;;  %v2538_v52 = vld [vmem:[%s23577_s0 + $0x3ca] sm:$0xff] }
 0x236   :  { %16090 = vmatprep.mubr.msk.f32.mxu1 %vm279_vm1, %v2491_v54  ;;  %16959 = vmatprep.mubr.msk.f32.mxu0 %vm279_vm1, %v20296_v62  ;;  %v2495_v62 = vld [vmem:[%s23577_s0 + $0x16a] sm:$0xff]  ;;  %v13985_v54 = vld [vmem:[%s23577_s0 + $0x81] sm:$0xff] }
 0x239   :  { %16091 = vmatmul.mubr.msk.f32.gmra.mrb[26].mxu1 %vm279_vm1, %v2492_v56  ;;  %16960 = vmatmul.mubr.msk.f32.gmra.mrb[88].mxu0 %vm279_vm1, %v20309_v0  ;;  %v2496_v0 = vld [vmem:[%s23577_s0 + $0x172] sm:$0xff]  ;;  %v2539_v56 = vld [vmem:[%s23577_s0 + $0x3da] sm:$0xff] }
 0x23a   :  { %16093 = vmatprep.mubr.msk.f32.mxu1 %vm279_vm1, %v2493_v58  ;;  %16962 = vmatprep.mubr.msk.f32.mxu0 %vm279_vm1, %v20314_v2  ;;  %v13813_v2 = vld [vmem:[%s23577_s0 + $0x4e8] sm:$0xff]  ;;  %v13986_v58 = vld [vmem:[%s23577_s0 + $0x91] sm:$0xff] }
 0x23d   :  { %16094 = vmatmul.mubr.msk.f32.gmra.mrb[28].mxu1 %vm279_vm1, %v2494_v60  ;;  %16963 = vmatmul.mubr.msk.f32.gmra.mrb[90].mxu0 %vm279_vm1, %v20329_v6  ;;  %v13814_v6 = vld [vmem:[%s23577_s0 + $0x4f8] sm:$0xff]  ;;  %v2540_v60 = vld [vmem:[%s23577_s0 + $0x3e2] sm:$0xff] }
 0x23e   :  { %16096 = vmatprep.mubr.msk.f32.mxu1 %vm279_vm1, %v2495_v62  ;;  %16965 = vmatprep.mubr.msk.f32.mxu0 %vm279_vm1, %v13812_v16  ;;  %v13987_v62 = vld [vmem:[%s23577_s0 + $0x99] sm:$0xff] }
 0x23f   :  { %v2541_v16 = vld [vmem:[%s23577_s0 + $0x3f2] sm:$0xff] }
 0x241   :  { %16097 = vmatmul.mubr.msk.f32.gmra.mrb[30].mxu1 %vm279_vm1, %v2496_v0  ;;  %16966 = vmatmul.mubr.msk.f32.gmra.mrb[92].mxu0 %vm279_vm1, %v13813_v2  ;;  %v13988_v0 = vld [vmem:[%s23577_s0 + $0xa9] sm:$0xff]  ;;  %v2542_v2 = vld [vmem:[%s23577_s0 + $0x3fa] sm:$0xff] }
 0x242   :  { %16099 = vmatprep.mubr.msk.f32.mxu1 %vm279_vm1, %v2497_v31  ;;  %16968 = vmatprep.mubr.msk.f32.mxu0 %vm279_vm1, %v13814_v6  ;;  %v13989_v31 = vld [vmem:[%s23577_s0 + $0xb1] sm:$0xff] }
 0x243   :  { %v2543_v6 = vld [vmem:[%s23577_s0 + $0x40a] sm:$0xff] }
 0x245   :  { %16100 = vmatmul.mubr.msk.f32.gmra.mrb[32].mxu1 %vm279_vm1, %v2498_v4  ;;  %16969 = vmatmul.mubr.msk.f32.gmra.mrb[94].mxu0 %vm279_vm1, %v13815_v14  ;;  %v13990_v4 = vld [vmem:[%s23577_s0 + $0xc1] sm:$0xff]  ;;  %v2544_v14 = vld [vmem:[%s23577_s0 + $0x412] sm:$0xff] }
 0x246   :  { %16102 = vmatprep.mubr.msk.f32.mxu1 %vm279_vm1, %v2499_v8  ;;  %16971 = vmatprep.mubr.msk.f32.mxu0 %vm279_vm1, %v20365_v63  ;;  %v2502_v63 = vld [vmem:[%s23577_s0 + $0x1ea] sm:$0xff] }
 0x247   :  { %v13991_v8 = vld [vmem:[%s23577_s0 + $0xc9] sm:$0xff] }
 0x249   :  { %16103 = vmatmul.mubr.msk.f32.gmra.mrb[34].mxu1 %vm279_vm1, %v2500_v19  ;;  %16972 = vmatmul.mubr.msk.f32.gmra.mrb[96].mxu0 %vm279_vm1, %v20377_v21  ;;  %v2504_v21 = vld [vmem:[%s23577_s0 + $0x202] sm:$0xff] }
 0x24a   :  { %16105 = vmatprep.mubr.msk.f32.mxu1 %vm279_vm1, %v2501_v39  ;;  %16974 = vmatprep.mubr.msk.f32.mxu0 %vm279_vm1, %v20382_v7  ;;  %v2505_v7 = vld [vmem:[%s23577_s0 + $0x212] sm:$0xff]  ;;  %v2545_v19 = vld [vmem:[%s23577_s0 + $0x422] sm:$0xff] }
 0x24b   :  { %v13992_v39 = vld [vmem:[%s23577_s0 + $0xd9] sm:$0xff] }
 0x24d   :  { %16106 = vmatmul.mubr.msk.f32.gmra.mrb[36].mxu1 %vm279_vm1, %v2502_v63  ;;  %16975 = vmatmul.mubr.msk.f32.gmra.mrb[98].mxu0 %vm279_vm1, %v20395_v25  ;;  %v2506_v25 = vld [vmem:[%s23577_s0 + $0x21a] sm:$0xff]  ;;  %v2546_v63 = vld [vmem:[%s23577_s0 + $0x42a] sm:$0xff] }
 0x24e   :  { %16108 = vmatprep.mubr.msk.f32.mxu1 %vm279_vm1, %v2503_v17  ;;  %16977 = vmatprep.mubr.msk.f32.mxu0 %vm279_vm1, %v20400_v29  ;;  %v2507_v29 = vld [vmem:[%s23577_s0 + $0x22a] sm:$0xff]  ;;  %v13993_v17 = vld [vmem:[%s23577_s0 + $0xe1] sm:$0xff] }
 0x251   :  { %16109 = vmatmul.mubr.msk.f32.gmra.mrb[38].mxu1 %vm279_vm1, %v2504_v21  ;;  %16978 = vmatmul.mubr.msk.f32.gmra.mrb[100].mxu0 %vm279_vm1, %v20413_v33  ;;  %v2508_v33 = vld [vmem:[%s23577_s0 + $0x232] sm:$0xff]  ;;  %v2547_v21 = vld [vmem:[%s23577_s0 + $0x43a] sm:$0xff] }
 0x252   :  { %16111 = vmatprep.mubr.msk.f32.mxu1 %vm279_vm1, %v2505_v7  ;;  %16980 = vmatprep.mubr.msk.f32.mxu0 %vm279_vm1, %v20418_v37  ;;  %v2509_v37 = vld [vmem:[%s23577_s0 + $0x242] sm:$0xff]  ;;  %v13994_v7 = vld [vmem:[%s23577_s0 + $0xf1] sm:$0xff] }
 0x255   :  { %16112 = vmatmul.mubr.msk.f32.gmra.mrb[40].mxu1 %vm279_vm1, %v2506_v25  ;;  %16981 = vmatmul.mubr.msk.f32.gmra.mrb[102].mxu0 %vm279_vm1, %v20431_v41  ;;  %v2510_v41 = vld [vmem:[%s23577_s0 + $0x24a] sm:$0xff]  ;;  %v2548_v25 = vld [vmem:[%s23577_s0 + $0x442] sm:$0xff] }
 0x256   :  { %16114 = vmatprep.mubr.msk.f32.mxu1 %vm279_vm1, %v2507_v29  ;;  %16983 = vmatprep.mubr.msk.f32.mxu0 %vm279_vm1, %v20436_v45  ;;  %v2511_v45 = vld [vmem:[%s23577_s0 + $0x25a] sm:$0xff] }
 0x257   :  { %v13995_v29 = vld [vmem:[%s23577_s0 + $0xf9] sm:$0xff] }
 0x259   :  { %16115 = vmatmul.mubr.msk.f32.gmra.mrb[42].mxu1 %vm279_vm1, %v2508_v33  ;;  %16984 = vmatmul.mubr.msk.f32.gmra.mrb[104].mxu0 %vm279_vm1, %v20449_v49  ;;  %v2512_v49 = vld [vmem:[%s23577_s0 + $0x262] sm:$0xff]  ;;  %v2549_v33 = vld [vmem:[%s23577_s0 + $0x452] sm:$0xff] }
 0x25a   :  { %16117 = vmatprep.mubr.msk.f32.mxu1 %vm279_vm1, %v2509_v37  ;;  %16986 = vmatprep.mubr.msk.f32.mxu0 %vm279_vm1, %v20454_v53  ;;  %v2513_v53 = vld [vmem:[%s23577_s0 + $0x272] sm:$0xff]  ;;  %v13996_v37 = vld [vmem:[%s23577_s0 + $0x109] sm:$0xff] }
 0x25d   :  { %16118 = vmatmul.mubr.msk.f32.gmra.mrb[44].mxu1 %vm279_vm1, %v2510_v41  ;;  %16987 = vmatmul.mubr.msk.f32.gmra.mrb[106].mxu0 %vm279_vm1, %v20467_v57  ;;  %v2514_v57 = vld [vmem:[%s23577_s0 + $0x27a] sm:$0xff] }
 0x25e   :  { %16120 = vmatprep.mubr.msk.f32.mxu1 %vm279_vm1, %v2511_v45  ;;  %16989 = vmatprep.mubr.msk.f32.mxu0 %vm279_vm1, %v20472_v61  ;;  %v2515_v61 = vld [vmem:[%s23577_s0 + $0x28a] sm:$0xff]  ;;  %v2550_v41 = vld [vmem:[%s23577_s0 + $0x45a] sm:$0xff] }
 0x25f   :  { %v13997_v45 = vld [vmem:[%s23577_s0 + $0x111] sm:$0xff] }
 0x261   :  { %16121 = vmatmul.mubr.msk.f32.gmra.mrb[46].mxu1 %vm279_vm1, %v2512_v49  ;;  %16990 = vmatmul.mubr.msk.f32.gmra.mrb[108].mxu0 %vm279_vm1, %v20485_v1  ;;  %v2516_v1 = vld [vmem:[%s23577_s0 + $0x292] sm:$0xff]  ;;  %v2551_v49 = vld [vmem:[%s23577_s0 + $0x46a] sm:$0xff] }
 0x262   :  { %16123 = vmatprep.mubr.msk.f32.mxu1 %vm279_vm1, %v2513_v53  ;;  %16992 = vmatprep.mubr.msk.f32.mxu0 %vm279_vm1, %v20490_v5  ;;  %v2517_v5 = vld [vmem:[%s23577_s0 + $0x2a2] sm:$0xff] }
 0x263   :  { %v13998_v53 = vld [vmem:[%s23577_s0 + $0x121] sm:$0xff] }
 0x265   :  { %16124 = vmatmul.mubr.msk.f32.gmra.mrb[48].mxu1 %vm279_vm1, %v2514_v57  ;;  %16993 = vmatmul.mubr.msk.f32.gmra.mrb[110].mxu0 %vm279_vm1, %v20503_v9  ;;  %v2518_v9 = vld [vmem:[%s23577_s0 + $0x2aa] sm:$0xff]  ;;  %v2552_v57 = vld [vmem:[%s23577_s0 + $0x472] sm:$0xff] }
 0x266   :  { %16126 = vmatprep.mubr.msk.f32.mxu1 %vm279_vm1, %v2515_v61  ;;  %16995 = vmatprep.mubr.msk.f32.mxu0 %vm279_vm1, %v20508_v11  ;;  %v2519_v11 = vld [vmem:[%s23577_s0 + $0x2ba] sm:$0xff]  ;;  %v13999_v61 = vld [vmem:[%s23577_s0 + $0x129] sm:$0xff] }
 0x269   :  { %16127 = vmatmul.mubr.msk.f32.gmra.mrb[50].mxu1 %vm279_vm1, %v2516_v1  ;;  %16996 = vmatmul.mubr.msk.f32.gmra.mrb[112].mxu0 %vm279_vm1, %v20521_v13  ;;  %v2520_v13 = vld [vmem:[%s23577_s0 + $0x2c2] sm:$0xff] }
 0x26a   :  { %16129 = vmatprep.mubr.msk.f32.mxu1 %vm279_vm1, %v2517_v5  ;;  %16998 = vmatprep.mubr.msk.f32.mxu0 %vm279_vm1, %v20526_v15  ;;  %v2521_v15 = vld [vmem:[%s23577_s0 + $0x2d2] sm:$0xff]  ;;  %v2553_v1 = vld [vmem:[%s23577_s0 + $0x482] sm:$0xff] }
 0x26b   :  { %v14000_v5 = vld [vmem:[%s23577_s0 + $0x139] sm:$0xff] }
 0x26d   :  { %16130 = vmatmul.mubr.msk.f32.gmra.mrb[52].mxu1 %vm279_vm1, %v2518_v9  ;;  %16999 = vmatmul.mubr.msk.f32.gmra.mrb[114].mxu0 %vm279_vm1, %v20539_v18  ;;  %v2522_v18 = vld [vmem:[%s23577_s0 + $0x2da] sm:$0xff]  ;;  %v2554_v9 = vld [vmem:[%s23577_s0 + $0x48a] sm:$0xff] }
 0x26e   :  { %16132 = vmatprep.mubr.msk.f32.mxu1 %vm279_vm1, %v2519_v11  ;;  %17001 = vmatprep.mubr.msk.f32.mxu0 %vm279_vm1, %v20544_v27  ;;  %v2523_v27 = vld [vmem:[%s23577_s0 + $0x2ea] sm:$0xff]  ;;  %v14001_v11 = vld [vmem:[%s23577_s0 + $0x141] sm:$0xff] }
 0x271   :  { %16133 = vmatmul.mubr.msk.f32.gmra.mrb[54].mxu1 %vm279_vm1, %v2520_v13  ;;  %17002 = vmatmul.mubr.msk.f32.gmra.mrb[116].mxu0 %vm279_vm1, %v20557_v35  ;;  %v2524_v35 = vld [vmem:[%s23577_s0 + $0x2f2] sm:$0xff]  ;;  %v2555_v13 = vld [vmem:[%s23577_s0 + $0x49a] sm:$0xff] }
 0x272   :  { %16135 = vmatprep.mubr.msk.f32.mxu1 %vm279_vm1, %v2521_v15  ;;  %17004 = vmatprep.mubr.msk.f32.mxu0 %vm279_vm1, %v20562_v43  ;;  %v2525_v43 = vld [vmem:[%s23577_s0 + $0x302] sm:$0xff]  ;;  %v14002_v15 = vld [vmem:[%s23577_s0 + $0x151] sm:$0xff] }
 0x275   :  { %16136 = vmatmul.mubr.msk.f32.gmra.mrb[56].mxu1 %vm279_vm1, %v2522_v18  ;;  %17005 = vmatmul.mubr.msk.f32.gmra.mrb[118].mxu0 %vm279_vm1, %v20575_v51  ;;  %v2526_v51 = vld [vmem:[%s23577_s0 + $0x30a] sm:$0xff]  ;;  %v2556_v18 = vld [vmem:[%s23577_s0 + $0x4a2] sm:$0xff] }
 0x276   :  { %16138 = vmatprep.mubr.msk.f32.mxu1 %vm279_vm1, %v2523_v27  ;;  %17007 = vmatprep.mubr.msk.f32.mxu0 %vm279_vm1, %v20580_v59  ;;  %v2527_v59 = vld [vmem:[%s23577_s0 + $0x31a] sm:$0xff] }
 0x277   :  { %v14003_v27 = vld [vmem:[%s23577_s0 + $0x159] sm:$0xff] }
 0x279   :  { %16139 = vmatmul.mubr.msk.f32.gmra.mrb[58].mxu1 %vm279_vm1, %v2524_v35  ;;  %17008 = vmatmul.mubr.msk.f32.gmra.mrb[120].mxu0 %vm279_vm1, %v20593_v3  ;;  %v2528_v3 = vld [vmem:[%s23577_s0 + $0x322] sm:$0xff]  ;;  %v2557_v35 = vld [vmem:[%s23577_s0 + $0x4b2] sm:$0xff] }
 0x27a   :  { %16141 = vmatprep.mubr.msk.f32.mxu1 %vm279_vm1, %v2525_v43  ;;  %17010 = vmatprep.mubr.msk.f32.mxu0 %vm279_vm1, %v20598_v10  ;;  %v13845_v10 = vld [vmem:[%s23577_s0 + $0x698] sm:$0xff]  ;;  %v14004_v43 = vld [vmem:[%s23577_s0 + $0x169] sm:$0xff] }
 0x27d   :  { %16142 = vmatmul.mubr.msk.f32.gmra.mrb[60].mxu1 %vm279_vm1, %v2526_v51  ;;  %17011 = vmatmul.mubr.msk.f32.gmra.mrb[122].mxu0 %vm279_vm1, %v20613_v23  ;;  %v13846_v23 = vld [vmem:[%s23577_s0 + $0x6a8] sm:$0xff]  ;;  %v2558_v51 = vld [vmem:[%s23577_s0 + $0x4ba] sm:$0xff] }
 0x27e   :  { %16144 = vmatprep.mubr.msk.f32.mxu1 %vm279_vm1, %v2527_v59  ;;  %17013 = vmatprep.mubr.msk.f32.mxu0 %vm279_vm1, %v13844_v55  ;;  %v14005_v59 = vld [vmem:[%s23577_s0 + $0x171] sm:$0xff] }
 0x27f   :  { %v2559_v55 = vld [vmem:[%s23577_s0 + $0x4ca] sm:$0xff] }
 0x281   :  { %16145 = vmatmul.mubr.msk.f32.gmra.mrb[62].mxu1 %vm279_vm1, %v2528_v3  ;;  %17014 = vmatmul.mubr.msk.f32.gmra.mrb[124].mxu0 %vm279_vm1, %v13845_v10  ;;  %v14006_v3 = vld [vmem:[%s23577_s0 + $0x181] sm:$0xff]  ;;  %v2560_v10 = vld [vmem:[%s23577_s0 + $0x4d2] sm:$0xff] }
 0x282   :  { %16147 = vmatprep.mubr.msk.f32.mxu1 %vm279_vm1, %v2529_v20  ;;  %17016 = vmatprep.mubr.msk.f32.mxu0 %vm279_vm1, %v13846_v23  ;;  %v14007_v20 = vld [vmem:[%s23577_s0 + $0x189] sm:$0xff]  ;;  %v2561_v23 = vld [vmem:[%s23577_s0 + $0x512] sm:$0xff] }
 0x285   :  { %16148 = vmatmul.mubr.msk.f32.gmra.mrb[64].mxu1 %vm279_vm1, %v2530_v22  ;;  %17017 = vmatmul.mubr.msk.f32.gmra.mrb[126].mxu0 %vm279_vm1, %v13847_v24  ;;  %v14008_v22 = vld [vmem:[%s23577_s0 + $0x199] sm:$0xff] }
 0x286   :  { %16150 = vmatprep.mubr.msk.f32.mxu1 %vm279_vm1, %v2531_v26  ;;  %17021 = vmatprep.mubr.msk.f32.mxu0 %vm279_vm1, %v13978_v28  ;;  %v2562_v24 = vld [vmem:[%s23577_s0 + $0x51a] sm:$0xff]  ;;  %v2563_v28 = vld [vmem:[%s23577_s0 + $0x52a] sm:$0xff] }
 0x287   :  { %v14009_v26 = vld [vmem:[%s23577_s0 + $0x1a1] sm:$0xff] }
 0x289   :  { %16151 = vmatmul.mubr.msk.f32.gmra.mrb[66].mxu1 %vm279_vm1, %v2532_v30  ;;  %17022 = vmatmul.mubr.msk.f32.vlgmr.msra.gmra.mrb[0].mxu0 %vm279_vm1, %v13979_v32  ;;  %v14010_v30 = vld [vmem:[%s23577_s0 + $0x1e1] sm:$0xff]  ;;  %v2564_v32 = vld [vmem:[%s23577_s0 + $0x532] sm:$0xff] }
 0x28a   :  { %17214 = vmatpush3.msk.msra.mxu0 %vm664_vm0, %v20664_v47  ;;  %16153 = vmatprep.mubr.msk.f32.mxu1 %vm279_vm1, %v2533_v34  ;;  %v13982_v47 = vld [vmem:[%s23577_s0 + $0x61] sm:$0xff]  ;;  %v14011_v34 = vld [vmem:[%s23577_s0 + $0x1e9] sm:$0xff] }
 0x28b   :  { %17024 = vmatprep.mubr.msk.f32.mxu0 %vm279_vm1, %v13980_v36  ;;  %v2565_v36 = vld [vmem:[%s23577_s0 + $0x542] sm:$0xff] }
 0x28d   :  { %16154 = vmatmul.mubr.msk.f32.gmra.mrb[68].mxu1 %vm279_vm1, %v2534_v38  ;;  %17025 = vmatmul.mubr.msk.f32.gmra.mrb[2].mxu0 %vm279_vm1, %v13981_v40  ;;  %v14012_v38 = vld [vmem:[%s23577_s0 + $0x1f9] sm:$0xff]  ;;  %v2566_v40 = vld [vmem:[%s23577_s0 + $0x54a] sm:$0xff] }
 0x28e   :  { %16156 = vmatprep.mubr.msk.f32.mxu1 %vm279_vm1, %v2535_v42  ;;  %17027 = vmatprep.mubr.msk.f32.mxu0 %vm279_vm1, %v13982_v47  ;;  %v14013_v42 = vld [vmem:[%s23577_s0 + $0x201] sm:$0xff] }
 0x28f   :  { %v2567_v47 = vld [vmem:[%s23577_s0 + $0x55a] sm:$0xff] }
 0x291   :  { %16157 = vmatmul.mubr.msk.f32.gmra.mrb[70].mxu1 %vm279_vm1, %v2536_v44  ;;  %17028 = vmatmul.mubr.msk.f32.gmra.mrb[4].mxu0 %vm279_vm1, %v13983_v46  ;;  %v14014_v44 = vld [vmem:[%s23577_s0 + $0x211] sm:$0xff]  ;;  %v2568_v46 = vld [vmem:[%s23577_s0 + $0x562] sm:$0xff] }
 0x292   :  { %16159 = vmatprep.mubr.msk.f32.mxu1 %vm279_vm1, %v2537_v48  ;;  %17030 = vmatprep.mubr.msk.f32.mxu0 %vm279_vm1, %v13984_v50  ;;  %v14015_v48 = vld [vmem:[%s23577_s0 + $0x219] sm:$0xff] }
 0x293   :  { %v2569_v50 = vld [vmem:[%s23577_s0 + $0x572] sm:$0xff] }
 0x295   :  { %16160 = vmatmul.mubr.msk.f32.gmra.mrb[72].mxu1 %vm279_vm1, %v2538_v52  ;;  %17031 = vmatmul.mubr.msk.f32.gmra.mrb[6].mxu0 %vm279_vm1, %v13985_v54  ;;  %v14016_v52 = vld [vmem:[%s23577_s0 + $0x229] sm:$0xff]  ;;  %v2570_v54 = vld [vmem:[%s23577_s0 + $0x57a] sm:$0xff] }
 0x296   :  { %16162 = vmatprep.mubr.msk.f32.mxu1 %vm279_vm1, %v2539_v56  ;;  %17033 = vmatprep.mubr.msk.f32.mxu0 %vm279_vm1, %v13986_v58  ;;  %v14017_v56 = vld [vmem:[%s23577_s0 + $0x231] sm:$0xff] }
 0x297   :  { %v2571_v58 = vld [vmem:[%s23577_s0 + $0x58a] sm:$0xff] }
 0x299   :  { %16163 = vmatmul.mubr.msk.f32.gmra.mrb[74].mxu1 %vm279_vm1, %v2540_v60  ;;  %17034 = vmatmul.mubr.msk.f32.gmra.mrb[8].mxu0 %vm279_vm1, %v13987_v62  ;;  %v14018_v60 = vld [vmem:[%s23577_s0 + $0x241] sm:$0xff]  ;;  %v2572_v62 = vld [vmem:[%s23577_s0 + $0x592] sm:$0xff] }
 0x29a   :  { %16165 = vmatprep.mubr.msk.f32.mxu1 %vm279_vm1, %v2541_v16  ;;  %17036 = vmatprep.mubr.msk.f32.mxu0 %vm279_vm1, %v13988_v0  ;;  %v14019_v16 = vld [vmem:[%s23577_s0 + $0x249] sm:$0xff] }
 0x29b   :  { %v2573_v0 = vld [vmem:[%s23577_s0 + $0x5a2] sm:$0xff] }
 0x29d   :  { %16166 = vmatmul.mubr.msk.f32.gmra.mrb[76].mxu1 %vm279_vm1, %v2542_v2  ;;  %17037 = vmatmul.mubr.msk.f32.gmra.mrb[10].mxu0 %vm279_vm1, %v13989_v31  ;;  %v14020_v2 = vld [vmem:[%s23577_s0 + $0x259] sm:$0xff]  ;;  %v2574_v31 = vld [vmem:[%s23577_s0 + $0x5aa] sm:$0xff] }
 0x29e   :  { %16168 = vmatprep.mubr.msk.f32.mxu1 %vm279_vm1, %v2543_v6  ;;  %17039 = vmatprep.mubr.msk.f32.mxu0 %vm279_vm1, %v13990_v4  ;;  %v14021_v6 = vld [vmem:[%s23577_s0 + $0x261] sm:$0xff] }
 0x29f   :  { %v2575_v4 = vld [vmem:[%s23577_s0 + $0x5ba] sm:$0xff] }
 0x2a1   :  { %16169 = vmatmul.mubr.msk.f32.gmra.mrb[78].mxu1 %vm279_vm1, %v2544_v14  ;;  %17040 = vmatmul.mubr.msk.f32.gmra.mrb[12].mxu0 %vm279_vm1, %v13991_v8  ;;  %v14022_v14 = vld [vmem:[%s23577_s0 + $0x271] sm:$0xff]  ;;  %v2576_v8 = vld [vmem:[%s23577_s0 + $0x5c2] sm:$0xff] }
 0x2a2   :  { %16171 = vmatprep.mubr.msk.f32.mxu1 %vm279_vm1, %v2545_v19  ;;  %17042 = vmatprep.mubr.msk.f32.mxu0 %vm279_vm1, %v13992_v39  ;;  %v14023_v19 = vld [vmem:[%s23577_s0 + $0x279] sm:$0xff] }
 0x2a3   :  { %v2577_v39 = vld [vmem:[%s23577_s0 + $0x5d2] sm:$0xff] }
 0x2a5   :  { %16172 = vmatmul.mubr.msk.f32.gmra.mrb[80].mxu1 %vm279_vm1, %v2546_v63  ;;  %17043 = vmatmul.mubr.msk.f32.gmra.mrb[14].mxu0 %vm279_vm1, %v13993_v17  ;;  %v14024_v63 = vld [vmem:[%s23577_s0 + $0x289] sm:$0xff]  ;;  %v2578_v17 = vld [vmem:[%s23577_s0 + $0x5da] sm:$0xff] }
 0x2a6   :  { %16174 = vmatprep.mubr.msk.f32.mxu1 %vm279_vm1, %v2547_v21  ;;  %17045 = vmatprep.mubr.msk.f32.mxu0 %vm279_vm1, %v13994_v7  ;;  %v14025_v21 = vld [vmem:[%s23577_s0 + $0x291] sm:$0xff] }
 0x2a7   :  { %v2579_v7 = vld [vmem:[%s23577_s0 + $0x5ea] sm:$0xff] }
 0x2a9   :  { %16175 = vmatmul.mubr.msk.f32.gmra.mrb[82].mxu1 %vm279_vm1, %v2548_v25  ;;  %17046 = vmatmul.mubr.msk.f32.gmra.mrb[16].mxu0 %vm279_vm1, %v13995_v29  ;;  %v14026_v25 = vld [vmem:[%s23577_s0 + $0x2a1] sm:$0xff]  ;;  %v2580_v29 = vld [vmem:[%s23577_s0 + $0x5f2] sm:$0xff] }
 0x2aa   :  { %16177 = vmatprep.mubr.msk.f32.mxu1 %vm279_vm1, %v2549_v33  ;;  %17048 = vmatprep.mubr.msk.f32.mxu0 %vm279_vm1, %v13996_v37  ;;  %v14027_v33 = vld [vmem:[%s23577_s0 + $0x2a9] sm:$0xff] }
 0x2ab   :  { %v2581_v37 = vld [vmem:[%s23577_s0 + $0x602] sm:$0xff] }
 0x2ad   :  { %16178 = vmatmul.mubr.msk.f32.gmra.mrb[84].mxu1 %vm279_vm1, %v2550_v41  ;;  %17049 = vmatmul.mubr.msk.f32.gmra.mrb[18].mxu0 %vm279_vm1, %v13997_v45  ;;  %v14028_v41 = vld [vmem:[%s23577_s0 + $0x2b9] sm:$0xff]  ;;  %v2582_v45 = vld [vmem:[%s23577_s0 + $0x60a] sm:$0xff] }
 0x2ae   :  { %16180 = vmatprep.mubr.msk.f32.mxu1 %vm279_vm1, %v2551_v49  ;;  %17051 = vmatprep.mubr.msk.f32.mxu0 %vm279_vm1, %v13998_v53  ;;  %v14029_v49 = vld [vmem:[%s23577_s0 + $0x2c1] sm:$0xff] }
 0x2af   :  { %v2583_v53 = vld [vmem:[%s23577_s0 + $0x61a] sm:$0xff] }
 0x2b1   :  { %16181 = vmatmul.mubr.msk.f32.gmra.mrb[86].mxu1 %vm279_vm1, %v2552_v57  ;;  %17052 = vmatmul.mubr.msk.f32.gmra.mrb[20].mxu0 %vm279_vm1, %v13999_v61  ;;  %v14030_v57 = vld [vmem:[%s23577_s0 + $0x2d1] sm:$0xff]  ;;  %v2584_v61 = vld [vmem:[%s23577_s0 + $0x622] sm:$0xff] }
 0x2b2   :  { %16183 = vmatprep.mubr.msk.f32.mxu1 %vm279_vm1, %v2553_v1  ;;  %17054 = vmatprep.mubr.msk.f32.mxu0 %vm279_vm1, %v14000_v5  ;;  %v14031_v1 = vld [vmem:[%s23577_s0 + $0x2d9] sm:$0xff] }
 0x2b3   :  { %v2585_v5 = vld [vmem:[%s23577_s0 + $0x632] sm:$0xff] }
 0x2b5   :  { %16184 = vmatmul.mubr.msk.f32.gmra.mrb[88].mxu1 %vm279_vm1, %v2554_v9  ;;  %17055 = vmatmul.mubr.msk.f32.gmra.mrb[22].mxu0 %vm279_vm1, %v14001_v11  ;;  %v14032_v9 = vld [vmem:[%s23577_s0 + $0x2e9] sm:$0xff]  ;;  %v2586_v11 = vld [vmem:[%s23577_s0 + $0x63a] sm:$0xff] }
 0x2b6   :  { %16186 = vmatprep.mubr.msk.f32.mxu1 %vm279_vm1, %v2555_v13  ;;  %17057 = vmatprep.mubr.msk.f32.mxu0 %vm279_vm1, %v14002_v15  ;;  %v14033_v13 = vld [vmem:[%s23577_s0 + $0x2f1] sm:$0xff] }
 0x2b7   :  { %v2587_v15 = vld [vmem:[%s23577_s0 + $0x64a] sm:$0xff] }
 0x2b9   :  { %16187 = vmatmul.mubr.msk.f32.gmra.mrb[90].mxu1 %vm279_vm1, %v2556_v18  ;;  %17058 = vmatmul.mubr.msk.f32.gmra.mrb[24].mxu0 %vm279_vm1, %v14003_v27  ;;  %v14034_v18 = vld [vmem:[%s23577_s0 + $0x301] sm:$0xff]  ;;  %v2588_v27 = vld [vmem:[%s23577_s0 + $0x652] sm:$0xff] }
 0x2ba   :  { %16189 = vmatprep.mubr.msk.f32.mxu1 %vm279_vm1, %v2557_v35  ;;  %17060 = vmatprep.mubr.msk.f32.mxu0 %vm279_vm1, %v14004_v43  ;;  %v14035_v35 = vld [vmem:[%s23577_s0 + $0x309] sm:$0xff] }
 0x2bb   :  { %v2589_v43 = vld [vmem:[%s23577_s0 + $0x662] sm:$0xff] }
 0x2bd   :  { %16190 = vmatmul.mubr.msk.f32.gmra.mrb[92].mxu1 %vm279_vm1, %v2558_v51  ;;  %17061 = vmatmul.mubr.msk.f32.gmra.mrb[26].mxu0 %vm279_vm1, %v14005_v59  ;;  %v14036_v51 = vld [vmem:[%s23577_s0 + $0x319] sm:$0xff]  ;;  %v2590_v59 = vld [vmem:[%s23577_s0 + $0x66a] sm:$0xff] }
 0x2be   :  { %16192 = vmatprep.mubr.msk.f32.mxu1 %vm279_vm1, %v2559_v55  ;;  %17063 = vmatprep.mubr.msk.f32.mxu0 %vm279_vm1, %v14006_v3  ;;  %v14037_v55 = vld [vmem:[%s23577_s0 + $0x321] sm:$0xff] }
 0x2bf   :  { %v2591_v3 = vld [vmem:[%s23577_s0 + $0x67a] sm:$0xff] }
 0x2c1   :  { %16193 = vmatmul.mubr.msk.f32.gmra.mrb[94].mxu1 %vm279_vm1, %v2560_v10  ;;  %17064 = vmatmul.mubr.msk.f32.gmra.mrb[28].mxu0 %vm279_vm1, %v14007_v20  ;;  %v14038_v10 = vld [vmem:[%s23577_s0 + $0x331] sm:$0xff]  ;;  %v2592_v20 = vld [vmem:[%s23577_s0 + $0x682] sm:$0xff] }
 0x2c2   :  { %16195 = vmatprep.mubr.msk.f32.mxu1 %vm279_vm1, %v2561_v23  ;;  %17066 = vmatprep.mubr.msk.f32.mxu0 %vm279_vm1, %v14008_v22  ;;  %v14039_v23 = vld [vmem:[%s23577_s0 + $0x339] sm:$0xff] }
 0x2c3   :  { %v12946_v22 = vld [vmem:[%s23577_s0 + $0x18] sm:$0xff] }
 0x2c5   :  { %16196 = vmatmul.mubr.msk.f32.gmra.mrb[96].mxu1 %vm279_vm1, %v2562_v24  ;;  %17067 = vmatmul.mubr.msk.f32.gmra.mrb[30].mxu0 %vm279_vm1, %v14009_v26  ;;  %v14040_v24 = vld [vmem:[%s23577_s0 + $0x349] sm:$0xff]  ;;  %v12947_v26 = vld [vmem:[%s23577_s0 + $0x20] sm:$0xff] }
 0x2c6   :  { %16198 = vmatprep.mubr.msk.f32.mxu1 %vm279_vm1, %v2563_v28  ;;  %17069 = vmatprep.mubr.msk.f32.mxu0 %vm279_vm1, %v14010_v30  ;;  %v14041_v28 = vld [vmem:[%s23577_s0 + $0x351] sm:$0xff] }
 0x2c7   :  { %v12948_v30 = vld [vmem:[%s23577_s0 + $0x30] sm:$0xff] }
 0x2c9   :  { %16199 = vmatmul.mubr.msk.f32.gmra.mrb[98].mxu1 %vm279_vm1, %v2564_v32  ;;  %17070 = vmatmul.mubr.msk.f32.gmra.mrb[32].mxu0 %vm279_vm1, %v14011_v34  ;;  %v14042_v32 = vld [vmem:[%s23577_s0 + $0x391] sm:$0xff] }
 0x2ca   :  { %16201 = vmatprep.mubr.msk.f32.mxu1 %vm279_vm1, %v2565_v36  ;;  %17072 = vmatprep.mubr.msk.f32.mxu0 %vm279_vm1, %v14012_v38  ;;  %v12949_v34 = vld [vmem:[%s23577_s0 + $0x38] sm:$0xff]  ;;  %v12950_v38 = vld [vmem:[%s23577_s0 + $0x48] sm:$0xff] }
 0x2cb   :  { %v14043_v36 = vld [vmem:[%s23577_s0 + $0x399] sm:$0xff] }
 0x2cd   :  { %16202 = vmatmul.mubr.msk.f32.gmra.mrb[100].mxu1 %vm279_vm1, %v2566_v40  ;;  %17073 = vmatmul.mubr.msk.f32.gmra.mrb[34].mxu0 %vm279_vm1, %v14013_v42  ;;  %v14044_v40 = vld [vmem:[%s23577_s0 + $0x3a9] sm:$0xff] }
 0x2ce   :  { %16204 = vmatprep.mubr.msk.f32.mxu1 %vm279_vm1, %v2567_v47  ;;  %17075 = vmatprep.mubr.msk.f32.mxu0 %vm279_vm1, %v14014_v44  ;;  %v12951_v42 = vld [vmem:[%s23577_s0 + $0x50] sm:$0xff]  ;;  %v14046_v44 = vld [vmem:[%s23577_s0 + $0x3c1] sm:$0xff] }
 0x2cf   :  { %v14045_v47 = vld [vmem:[%s23577_s0 + $0x3b1] sm:$0xff] }
 0x2d1   :  { %16205 = vmatmul.mubr.msk.f32.gmra.mrb[102].mxu1 %vm279_vm1, %v2568_v46  ;;  %17076 = vmatmul.mubr.msk.f32.gmra.mrb[36].mxu0 %vm279_vm1, %v14015_v48  ;;  %v12953_v46 = vld [vmem:[%s23577_s0 + $0x68] sm:$0xff] }
 0x2d2   :  { %16207 = vmatprep.mubr.msk.f32.mxu1 %vm279_vm1, %v2569_v50  ;;  %17078 = vmatprep.mubr.msk.f32.mxu0 %vm279_vm1, %v14016_v52  ;;  %v14047_v48 = vld [vmem:[%s23577_s0 + $0x3c9] sm:$0xff]  ;;  %v12954_v50 = vld [vmem:[%s23577_s0 + $0x78] sm:$0xff] }
 0x2d3   :  { %v14048_v52 = vld [vmem:[%s23577_s0 + $0x3d9] sm:$0xff] }
 0x2d5   :  { %16208 = vmatmul.mubr.msk.f32.gmra.mrb[104].mxu1 %vm279_vm1, %v2570_v54  ;;  %17079 = vmatmul.mubr.msk.f32.gmra.mrb[38].mxu0 %vm279_vm1, %v14017_v56  ;;  %v12955_v54 = vld [vmem:[%s23577_s0 + $0x80] sm:$0xff] }
 0x2d6   :  { %16210 = vmatprep.mubr.msk.f32.mxu1 %vm279_vm1, %v2571_v58  ;;  %17081 = vmatprep.mubr.msk.f32.mxu0 %vm279_vm1, %v14018_v60  ;;  %v14049_v56 = vld [vmem:[%s23577_s0 + $0x3e1] sm:$0xff]  ;;  %v12956_v58 = vld [vmem:[%s23577_s0 + $0x90] sm:$0xff] }
 0x2d7   :  { %v14050_v60 = vld [vmem:[%s23577_s0 + $0x3f1] sm:$0xff] }
 0x2d9   :  { %16211 = vmatmul.mubr.msk.f32.gmra.mrb[106].mxu1 %vm279_vm1, %v2572_v62  ;;  %17082 = vmatmul.mubr.msk.f32.gmra.mrb[40].mxu0 %vm279_vm1, %v14019_v16  ;;  %v12957_v62 = vld [vmem:[%s23577_s0 + $0x98] sm:$0xff] }
 0x2da   :  { %16213 = vmatprep.mubr.msk.f32.mxu1 %vm279_vm1, %v2573_v0  ;;  %17084 = vmatprep.mubr.msk.f32.mxu0 %vm279_vm1, %v14020_v2  ;;  %v14051_v16 = vld [vmem:[%s23577_s0 + $0x3f9] sm:$0xff]  ;;  %v12958_v0 = vld [vmem:[%s23577_s0 + $0xa8] sm:$0xff] }
 0x2db   :  { %v14052_v2 = vld [vmem:[%s23577_s0 + $0x409] sm:$0xff] }
 0x2dd   :  { %16214 = vmatmul.mubr.msk.f32.gmra.mrb[108].mxu1 %vm279_vm1, %v2574_v31  ;;  %17085 = vmatmul.mubr.msk.f32.gmra.mrb[42].mxu0 %vm279_vm1, %v14021_v6  ;;  %v12959_v31 = vld [vmem:[%s23577_s0 + $0xb0] sm:$0xff] }
 0x2de   :  { %16216 = vmatprep.mubr.msk.f32.mxu1 %vm279_vm1, %v2575_v4  ;;  %17087 = vmatprep.mubr.msk.f32.mxu0 %vm279_vm1, %v14022_v14  ;;  %v14053_v6 = vld [vmem:[%s23577_s0 + $0x411] sm:$0xff]  ;;  %v12960_v4 = vld [vmem:[%s23577_s0 + $0xc0] sm:$0xff] }
 0x2df   :  { %v14054_v14 = vld [vmem:[%s23577_s0 + $0x421] sm:$0xff] }
 0x2e1   :  { %16217 = vmatmul.mubr.msk.f32.gmra.mrb[110].mxu1 %vm279_vm1, %v2576_v8  ;;  %17088 = vmatmul.mubr.msk.f32.gmra.mrb[44].mxu0 %vm279_vm1, %v14023_v19  ;;  %v12961_v8 = vld [vmem:[%s23577_s0 + $0xc8] sm:$0xff] }
 0x2e2   :  { %16219 = vmatprep.mubr.msk.f32.mxu1 %vm279_vm1, %v2577_v39  ;;  %17090 = vmatprep.mubr.msk.f32.mxu0 %vm279_vm1, %v14024_v63  ;;  %v14055_v19 = vld [vmem:[%s23577_s0 + $0x429] sm:$0xff]  ;;  %v12962_v39 = vld [vmem:[%s23577_s0 + $0xd8] sm:$0xff] }
 0x2e3   :  { %v14056_v63 = vld [vmem:[%s23577_s0 + $0x439] sm:$0xff] }
 0x2e5   :  { %16220 = vmatmul.mubr.msk.f32.gmra.mrb[112].mxu1 %vm279_vm1, %v2578_v17  ;;  %17091 = vmatmul.mubr.msk.f32.gmra.mrb[46].mxu0 %vm279_vm1, %v14025_v21  ;;  %v12963_v17 = vld [vmem:[%s23577_s0 + $0xe0] sm:$0xff] }
 0x2e6   :  { %16222 = vmatprep.mubr.msk.f32.mxu1 %vm279_vm1, %v2579_v7  ;;  %17093 = vmatprep.mubr.msk.f32.mxu0 %vm279_vm1, %v14026_v25  ;;  %v14057_v21 = vld [vmem:[%s23577_s0 + $0x441] sm:$0xff]  ;;  %v12964_v7 = vld [vmem:[%s23577_s0 + $0xf0] sm:$0xff] }
 0x2e7   :  { %v14058_v25 = vld [vmem:[%s23577_s0 + $0x451] sm:$0xff] }
 0x2e9   :  { %16223 = vmatmul.mubr.msk.f32.gmra.mrb[114].mxu1 %vm279_vm1, %v2580_v29  ;;  %17094 = vmatmul.mubr.msk.f32.gmra.mrb[48].mxu0 %vm279_vm1, %v14027_v33  ;;  %v12965_v29 = vld [vmem:[%s23577_s0 + $0xf8] sm:$0xff] }
 0x2ea   :  { %16225 = vmatprep.mubr.msk.f32.mxu1 %vm279_vm1, %v2581_v37  ;;  %17096 = vmatprep.mubr.msk.f32.mxu0 %vm279_vm1, %v14028_v41  ;;  %v14059_v33 = vld [vmem:[%s23577_s0 + $0x459] sm:$0xff]  ;;  %v12966_v37 = vld [vmem:[%s23577_s0 + $0x108] sm:$0xff] }
 0x2eb   :  { %v14060_v41 = vld [vmem:[%s23577_s0 + $0x469] sm:$0xff] }
 0x2ed   :  { %16226 = vmatmul.mubr.msk.f32.gmra.mrb[116].mxu1 %vm279_vm1, %v2582_v45  ;;  %17097 = vmatmul.mubr.msk.f32.gmra.mrb[50].mxu0 %vm279_vm1, %v14029_v49  ;;  %v12967_v45 = vld [vmem:[%s23577_s0 + $0x110] sm:$0xff] }
 0x2ee   :  { %16228 = vmatprep.mubr.msk.f32.mxu1 %vm279_vm1, %v2583_v53  ;;  %17099 = vmatprep.mubr.msk.f32.mxu0 %vm279_vm1, %v14030_v57  ;;  %v14061_v49 = vld [vmem:[%s23577_s0 + $0x471] sm:$0xff]  ;;  %v12968_v53 = vld [vmem:[%s23577_s0 + $0x120] sm:$0xff] }
 0x2ef   :  { %v14062_v57 = vld [vmem:[%s23577_s0 + $0x481] sm:$0xff] }
 0x2f1   :  { %16229 = vmatmul.mubr.msk.f32.gmra.mrb[118].mxu1 %vm279_vm1, %v2584_v61  ;;  %17100 = vmatmul.mubr.msk.f32.gmra.mrb[52].mxu0 %vm279_vm1, %v14031_v1  ;;  %v12969_v61 = vld [vmem:[%s23577_s0 + $0x128] sm:$0xff] }
 0x2f2   :  { %16231 = vmatprep.mubr.msk.f32.mxu1 %vm279_vm1, %v2585_v5  ;;  %17102 = vmatprep.mubr.msk.f32.mxu0 %vm279_vm1, %v14032_v9  ;;  %v14063_v1 = vld [vmem:[%s23577_s0 + $0x489] sm:$0xff]  ;;  %v12970_v5 = vld [vmem:[%s23577_s0 + $0x138] sm:$0xff] }
 0x2f3   :  { %v14064_v9 = vld [vmem:[%s23577_s0 + $0x499] sm:$0xff] }
 0x2f5   :  { %16232 = vmatmul.mubr.msk.f32.gmra.mrb[120].mxu1 %vm279_vm1, %v2586_v11  ;;  %17103 = vmatmul.mubr.msk.f32.gmra.mrb[54].mxu0 %vm279_vm1, %v14033_v13  ;;  %v12971_v11 = vld [vmem:[%s23577_s0 + $0x140] sm:$0xff] }
 0x2f6   :  { %16234 = vmatprep.mubr.msk.f32.mxu1 %vm279_vm1, %v2587_v15  ;;  %17105 = vmatprep.mubr.msk.f32.mxu0 %vm279_vm1, %v14034_v18  ;;  %v14065_v13 = vld [vmem:[%s23577_s0 + $0x4a1] sm:$0xff]  ;;  %v12972_v15 = vld [vmem:[%s23577_s0 + $0x150] sm:$0xff] }
 0x2f7   :  { %v14066_v18 = vld [vmem:[%s23577_s0 + $0x4b1] sm:$0xff] }
 0x2f9   :  { %16235 = vmatmul.mubr.msk.f32.gmra.mrb[122].mxu1 %vm279_vm1, %v2588_v27  ;;  %17106 = vmatmul.mubr.msk.f32.gmra.mrb[56].mxu0 %vm279_vm1, %v14035_v35  ;;  %v12973_v27 = vld [vmem:[%s23577_s0 + $0x158] sm:$0xff] }
 0x2fa   :  { %16237 = vmatprep.mubr.msk.f32.mxu1 %vm279_vm1, %v2589_v43  ;;  %17108 = vmatprep.mubr.msk.f32.mxu0 %vm279_vm1, %v14036_v51  ;;  %v14067_v35 = vld [vmem:[%s23577_s0 + $0x4b9] sm:$0xff]  ;;  %v12974_v43 = vld [vmem:[%s23577_s0 + $0x168] sm:$0xff] }
 0x2fb   :  { %v14068_v51 = vld [vmem:[%s23577_s0 + $0x4c9] sm:$0xff] }
 0x2fd   :  { %16238 = vmatmul.mubr.msk.f32.gmra.mrb[124].mxu1 %vm279_vm1, %v2590_v59  ;;  %17109 = vmatmul.mubr.msk.f32.gmra.mrb[58].mxu0 %vm279_vm1, %v14037_v55  ;;  %v12975_v59 = vld [vmem:[%s23577_s0 + $0x170] sm:$0xff] }
 0x2fe   :  { %16240 = vmatprep.mubr.msk.f32.mxu1 %vm279_vm1, %v2591_v3  ;;  %17111 = vmatprep.mubr.msk.f32.mxu0 %vm279_vm1, %v14038_v10  ;;  %v14069_v55 = vld [vmem:[%s23577_s0 + $0x4d1] sm:$0xff]  ;;  %v12976_v3 = vld [vmem:[%s23577_s0 + $0x180] sm:$0xff] }
 0x2ff   :  { %v14070_v10 = vld [vmem:[%s23577_s0 + $0x4e1] sm:$0xff] }
 0x301   :  { %16241 = vmatmul.mubr.msk.f32.gmra.mrb[126].mxu1 %vm279_vm1, %v2592_v20  ;;  %17112 = vmatmul.mubr.msk.f32.gmra.mrb[60].mxu0 %vm279_vm1, %v14039_v23  ;;  %v12977_v20 = vld [vmem:[%s23577_s0 + $0x188] sm:$0xff] }
 0x302   :  { %16245 = vmatprep.mubr.msk.f32.mxu1 %vm279_vm1, %v12946_v22  ;;  %17114 = vmatprep.mubr.msk.f32.mxu0 %vm279_vm1, %v14040_v24  ;;  %v14071_v23 = vld [vmem:[%s23577_s0 + $0x4e9] sm:$0xff]  ;;  %v14072_v24 = vld [vmem:[%s23577_s0 + $0x4f9] sm:$0xff] }
 0x303   :  { %v12978_v22 = vld [vmem:[%s23577_s0 + $0x1c8] sm:$0xff] }
 0x305   :  { %16246 = vmatmul.mubr.msk.f32.vlgmr.msra.gmra.mrb[0].mxu1 %vm279_vm1, %v12947_v26  ;;  %17115 = vmatmul.mubr.msk.f32.gmra.mrb[62].mxu0 %vm279_vm1, %v14041_v28  ;;  %v12979_v26 = vld [vmem:[%s23577_s0 + $0x1d0] sm:$0xff]  ;;  %v14073_v28 = vld [vmem:[%s23577_s0 + $0x501] sm:$0xff] }
 0x306   :  { %16248 = vmatprep.mubr.msk.f32.mxu1 %vm279_vm1, %v12948_v30  ;;  %17117 = vmatprep.mubr.msk.f32.mxu0 %vm279_vm1, %v14042_v32  ;;  %v12980_v30 = vld [vmem:[%s23577_s0 + $0x1e0] sm:$0xff] }
 0x307   :  { %17418 = vmatpush3.msk.msra.mxu1 %vm664_vm0, %v20654_v12  ;;  %v12952_v12 = vld [vmem:[%s23577_s0 + $0x60] sm:$0xff] }
 0x308   :  { %v14074_v32 = vld [vmem:[%s23577_s0 + $0x541] sm:$0xff] }
 0x309   :  { %16249 = vmatmul.mubr.msk.f32.gmra.mrb[2].mxu1 %vm279_vm1, %v12949_v34  ;;  %17118 = vmatmul.mubr.msk.f32.gmra.mrb[64].mxu0 %vm279_vm1, %v14043_v36  ;;  %v12981_v34 = vld [vmem:[%s23577_s0 + $0x1e8] sm:$0xff] }
 0x30a   :  { %16251 = vmatprep.mubr.msk.f32.mxu1 %vm279_vm1, %v12950_v38  ;;  %17120 = vmatprep.mubr.msk.f32.mxu0 %vm279_vm1, %v14044_v40  ;;  %v14075_v36 = vld [vmem:[%s23577_s0 + $0x549] sm:$0xff]  ;;  %v12982_v38 = vld [vmem:[%s23577_s0 + $0x1f8] sm:$0xff] }
 0x30b   :  { %v14076_v40 = vld [vmem:[%s23577_s0 + $0x559] sm:$0xff] }
 0x30d   :  { %16252 = vmatmul.mubr.msk.f32.gmra.mrb[4].mxu1 %vm279_vm1, %v12951_v42  ;;  %17121 = vmatmul.mubr.msk.f32.gmra.mrb[66].mxu0 %vm279_vm1, %v14045_v47  ;;  %v12983_v42 = vld [vmem:[%s23577_s0 + $0x200] sm:$0xff] }
 0x30e   :  { %16254 = vmatprep.mubr.msk.f32.mxu1 %vm279_vm1, %v12952_v12  ;;  %17123 = vmatprep.mubr.msk.f32.mxu0 %vm279_vm1, %v14046_v44  ;;  %v14077_v47 = vld [vmem:[%s23577_s0 + $0x561] sm:$0xff]  ;;  %v12984_v12 = vld [vmem:[%s23577_s0 + $0x210] sm:$0xff] }
 0x30f   :  { %v14078_v44 = vld [vmem:[%s23577_s0 + $0x571] sm:$0xff] }
 0x311   :  { %16255 = vmatmul.mubr.msk.f32.gmra.mrb[6].mxu1 %vm279_vm1, %v12953_v46  ;;  %17124 = vmatmul.mubr.msk.f32.gmra.mrb[68].mxu0 %vm279_vm1, %v14047_v48  ;;  %v12985_v46 = vld [vmem:[%s23577_s0 + $0x218] sm:$0xff] }
 0x312   :  { %16257 = vmatprep.mubr.msk.f32.mxu1 %vm279_vm1, %v12954_v50  ;;  %17126 = vmatprep.mubr.msk.f32.mxu0 %vm279_vm1, %v14048_v52  ;;  %v14079_v48 = vld [vmem:[%s23577_s0 + $0x579] sm:$0xff]  ;;  %v12986_v50 = vld [vmem:[%s23577_s0 + $0x228] sm:$0xff] }
 0x313   :  { %v14080_v52 = vld [vmem:[%s23577_s0 + $0x589] sm:$0xff] }
 0x315   :  { %16258 = vmatmul.mubr.msk.f32.gmra.mrb[8].mxu1 %vm279_vm1, %v12955_v54  ;;  %17127 = vmatmul.mubr.msk.f32.gmra.mrb[70].mxu0 %vm279_vm1, %v14049_v56  ;;  %v12987_v54 = vld [vmem:[%s23577_s0 + $0x230] sm:$0xff] }
 0x316   :  { %16260 = vmatprep.mubr.msk.f32.mxu1 %vm279_vm1, %v12956_v58  ;;  %17129 = vmatprep.mubr.msk.f32.mxu0 %vm279_vm1, %v14050_v60  ;;  %v14081_v56 = vld [vmem:[%s23577_s0 + $0x591] sm:$0xff]  ;;  %v12988_v58 = vld [vmem:[%s23577_s0 + $0x240] sm:$0xff] }
 0x317   :  { %v14082_v60 = vld [vmem:[%s23577_s0 + $0x5a1] sm:$0xff] }
 0x319   :  { %16261 = vmatmul.mubr.msk.f32.gmra.mrb[10].mxu1 %vm279_vm1, %v12957_v62  ;;  %17130 = vmatmul.mubr.msk.f32.gmra.mrb[72].mxu0 %vm279_vm1, %v14051_v16  ;;  %v12989_v62 = vld [vmem:[%s23577_s0 + $0x248] sm:$0xff] }
 0x31a   :  { %16263 = vmatprep.mubr.msk.f32.mxu1 %vm279_vm1, %v12958_v0  ;;  %17132 = vmatprep.mubr.msk.f32.mxu0 %vm279_vm1, %v14052_v2  ;;  %v14083_v16 = vld [vmem:[%s23577_s0 + $0x5a9] sm:$0xff]  ;;  %v12990_v0 = vld [vmem:[%s23577_s0 + $0x258] sm:$0xff] }
 0x31b   :  { %v14084_v2 = vld [vmem:[%s23577_s0 + $0x5b9] sm:$0xff] }
 0x31d   :  { %16264 = vmatmul.mubr.msk.f32.gmra.mrb[12].mxu1 %vm279_vm1, %v12959_v31  ;;  %17133 = vmatmul.mubr.msk.f32.gmra.mrb[74].mxu0 %vm279_vm1, %v14053_v6  ;;  %v12991_v31 = vld [vmem:[%s23577_s0 + $0x260] sm:$0xff] }
 0x31e   :  { %16266 = vmatprep.mubr.msk.f32.mxu1 %vm279_vm1, %v12960_v4  ;;  %17135 = vmatprep.mubr.msk.f32.mxu0 %vm279_vm1, %v14054_v14  ;;  %v14085_v6 = vld [vmem:[%s23577_s0 + $0x5c1] sm:$0xff]  ;;  %v12992_v4 = vld [vmem:[%s23577_s0 + $0x270] sm:$0xff] }
 0x31f   :  { %v14086_v14 = vld [vmem:[%s23577_s0 + $0x5d1] sm:$0xff] }
 0x321   :  { %16267 = vmatmul.mubr.msk.f32.gmra.mrb[14].mxu1 %vm279_vm1, %v12961_v8  ;;  %17136 = vmatmul.mubr.msk.f32.gmra.mrb[76].mxu0 %vm279_vm1, %v14055_v19  ;;  %v12993_v8 = vld [vmem:[%s23577_s0 + $0x278] sm:$0xff] }
 0x322   :  { %16269 = vmatprep.mubr.msk.f32.mxu1 %vm279_vm1, %v12962_v39  ;;  %17138 = vmatprep.mubr.msk.f32.mxu0 %vm279_vm1, %v14056_v63  ;;  %v14087_v19 = vld [vmem:[%s23577_s0 + $0x5d9] sm:$0xff]  ;;  %v12994_v39 = vld [vmem:[%s23577_s0 + $0x288] sm:$0xff] }
 0x323   :  { %v14088_v63 = vld [vmem:[%s23577_s0 + $0x5e9] sm:$0xff] }
 0x325   :  { %16270 = vmatmul.mubr.msk.f32.gmra.mrb[16].mxu1 %vm279_vm1, %v12963_v17  ;;  %17139 = vmatmul.mubr.msk.f32.gmra.mrb[78].mxu0 %vm279_vm1, %v14057_v21  ;;  %v12995_v17 = vld [vmem:[%s23577_s0 + $0x290] sm:$0xff] }
 0x326   :  { %16272 = vmatprep.mubr.msk.f32.mxu1 %vm279_vm1, %v12964_v7  ;;  %17141 = vmatprep.mubr.msk.f32.mxu0 %vm279_vm1, %v14058_v25  ;;  %v14089_v21 = vld [vmem:[%s23577_s0 + $0x5f1] sm:$0xff]  ;;  %v12996_v7 = vld [vmem:[%s23577_s0 + $0x2a0] sm:$0xff] }
 0x327   :  { %v14090_v25 = vld [vmem:[%s23577_s0 + $0x601] sm:$0xff] }
 0x329   :  { %16273 = vmatmul.mubr.msk.f32.gmra.mrb[18].mxu1 %vm279_vm1, %v12965_v29  ;;  %17142 = vmatmul.mubr.msk.f32.gmra.mrb[80].mxu0 %vm279_vm1, %v14059_v33  ;;  %v12997_v29 = vld [vmem:[%s23577_s0 + $0x2a8] sm:$0xff] }
 0x32a   :  { %16275 = vmatprep.mubr.msk.f32.mxu1 %vm279_vm1, %v12966_v37  ;;  %17144 = vmatprep.mubr.msk.f32.mxu0 %vm279_vm1, %v14060_v41  ;;  %v14091_v33 = vld [vmem:[%s23577_s0 + $0x609] sm:$0xff]  ;;  %v12998_v37 = vld [vmem:[%s23577_s0 + $0x2b8] sm:$0xff] }
 0x32b   :  { %v14092_v41 = vld [vmem:[%s23577_s0 + $0x619] sm:$0xff] }
 0x32d   :  { %16276 = vmatmul.mubr.msk.f32.gmra.mrb[20].mxu1 %vm279_vm1, %v12967_v45  ;;  %17145 = vmatmul.mubr.msk.f32.gmra.mrb[82].mxu0 %vm279_vm1, %v14061_v49  ;;  %v12999_v45 = vld [vmem:[%s23577_s0 + $0x2c0] sm:$0xff] }
 0x32e   :  { %16278 = vmatprep.mubr.msk.f32.mxu1 %vm279_vm1, %v12968_v53  ;;  %17147 = vmatprep.mubr.msk.f32.mxu0 %vm279_vm1, %v14062_v57  ;;  %v14093_v49 = vld [vmem:[%s23577_s0 + $0x621] sm:$0xff]  ;;  %v13000_v53 = vld [vmem:[%s23577_s0 + $0x2d0] sm:$0xff] }
 0x32f   :  { %v14094_v57 = vld [vmem:[%s23577_s0 + $0x631] sm:$0xff] }
 0x331   :  { %16279 = vmatmul.mubr.msk.f32.gmra.mrb[22].mxu1 %vm279_vm1, %v12969_v61  ;;  %17148 = vmatmul.mubr.msk.f32.gmra.mrb[84].mxu0 %vm279_vm1, %v14063_v1  ;;  %v13001_v61 = vld [vmem:[%s23577_s0 + $0x2d8] sm:$0xff] }
 0x332   :  { %16281 = vmatprep.mubr.msk.f32.mxu1 %vm279_vm1, %v12970_v5  ;;  %17150 = vmatprep.mubr.msk.f32.mxu0 %vm279_vm1, %v14064_v9  ;;  %v14095_v1 = vld [vmem:[%s23577_s0 + $0x639] sm:$0xff]  ;;  %v13002_v5 = vld [vmem:[%s23577_s0 + $0x2e8] sm:$0xff] }
 0x333   :  { %v14096_v9 = vld [vmem:[%s23577_s0 + $0x649] sm:$0xff] }
 0x335   :  { %16282 = vmatmul.mubr.msk.f32.gmra.mrb[24].mxu1 %vm279_vm1, %v12971_v11  ;;  %17151 = vmatmul.mubr.msk.f32.gmra.mrb[86].mxu0 %vm279_vm1, %v14065_v13  ;;  %v13003_v11 = vld [vmem:[%s23577_s0 + $0x2f0] sm:$0xff] }
 0x336   :  { %16284 = vmatprep.mubr.msk.f32.mxu1 %vm279_vm1, %v12972_v15  ;;  %17153 = vmatprep.mubr.msk.f32.mxu0 %vm279_vm1, %v14066_v18  ;;  %v14097_v13 = vld [vmem:[%s23577_s0 + $0x651] sm:$0xff]  ;;  %v13004_v15 = vld [vmem:[%s23577_s0 + $0x300] sm:$0xff] }
 0x337   :  { %v14098_v18 = vld [vmem:[%s23577_s0 + $0x661] sm:$0xff] }
 0x339   :  { %16285 = vmatmul.mubr.msk.f32.gmra.mrb[26].mxu1 %vm279_vm1, %v12973_v27  ;;  %17154 = vmatmul.mubr.msk.f32.gmra.mrb[88].mxu0 %vm279_vm1, %v14067_v35  ;;  %v13005_v27 = vld [vmem:[%s23577_s0 + $0x308] sm:$0xff] }
 0x33a   :  { %16287 = vmatprep.mubr.msk.f32.mxu1 %vm279_vm1, %v12974_v43  ;;  %17156 = vmatprep.mubr.msk.f32.mxu0 %vm279_vm1, %v14068_v51  ;;  %v14099_v35 = vld [vmem:[%s23577_s0 + $0x669] sm:$0xff]  ;;  %v13006_v43 = vld [vmem:[%s23577_s0 + $0x318] sm:$0xff] }
 0x33b   :  { %v14100_v51 = vld [vmem:[%s23577_s0 + $0x679] sm:$0xff] }
 0x33d   :  { %16288 = vmatmul.mubr.msk.f32.gmra.mrb[28].mxu1 %vm279_vm1, %v12975_v59  ;;  %17157 = vmatmul.mubr.msk.f32.gmra.mrb[90].mxu0 %vm279_vm1, %v14069_v55  ;;  %v13007_v59 = vld [vmem:[%s23577_s0 + $0x320] sm:$0xff] }
 0x33e   :  { %16290 = vmatprep.mubr.msk.f32.mxu1 %vm279_vm1, %v12976_v3  ;;  %17159 = vmatprep.mubr.msk.f32.mxu0 %vm279_vm1, %v14070_v10  ;;  %v14101_v55 = vld [vmem:[%s23577_s0 + $0x681] sm:$0xff]  ;;  %v13008_v3 = vld [vmem:[%s23577_s0 + $0x330] sm:$0xff] }
 0x33f   :  { %v14102_v10 = vld [vmem:[%s23577_s0 + $0x691] sm:$0xff] }
 0x341   :  { %16291 = vmatmul.mubr.msk.f32.gmra.mrb[30].mxu1 %vm279_vm1, %v12977_v20  ;;  %17160 = vmatmul.mubr.msk.f32.gmra.mrb[92].mxu0 %vm279_vm1, %v14071_v23  ;;  %v13009_v20 = vld [vmem:[%s23577_s0 + $0x338] sm:$0xff] }
 0x342   :  { %16293 = vmatprep.mubr.msk.f32.mxu1 %vm279_vm1, %v12978_v22  ;;  %17162 = vmatprep.mubr.msk.f32.mxu0 %vm279_vm1, %v14072_v24  ;;  %v14103_v23 = vld [vmem:[%s23577_s0 + $0x699] sm:$0xff]  ;;  %v14104_v24 = vld [vmem:[%s23577_s0 + $0x6a9] sm:$0xff] }
 0x343   :  { %v13010_v22 = vld [vmem:[%s23577_s0 + $0x378] sm:$0xff] }
 0x345   :  { %16294 = vmatmul.mubr.msk.f32.gmra.mrb[32].mxu1 %vm279_vm1, %v12979_v26  ;;  %17163 = vmatmul.mubr.msk.f32.gmra.mrb[94].mxu0 %vm279_vm1, %v14073_v28  ;;  %v13011_v26 = vld [vmem:[%s23577_s0 + $0x380] sm:$0xff]  ;;  %v14105_v28 = vld [vmem:[%s23577_s0 + $0x6b1] sm:$0xff] }
 0x346   :  { %16296 = vmatprep.mubr.msk.f32.mxu1 %vm279_vm1, %v12980_v30  ;;  %17165 = vmatprep.mubr.msk.f32.mxu0 %vm279_vm1, %v14074_v32  ;;  %v13012_v30 = vld [vmem:[%s23577_s0 + $0x390] sm:$0xff] }
 0x347   :  { %v14236_v32 = vld [vmem:[%s23577_s0 + $0x32] sm:$0xff] }
 0x349   :  { %16297 = vmatmul.mubr.msk.f32.gmra.mrb[34].mxu1 %vm279_vm1, %v12981_v34  ;;  %17166 = vmatmul.mubr.msk.f32.gmra.mrb[96].mxu0 %vm279_vm1, %v14075_v36  ;;  %v13013_v34 = vld [vmem:[%s23577_s0 + $0x398] sm:$0xff] }
 0x34a   :  { %16299 = vmatprep.mubr.msk.f32.mxu1 %vm279_vm1, %v12982_v38  ;;  %17168 = vmatprep.mubr.msk.f32.mxu0 %vm279_vm1, %v14076_v40  ;;  %v14237_v36 = vld [vmem:[%s23577_s0 + $0x3a] sm:$0xff]  ;;  %v13014_v38 = vld [vmem:[%s23577_s0 + $0x3a8] sm:$0xff] }
 0x34b   :  { %v14238_v40 = vld [vmem:[%s23577_s0 + $0x4a] sm:$0xff] }
 0x34d   :  { %16300 = vmatmul.mubr.msk.f32.gmra.mrb[36].mxu1 %vm279_vm1, %v12983_v42  ;;  %17169 = vmatmul.mubr.msk.f32.gmra.mrb[98].mxu0 %vm279_vm1, %v14077_v47  ;;  %v13015_v42 = vld [vmem:[%s23577_s0 + $0x3b0] sm:$0xff] }
 0x34e   :  { %16302 = vmatprep.mubr.msk.f32.mxu1 %vm279_vm1, %v12984_v12  ;;  %17171 = vmatprep.mubr.msk.f32.mxu0 %vm279_vm1, %v14078_v44  ;;  %v14239_v47 = vld [vmem:[%s23577_s0 + $0x52] sm:$0xff]  ;;  %v13016_v12 = vld [vmem:[%s23577_s0 + $0x3c0] sm:$0xff] }
 0x34f   :  { %v14240_v44 = vld [vmem:[%s23577_s0 + $0x62] sm:$0xff] }
 0x351   :  { %16303 = vmatmul.mubr.msk.f32.gmra.mrb[38].mxu1 %vm279_vm1, %v12985_v46  ;;  %17172 = vmatmul.mubr.msk.f32.gmra.mrb[100].mxu0 %vm279_vm1, %v14079_v48  ;;  %v13017_v46 = vld [vmem:[%s23577_s0 + $0x3c8] sm:$0xff] }
 0x352   :  { %16305 = vmatprep.mubr.msk.f32.mxu1 %vm279_vm1, %v12986_v50  ;;  %17174 = vmatprep.mubr.msk.f32.mxu0 %vm279_vm1, %v14080_v52  ;;  %v14241_v48 = vld [vmem:[%s23577_s0 + $0x6a] sm:$0xff]  ;;  %v13018_v50 = vld [vmem:[%s23577_s0 + $0x3d8] sm:$0xff] }
 0x353   :  { %v14242_v52 = vld [vmem:[%s23577_s0 + $0x7a] sm:$0xff] }
 0x355   :  { %16306 = vmatmul.mubr.msk.f32.gmra.mrb[40].mxu1 %vm279_vm1, %v12987_v54  ;;  %17175 = vmatmul.mubr.msk.f32.gmra.mrb[102].mxu0 %vm279_vm1, %v14081_v56  ;;  %v13019_v54 = vld [vmem:[%s23577_s0 + $0x3e0] sm:$0xff] }
 0x356   :  { %16308 = vmatprep.mubr.msk.f32.mxu1 %vm279_vm1, %v12988_v58  ;;  %17177 = vmatprep.mubr.msk.f32.mxu0 %vm279_vm1, %v14082_v60  ;;  %v14243_v56 = vld [vmem:[%s23577_s0 + $0x82] sm:$0xff]  ;;  %v13020_v58 = vld [vmem:[%s23577_s0 + $0x3f0] sm:$0xff] }
 0x357   :  { %v14244_v60 = vld [vmem:[%s23577_s0 + $0x92] sm:$0xff] }
 0x359   :  { %16309 = vmatmul.mubr.msk.f32.gmra.mrb[42].mxu1 %vm279_vm1, %v12989_v62  ;;  %17178 = vmatmul.mubr.msk.f32.gmra.mrb[104].mxu0 %vm279_vm1, %v14083_v16  ;;  %v13021_v62 = vld [vmem:[%s23577_s0 + $0x3f8] sm:$0xff] }
 0x35a   :  { %16311 = vmatprep.mubr.msk.f32.mxu1 %vm279_vm1, %v12990_v0  ;;  %17180 = vmatprep.mubr.msk.f32.mxu0 %vm279_vm1, %v14084_v2  ;;  %v14245_v16 = vld [vmem:[%s23577_s0 + $0x9a] sm:$0xff]  ;;  %v13022_v0 = vld [vmem:[%s23577_s0 + $0x408] sm:$0xff] }
 0x35b   :  { %v14246_v2 = vld [vmem:[%s23577_s0 + $0xaa] sm:$0xff] }
 0x35d   :  { %16312 = vmatmul.mubr.msk.f32.gmra.mrb[44].mxu1 %vm279_vm1, %v12991_v31  ;;  %17181 = vmatmul.mubr.msk.f32.gmra.mrb[106].mxu0 %vm279_vm1, %v14085_v6  ;;  %v13023_v31 = vld [vmem:[%s23577_s0 + $0x410] sm:$0xff] }
 0x35e   :  { %16314 = vmatprep.mubr.msk.f32.mxu1 %vm279_vm1, %v12992_v4  ;;  %17183 = vmatprep.mubr.msk.f32.mxu0 %vm279_vm1, %v14086_v14  ;;  %v14247_v6 = vld [vmem:[%s23577_s0 + $0xb2] sm:$0xff]  ;;  %v13024_v4 = vld [vmem:[%s23577_s0 + $0x420] sm:$0xff] }
 0x35f   :  { %v14248_v14 = vld [vmem:[%s23577_s0 + $0xc2] sm:$0xff] }
 0x361   :  { %16315 = vmatmul.mubr.msk.f32.gmra.mrb[46].mxu1 %vm279_vm1, %v12993_v8  ;;  %17184 = vmatmul.mubr.msk.f32.gmra.mrb[108].mxu0 %vm279_vm1, %v14087_v19  ;;  %v13025_v8 = vld [vmem:[%s23577_s0 + $0x428] sm:$0xff] }
 0x362   :  { %16317 = vmatprep.mubr.msk.f32.mxu1 %vm279_vm1, %v12994_v39  ;;  %17186 = vmatprep.mubr.msk.f32.mxu0 %vm279_vm1, %v14088_v63  ;;  %v14249_v19 = vld [vmem:[%s23577_s0 + $0xca] sm:$0xff]  ;;  %v13026_v39 = vld [vmem:[%s23577_s0 + $0x438] sm:$0xff] }
 0x363   :  { %v14250_v63 = vld [vmem:[%s23577_s0 + $0xda] sm:$0xff] }
 0x365   :  { %16318 = vmatmul.mubr.msk.f32.gmra.mrb[48].mxu1 %vm279_vm1, %v12995_v17  ;;  %17187 = vmatmul.mubr.msk.f32.gmra.mrb[110].mxu0 %vm279_vm1, %v14089_v21  ;;  %v13027_v17 = vld [vmem:[%s23577_s0 + $0x440] sm:$0xff] }
 0x366   :  { %16320 = vmatprep.mubr.msk.f32.mxu1 %vm279_vm1, %v12996_v7  ;;  %17189 = vmatprep.mubr.msk.f32.mxu0 %vm279_vm1, %v14090_v25  ;;  %v14251_v21 = vld [vmem:[%s23577_s0 + $0xe2] sm:$0xff]  ;;  %v13028_v7 = vld [vmem:[%s23577_s0 + $0x450] sm:$0xff] }
 0x367   :  { %v14252_v25 = vld [vmem:[%s23577_s0 + $0xf2] sm:$0xff] }
 0x369   :  { %16321 = vmatmul.mubr.msk.f32.gmra.mrb[50].mxu1 %vm279_vm1, %v12997_v29  ;;  %17190 = vmatmul.mubr.msk.f32.gmra.mrb[112].mxu0 %vm279_vm1, %v14091_v33  ;;  %v13029_v29 = vld [vmem:[%s23577_s0 + $0x458] sm:$0xff] }
 0x36a   :  { %16323 = vmatprep.mubr.msk.f32.mxu1 %vm279_vm1, %v12998_v37  ;;  %17192 = vmatprep.mubr.msk.f32.mxu0 %vm279_vm1, %v14092_v41  ;;  %v14253_v33 = vld [vmem:[%s23577_s0 + $0xfa] sm:$0xff]  ;;  %v13030_v37 = vld [vmem:[%s23577_s0 + $0x468] sm:$0xff] }
 0x36b   :  { %v14254_v41 = vld [vmem:[%s23577_s0 + $0x10a] sm:$0xff] }
 0x36d   :  { %16324 = vmatmul.mubr.msk.f32.gmra.mrb[52].mxu1 %vm279_vm1, %v12999_v45  ;;  %17193 = vmatmul.mubr.msk.f32.gmra.mrb[114].mxu0 %vm279_vm1, %v14093_v49  ;;  %v13031_v45 = vld [vmem:[%s23577_s0 + $0x470] sm:$0xff] }
 0x36e   :  { %16326 = vmatprep.mubr.msk.f32.mxu1 %vm279_vm1, %v13000_v53  ;;  %17195 = vmatprep.mubr.msk.f32.mxu0 %vm279_vm1, %v14094_v57  ;;  %v14255_v49 = vld [vmem:[%s23577_s0 + $0x112] sm:$0xff]  ;;  %v13032_v53 = vld [vmem:[%s23577_s0 + $0x480] sm:$0xff] }
 0x36f   :  { %v14256_v57 = vld [vmem:[%s23577_s0 + $0x122] sm:$0xff] }
 0x371   :  { %16327 = vmatmul.mubr.msk.f32.gmra.mrb[54].mxu1 %vm279_vm1, %v13001_v61  ;;  %17196 = vmatmul.mubr.msk.f32.gmra.mrb[116].mxu0 %vm279_vm1, %v14095_v1  ;;  %v13033_v61 = vld [vmem:[%s23577_s0 + $0x488] sm:$0xff] }
 0x372   :  { %16329 = vmatprep.mubr.msk.f32.mxu1 %vm279_vm1, %v13002_v5  ;;  %17198 = vmatprep.mubr.msk.f32.mxu0 %vm279_vm1, %v14096_v9  ;;  %v14257_v1 = vld [vmem:[%s23577_s0 + $0x12a] sm:$0xff]  ;;  %v13034_v5 = vld [vmem:[%s23577_s0 + $0x498] sm:$0xff] }
 0x373   :  { %v14258_v9 = vld [vmem:[%s23577_s0 + $0x13a] sm:$0xff] }
 0x375   :  { %16330 = vmatmul.mubr.msk.f32.gmra.mrb[56].mxu1 %vm279_vm1, %v13003_v11  ;;  %17199 = vmatmul.mubr.msk.f32.gmra.mrb[118].mxu0 %vm279_vm1, %v14097_v13  ;;  %v13035_v11 = vld [vmem:[%s23577_s0 + $0x4a0] sm:$0xff] }
 0x376   :  { %16332 = vmatprep.mubr.msk.f32.mxu1 %vm279_vm1, %v13004_v15  ;;  %17201 = vmatprep.mubr.msk.f32.mxu0 %vm279_vm1, %v14098_v18  ;;  %v14259_v13 = vld [vmem:[%s23577_s0 + $0x142] sm:$0xff]  ;;  %v13036_v15 = vld [vmem:[%s23577_s0 + $0x4b0] sm:$0xff] }
 0x377   :  { %v14260_v18 = vld [vmem:[%s23577_s0 + $0x152] sm:$0xff] }
 0x379   :  { %16333 = vmatmul.mubr.msk.f32.gmra.mrb[58].mxu1 %vm279_vm1, %v13005_v27  ;;  %17202 = vmatmul.mubr.msk.f32.gmra.mrb[120].mxu0 %vm279_vm1, %v14099_v35  ;;  %v13037_v27 = vld [vmem:[%s23577_s0 + $0x4b8] sm:$0xff] }
 0x37a   :  { %16335 = vmatprep.mubr.msk.f32.mxu1 %vm279_vm1, %v13006_v43  ;;  %17204 = vmatprep.mubr.msk.f32.mxu0 %vm279_vm1, %v14100_v51  ;;  %v14261_v35 = vld [vmem:[%s23577_s0 + $0x15a] sm:$0xff]  ;;  %v13038_v43 = vld [vmem:[%s23577_s0 + $0x4c8] sm:$0xff] }
 0x37b   :  { %v14262_v51 = vld [vmem:[%s23577_s0 + $0x16a] sm:$0xff] }
 0x37d   :  { %16336 = vmatmul.mubr.msk.f32.gmra.mrb[60].mxu1 %vm279_vm1, %v13007_v59  ;;  %17205 = vmatmul.mubr.msk.f32.gmra.mrb[122].mxu0 %vm279_vm1, %v14101_v55  ;;  %v13039_v59 = vld [vmem:[%s23577_s0 + $0x4d0] sm:$0xff] }
 0x37e   :  { %16338 = vmatprep.mubr.msk.f32.mxu1 %vm279_vm1, %v13008_v3  ;;  %17207 = vmatprep.mubr.msk.f32.mxu0 %vm279_vm1, %v14102_v10  ;;  %v14263_v55 = vld [vmem:[%s23577_s0 + $0x172] sm:$0xff]  ;;  %v13040_v3 = vld [vmem:[%s23577_s0 + $0x4e0] sm:$0xff] }
 0x37f   :  { %v14264_v10 = vld [vmem:[%s23577_s0 + $0x182] sm:$0xff] }
 0x381   :  { %16339 = vmatmul.mubr.msk.f32.gmra.mrb[62].mxu1 %vm279_vm1, %v13009_v20  ;;  %17208 = vmatmul.mubr.msk.f32.gmra.mrb[124].mxu0 %vm279_vm1, %v14103_v23  ;;  %v13041_v20 = vld [vmem:[%s23577_s0 + $0x4e8] sm:$0xff] }
 0x382   :  { %16341 = vmatprep.mubr.msk.f32.mxu1 %vm279_vm1, %v13010_v22  ;;  %17210 = vmatprep.mubr.msk.f32.mxu0 %vm279_vm1, %v14104_v24  ;;  %v14265_v23 = vld [vmem:[%s23577_s0 + $0x18a] sm:$0xff]  ;;  %v14266_v24 = vld [vmem:[%s23577_s0 + $0x19a] sm:$0xff] }
 0x383   :  { %v13042_v22 = vld [vmem:[%s23577_s0 + $0x528] sm:$0xff] }
 0x385   :  { %16342 = vmatmul.mubr.msk.f32.gmra.mrb[64].mxu1 %vm279_vm1, %v13011_v26  ;;  %17211 = vmatmul.mubr.msk.f32.gmra.mrb[126].mxu0 %vm279_vm1, %v14105_v28  ;;  %v13043_v26 = vld [vmem:[%s23577_s0 + $0x530] sm:$0xff]  ;;  %v14267_v28 = vld [vmem:[%s23577_s0 + $0x1a2] sm:$0xff] }
 0x386   :  { %16344 = vmatprep.mubr.msk.f32.mxu1 %vm279_vm1, %v13012_v30  ;;  %17215 = vmatprep.mubr.msk.f32.mxu0 %vm279_vm1, %v14236_v32  ;;  %v13044_v30 = vld [vmem:[%s23577_s0 + $0x540] sm:$0xff] }
 0x387   :  { %v14268_v32 = vld [vmem:[%s23577_s0 + $0x1e2] sm:$0xff] }
 0x389   :  { %16345 = vmatmul.mubr.msk.f32.gmra.mrb[66].mxu1 %vm279_vm1, %v13013_v34  ;;  %17216 = vmatmul.mubr.msk.f32.vlgmr.msra.gmra.mrb[0].mxu0 %vm279_vm1, %v14237_v36  ;;  %v13045_v34 = vld [vmem:[%s23577_s0 + $0x548] sm:$0xff] }
 0x38a   :  { %16347 = vmatprep.mubr.msk.f32.mxu1 %vm279_vm1, %v13014_v38  ;;  %17218 = vmatprep.mubr.msk.f32.mxu0 %vm279_vm1, %v14238_v40  ;;  %v14269_v36 = vld [vmem:[%s23577_s0 + $0x1ea] sm:$0xff]  ;;  %v13046_v38 = vld [vmem:[%s23577_s0 + $0x558] sm:$0xff] }
 0x38b   :  { %v14270_v40 = vld [vmem:[%s23577_s0 + $0x1fa] sm:$0xff] }
 0x38d   :  { %16348 = vmatmul.mubr.msk.f32.gmra.mrb[68].mxu1 %vm279_vm1, %v13015_v42  ;;  %17219 = vmatmul.mubr.msk.f32.gmra.mrb[2].mxu0 %vm279_vm1, %v14239_v47  ;;  %v13047_v42 = vld [vmem:[%s23577_s0 + $0x560] sm:$0xff] }
 0x38e   :  { %16350 = vmatprep.mubr.msk.f32.mxu1 %vm279_vm1, %v13016_v12  ;;  %17221 = vmatprep.mubr.msk.f32.mxu0 %vm279_vm1, %v14240_v44  ;;  %v14271_v47 = vld [vmem:[%s23577_s0 + $0x202] sm:$0xff]  ;;  %v13048_v12 = vld [vmem:[%s23577_s0 + $0x570] sm:$0xff] }
 0x38f   :  { %v14272_v44 = vld [vmem:[%s23577_s0 + $0x212] sm:$0xff] }
 0x391   :  { %16351 = vmatmul.mubr.msk.f32.gmra.mrb[70].mxu1 %vm279_vm1, %v13017_v46  ;;  %17222 = vmatmul.mubr.msk.f32.gmra.mrb[4].mxu0 %vm279_vm1, %v14241_v48  ;;  %v13049_v46 = vld [vmem:[%s23577_s0 + $0x578] sm:$0xff] }
 0x392   :  { %16353 = vmatprep.mubr.msk.f32.mxu1 %vm279_vm1, %v13018_v50  ;;  %17224 = vmatprep.mubr.msk.f32.mxu0 %vm279_vm1, %v14242_v52  ;;  %v14273_v48 = vld [vmem:[%s23577_s0 + $0x21a] sm:$0xff]  ;;  %v13050_v50 = vld [vmem:[%s23577_s0 + $0x588] sm:$0xff] }
 0x393   :  { %v14274_v52 = vld [vmem:[%s23577_s0 + $0x22a] sm:$0xff] }
 0x395   :  { %16354 = vmatmul.mubr.msk.f32.gmra.mrb[72].mxu1 %vm279_vm1, %v13019_v54  ;;  %17225 = vmatmul.mubr.msk.f32.gmra.mrb[6].mxu0 %vm279_vm1, %v14243_v56  ;;  %v13051_v54 = vld [vmem:[%s23577_s0 + $0x590] sm:$0xff] }
 0x396   :  { %16356 = vmatprep.mubr.msk.f32.mxu1 %vm279_vm1, %v13020_v58  ;;  %17227 = vmatprep.mubr.msk.f32.mxu0 %vm279_vm1, %v14244_v60  ;;  %v14275_v56 = vld [vmem:[%s23577_s0 + $0x232] sm:$0xff]  ;;  %v13052_v58 = vld [vmem:[%s23577_s0 + $0x5a0] sm:$0xff] }
 0x397   :  { %v14276_v60 = vld [vmem:[%s23577_s0 + $0x242] sm:$0xff] }
 0x399   :  { %16357 = vmatmul.mubr.msk.f32.gmra.mrb[74].mxu1 %vm279_vm1, %v13021_v62  ;;  %17228 = vmatmul.mubr.msk.f32.gmra.mrb[8].mxu0 %vm279_vm1, %v14245_v16  ;;  %v13053_v62 = vld [vmem:[%s23577_s0 + $0x5a8] sm:$0xff] }
 0x39a   :  { %16359 = vmatprep.mubr.msk.f32.mxu1 %vm279_vm1, %v13022_v0  ;;  %17230 = vmatprep.mubr.msk.f32.mxu0 %vm279_vm1, %v14246_v2  ;;  %v14277_v16 = vld [vmem:[%s23577_s0 + $0x24a] sm:$0xff]  ;;  %v13054_v0 = vld [vmem:[%s23577_s0 + $0x5b8] sm:$0xff] }
 0x39b   :  { %v14278_v2 = vld [vmem:[%s23577_s0 + $0x25a] sm:$0xff] }
 0x39d   :  { %16360 = vmatmul.mubr.msk.f32.gmra.mrb[76].mxu1 %vm279_vm1, %v13023_v31  ;;  %17231 = vmatmul.mubr.msk.f32.gmra.mrb[10].mxu0 %vm279_vm1, %v14247_v6 }
 0x39e   :  { %16362 = vmatprep.mubr.msk.f32.mxu1 %vm279_vm1, %v13024_v4  ;;  %17233 = vmatprep.mubr.msk.f32.mxu0 %vm279_vm1, %v14248_v14  ;;  %v13055_v4 = vld [vmem:[%s23577_s0 + $0x5c0] sm:$0xff] }
 0x39f   :  { %v14279_v14 = vld [vmem:[%s23577_s0 + $0x262] sm:$0xff] }
 0x3a1   :  { %16363 = vmatmul.mubr.msk.f32.gmra.mrb[78].mxu1 %vm279_vm1, %v13025_v8  ;;  %17234 = vmatmul.mubr.msk.f32.gmra.mrb[12].mxu0 %vm279_vm1, %v14249_v19  ;;  %v13056_v8 = vld [vmem:[%s23577_s0 + $0x5d0] sm:$0xff] }
 0x3a2   :  { %16365 = vmatprep.mubr.msk.f32.mxu1 %vm279_vm1, %v13026_v39  ;;  %17236 = vmatprep.mubr.msk.f32.mxu0 %vm279_vm1, %v14250_v63  ;;  %v14280_v19 = vld [vmem:[%s23577_s0 + $0x272] sm:$0xff] }
 0x3a5   :  { %16366 = vmatmul.mubr.msk.f32.gmra.mrb[80].mxu1 %vm279_vm1, %v13027_v17  ;;  %17237 = vmatmul.mubr.msk.f32.gmra.mrb[14].mxu0 %vm279_vm1, %v14251_v21  ;;  %v13057_v17 = vld [vmem:[%s23577_s0 + $0x5d8] sm:$0xff] }
 0x3a6   :  { %16368 = vmatprep.mubr.msk.f32.mxu1 %vm279_vm1, %v13028_v7  ;;  %17239 = vmatprep.mubr.msk.f32.mxu0 %vm279_vm1, %v14252_v25  ;;  %v14281_v21 = vld [vmem:[%s23577_s0 + $0x27a] sm:$0xff]  ;;  %v13058_v7 = vld [vmem:[%s23577_s0 + $0x5e8] sm:$0xff] }
 0x3a7   :  { %v14282_v25 = vld [vmem:[%s23577_s0 + $0x28a] sm:$0xff] }
 0x3a9   :  { %16369 = vmatmul.mubr.msk.f32.gmra.mrb[82].mxu1 %vm279_vm1, %v13029_v29  ;;  %17240 = vmatmul.mubr.msk.f32.gmra.mrb[16].mxu0 %vm279_vm1, %v14253_v33 }
 0x3aa   :  { %16371 = vmatprep.mubr.msk.f32.mxu1 %vm279_vm1, %v13030_v37  ;;  %17242 = vmatprep.mubr.msk.f32.mxu0 %vm279_vm1, %v14254_v41  ;;  %v13059_v37 = vld [vmem:[%s23577_s0 + $0x5f0] sm:$0xff] }
 0x3ab   :  { %v14283_v41 = vld [vmem:[%s23577_s0 + $0x292] sm:$0xff] }
 0x3ad   :  { %16372 = vmatmul.mubr.msk.f32.gmra.mrb[84].mxu1 %vm279_vm1, %v13031_v45  ;;  %17243 = vmatmul.mubr.msk.f32.gmra.mrb[18].mxu0 %vm279_vm1, %v14255_v49  ;;  %v13060_v45 = vld [vmem:[%s23577_s0 + $0x600] sm:$0xff] }
 0x3ae   :  { %16374 = vmatprep.mubr.msk.f32.mxu1 %vm279_vm1, %v13032_v53  ;;  %17245 = vmatprep.mubr.msk.f32.mxu0 %vm279_vm1, %v14256_v57  ;;  %v14284_v49 = vld [vmem:[%s23577_s0 + $0x2a2] sm:$0xff] }
 0x3b1   :  { %16375 = vmatmul.mubr.msk.f32.gmra.mrb[86].mxu1 %vm279_vm1, %v13033_v61  ;;  %17246 = vmatmul.mubr.msk.f32.gmra.mrb[20].mxu0 %vm279_vm1, %v14257_v1  ;;  %v13061_v61 = vld [vmem:[%s23577_s0 + $0x608] sm:$0xff] }
 0x3b2   :  { %16377 = vmatprep.mubr.msk.f32.mxu1 %vm279_vm1, %v13034_v5  ;;  %17248 = vmatprep.mubr.msk.f32.mxu0 %vm279_vm1, %v14258_v9  ;;  %v14285_v1 = vld [vmem:[%s23577_s0 + $0x2aa] sm:$0xff]  ;;  %v13062_v5 = vld [vmem:[%s23577_s0 + $0x618] sm:$0xff] }
 0x3b3   :  { %v14286_v9 = vld [vmem:[%s23577_s0 + $0x2ba] sm:$0xff] }
 0x3b5   :  { %16378 = vmatmul.mubr.msk.f32.gmra.mrb[88].mxu1 %vm279_vm1, %v13035_v11  ;;  %17249 = vmatmul.mubr.msk.f32.gmra.mrb[22].mxu0 %vm279_vm1, %v14259_v13 }
 0x3b6   :  { %16380 = vmatprep.mubr.msk.f32.mxu1 %vm279_vm1, %v13036_v15  ;;  %17251 = vmatprep.mubr.msk.f32.mxu0 %vm279_vm1, %v14260_v18  ;;  %v13063_v15 = vld [vmem:[%s23577_s0 + $0x620] sm:$0xff] }
 0x3b7   :  { %v14287_v18 = vld [vmem:[%s23577_s0 + $0x2c2] sm:$0xff] }
 0x3b9   :  { %16381 = vmatmul.mubr.msk.f32.gmra.mrb[90].mxu1 %vm279_vm1, %v13037_v27  ;;  %17252 = vmatmul.mubr.msk.f32.gmra.mrb[24].mxu0 %vm279_vm1, %v14261_v35  ;;  %v13064_v27 = vld [vmem:[%s23577_s0 + $0x630] sm:$0xff] }
 0x3ba   :  { %16383 = vmatprep.mubr.msk.f32.mxu1 %vm279_vm1, %v13038_v43  ;;  %17254 = vmatprep.mubr.msk.f32.mxu0 %vm279_vm1, %v14262_v51  ;;  %v14288_v35 = vld [vmem:[%s23577_s0 + $0x2d2] sm:$0xff] }
 0x3bd   :  { %16384 = vmatmul.mubr.msk.f32.gmra.mrb[92].mxu1 %vm279_vm1, %v13039_v59  ;;  %17255 = vmatmul.mubr.msk.f32.gmra.mrb[26].mxu0 %vm279_vm1, %v14263_v55  ;;  %v13065_v59 = vld [vmem:[%s23577_s0 + $0x638] sm:$0xff] }
 0x3be   :  { %16386 = vmatprep.mubr.msk.f32.mxu1 %vm279_vm1, %v13040_v3  ;;  %17257 = vmatprep.mubr.msk.f32.mxu0 %vm279_vm1, %v14264_v10  ;;  %v14289_v55 = vld [vmem:[%s23577_s0 + $0x2da] sm:$0xff]  ;;  %v13066_v3 = vld [vmem:[%s23577_s0 + $0x648] sm:$0xff] }
 0x3bf   :  { %v14290_v10 = vld [vmem:[%s23577_s0 + $0x2ea] sm:$0xff] }
 0x3c1   :  { %16387 = vmatmul.mubr.msk.f32.gmra.mrb[94].mxu1 %vm279_vm1, %v13041_v20  ;;  %17258 = vmatmul.mubr.msk.f32.gmra.mrb[28].mxu0 %vm279_vm1, %v14265_v23 }
 0x3c2   :  { %16389 = vmatprep.mubr.msk.f32.mxu1 %vm279_vm1, %v13042_v22  ;;  %17260 = vmatprep.mubr.msk.f32.mxu0 %vm279_vm1, %v14266_v24  ;;  %v13067_v22 = vld [vmem:[%s23577_s0 + $0x650] sm:$0xff] }
 0x3c3   :  { %v14291_v24 = vld [vmem:[%s23577_s0 + $0x2f2] sm:$0xff] }
 0x3c5   :  { %16390 = vmatmul.mubr.msk.f32.gmra.mrb[96].mxu1 %vm279_vm1, %v13043_v26  ;;  %17261 = vmatmul.mubr.msk.f32.gmra.mrb[30].mxu0 %vm279_vm1, %v14267_v28  ;;  %v13068_v26 = vld [vmem:[%s23577_s0 + $0x660] sm:$0xff] }
 0x3c6   :  { %16392 = vmatprep.mubr.msk.f32.mxu1 %vm279_vm1, %v13044_v30  ;;  %17263 = vmatprep.mubr.msk.f32.mxu0 %vm279_vm1, %v14268_v32  ;;  %v14292_v28 = vld [vmem:[%s23577_s0 + $0x302] sm:$0xff] }
 0x3c9   :  { %16393 = vmatmul.mubr.msk.f32.gmra.mrb[98].mxu1 %vm279_vm1, %v13045_v34  ;;  %17264 = vmatmul.mubr.msk.f32.gmra.mrb[32].mxu0 %vm279_vm1, %v14269_v36  ;;  %v13069_v34 = vld [vmem:[%s23577_s0 + $0x668] sm:$0xff] }
 0x3ca   :  { %16395 = vmatprep.mubr.msk.f32.mxu1 %vm279_vm1, %v13046_v38  ;;  %17266 = vmatprep.mubr.msk.f32.mxu0 %vm279_vm1, %v14270_v40  ;;  %v14293_v36 = vld [vmem:[%s23577_s0 + $0x30a] sm:$0xff]  ;;  %v13070_v38 = vld [vmem:[%s23577_s0 + $0x678] sm:$0xff] }
 0x3cb   :  { %v14294_v40 = vld [vmem:[%s23577_s0 + $0x31a] sm:$0xff] }
 0x3cd   :  { %16396 = vmatmul.mubr.msk.f32.gmra.mrb[100].mxu1 %vm279_vm1, %v13047_v42  ;;  %17267 = vmatmul.mubr.msk.f32.gmra.mrb[34].mxu0 %vm279_vm1, %v14271_v47 }
 0x3ce   :  { %16398 = vmatprep.mubr.msk.f32.mxu1 %vm279_vm1, %v13048_v12  ;;  %17269 = vmatprep.mubr.msk.f32.mxu0 %vm279_vm1, %v14272_v44  ;;  %v13071_v12 = vld [vmem:[%s23577_s0 + $0x680] sm:$0xff] }
 0x3cf   :  { %v14295_v44 = vld [vmem:[%s23577_s0 + $0x322] sm:$0xff] }
 0x3d1   :  { %16399 = vmatmul.mubr.msk.f32.gmra.mrb[102].mxu1 %vm279_vm1, %v13049_v46  ;;  %17270 = vmatmul.mubr.msk.f32.gmra.mrb[36].mxu0 %vm279_vm1, %v14273_v48  ;;  %v13072_v46 = vld [vmem:[%s23577_s0 + $0x690] sm:$0xff] }
 0x3d2   :  { %16401 = vmatprep.mubr.msk.f32.mxu1 %vm279_vm1, %v13050_v50  ;;  %17272 = vmatprep.mubr.msk.f32.mxu0 %vm279_vm1, %v14274_v52  ;;  %v14296_v48 = vld [vmem:[%s23577_s0 + $0x332] sm:$0xff] }
 0x3d5   :  { %16402 = vmatmul.mubr.msk.f32.gmra.mrb[104].mxu1 %vm279_vm1, %v13051_v54  ;;  %17273 = vmatmul.mubr.msk.f32.gmra.mrb[38].mxu0 %vm279_vm1, %v14275_v56  ;;  %v13073_v54 = vld [vmem:[%s23577_s0 + $0x698] sm:$0xff] }
 0x3d6   :  { %16404 = vmatprep.mubr.msk.f32.mxu1 %vm279_vm1, %v13052_v58  ;;  %17275 = vmatprep.mubr.msk.f32.mxu0 %vm279_vm1, %v14276_v60  ;;  %v14297_v56 = vld [vmem:[%s23577_s0 + $0x33a] sm:$0xff]  ;;  %v13270_v58 = vld [vmem:[%s23577_s0 + $0x391] sm:$0xff] }
 0x3d7   :  { %v14298_v60 = vld [vmem:[%s23577_s0 + $0x34a] sm:$0xff] }
 0x3d8   :  { %v22421_v31 = vpop.f32.mrb[0].mxu1 }
 0x3d9   :  { %v22423_v6 = vpop.f32.mrb[1].mxu1  ;;  %16405 = vmatmul.mubr.msk.f32.gmra.mrb[106].mxu1 %vm279_vm1, %v13053_v62  ;;  %17276 = vmatmul.mubr.msk.f32.gmra.mrb[40].mxu0 %vm279_vm1, %v14277_v16 }
 0x3da   :  { %16407 = vmatprep.mubr.msk.f32.mxu1 %vm279_vm1, %v13054_v0  ;;  %17278 = vmatprep.mubr.msk.f32.mxu0 %vm279_vm1, %v14278_v2  ;;  %v13271_v0 = vld [vmem:[%s23577_s0 + $0x399] sm:$0xff] }
 0x3db   :  { %v14299_v2 = vld [vmem:[%s23577_s0 + $0x352] sm:$0xff] }
 0x3dc   :  { %v22441_v39 = vpop.f32.mrb[2].mxu1 }
 0x3dd   :  { %v22443_v63 = vpop.f32.mrb[3].mxu1  ;;  %16408 = vmatmul.mubr.msk.f32.gmra.mrb[108].mxu1 %vm279_vm1, %v13055_v4  ;;  %17279 = vmatmul.mubr.msk.f32.gmra.mrb[42].mxu0 %vm279_vm1, %v14279_v14  ;;  %v13272_v4 = vld [vmem:[%s23577_s0 + $0x3a9] sm:$0xff]  ;;  %v14300_v14 = vld [vmem:[%s23577_s0 + $0x392] sm:$0xff] }
 0x3de   :  { %16410 = vmatprep.mubr.msk.f32.mxu1 %vm279_vm1, %v13056_v8  ;;  %17281 = vmatprep.mubr.msk.f32.mxu0 %vm279_vm1, %v14280_v19 }
 0x3e0   :  { %v22461_v29 = vpop.f32.mrb[4].mxu1 }
 0x3e1   :  { %v22463_v33 = vpop.f32.mrb[5].mxu1  ;;  %16411 = vmatmul.mubr.msk.f32.gmra.mrb[110].mxu1 %vm279_vm1, %v13057_v17  ;;  %17282 = vmatmul.mubr.msk.f32.gmra.mrb[44].mxu0 %vm279_vm1, %v14281_v21  ;;  %v13273_v17 = vld [vmem:[%s23577_s0 + $0x3b1] sm:$0xff]  ;;  %v14301_v21 = vld [vmem:[%s23577_s0 + $0x39a] sm:$0xff] }
 0x3e2   :  { %16413 = vmatprep.mubr.msk.f32.mxu1 %vm279_vm1, %v13058_v7  ;;  %17284 = vmatprep.mubr.msk.f32.mxu0 %vm279_vm1, %v14282_v25  ;;  %v13274_v7 = vld [vmem:[%s23577_s0 + $0x3c1] sm:$0xff]  ;;  %v14302_v25 = vld [vmem:[%s23577_s0 + $0x3aa] sm:$0xff] }
 0x3e4   :  { %v22481_v53 = vpop.f32.mrb[6].mxu1 }
 0x3e5   :  { %v22483_v57 = vpop.f32.mrb[7].mxu1  ;;  %16414 = vmatmul.mubr.msk.f32.gmra.mrb[112].mxu1 %vm279_vm1, %v13059_v37  ;;  %17285 = vmatmul.mubr.msk.f32.gmra.mrb[46].mxu0 %vm279_vm1, %v14283_v41 }
 0x3e6   :  { %16416 = vmatprep.mubr.msk.f32.mxu1 %vm279_vm1, %v13060_v45  ;;  %17287 = vmatprep.mubr.msk.f32.mxu0 %vm279_vm1, %v14284_v49  ;;  %v13275_v45 = vld [vmem:[%s23577_s0 + $0x3c9] sm:$0xff]  ;;  %v14303_v49 = vld [vmem:[%s23577_s0 + $0x3b2] sm:$0xff] }
 0x3e8   :  { %v22501_v11 = vpop.f32.mrb[8].mxu1 }
 0x3e9   :  { %v22503_v13 = vpop.f32.mrb[9].mxu1  ;;  %16417 = vmatmul.mubr.msk.f32.gmra.mrb[114].mxu1 %vm279_vm1, %v13061_v61  ;;  %17288 = vmatmul.mubr.msk.f32.gmra.mrb[48].mxu0 %vm279_vm1, %v14285_v1  ;;  %v13276_v61 = vld [vmem:[%s23577_s0 + $0x3d9] sm:$0xff]  ;;  %v14304_v1 = vld [vmem:[%s23577_s0 + $0x3c2] sm:$0xff] }
 0x3ea   :  { %16419 = vmatprep.mubr.msk.f32.mxu1 %vm279_vm1, %v13062_v5  ;;  %17290 = vmatprep.mubr.msk.f32.mxu0 %vm279_vm1, %v14286_v9 }
 0x3ec   :  { %v22521_v43 = vpop.f32.mrb[10].mxu1 }
 0x3ed   :  { %v22523_v51 = vpop.f32.mrb[11].mxu1  ;;  %16420 = vmatmul.mubr.msk.f32.gmra.mrb[116].mxu1 %vm279_vm1, %v13063_v15  ;;  %17291 = vmatmul.mubr.msk.f32.gmra.mrb[50].mxu0 %vm279_vm1, %v14287_v18  ;;  %v13277_v15 = vld [vmem:[%s23577_s0 + $0x3e1] sm:$0xff]  ;;  %v14305_v18 = vld [vmem:[%s23577_s0 + $0x3ca] sm:$0xff] }
 0x3ee   :  { %16422 = vmatprep.mubr.msk.f32.mxu1 %vm279_vm1, %v13064_v27  ;;  %17293 = vmatprep.mubr.msk.f32.mxu0 %vm279_vm1, %v14288_v35  ;;  %v13278_v27 = vld [vmem:[%s23577_s0 + $0x3f1] sm:$0xff]  ;;  %v14306_v35 = vld [vmem:[%s23577_s0 + $0x3da] sm:$0xff] }
 0x3f0   :  { %v22541_v20 = vpop.f32.mrb[12].mxu1 }
 0x3f1   :  { %v22543_v23 = vpop.f32.mrb[13].mxu1  ;;  %16423 = vmatmul.mubr.msk.f32.gmra.mrb[118].mxu1 %vm279_vm1, %v13065_v59  ;;  %17294 = vmatmul.mubr.msk.f32.gmra.mrb[52].mxu0 %vm279_vm1, %v14289_v55 }
 0x3f2   :  { %16425 = vmatprep.mubr.msk.f32.mxu1 %vm279_vm1, %v13066_v3  ;;  %17296 = vmatprep.mubr.msk.f32.mxu0 %vm279_vm1, %v14290_v10  ;;  %v13279_v3 = vld [vmem:[%s23577_s0 + $0x3f9] sm:$0xff]  ;;  %v14307_v10 = vld [vmem:[%s23577_s0 + $0x3e2] sm:$0xff] }
 0x3f4   :  { %v22561_v30 = vpop.f32.mrb[14].mxu1 }
 0x3f5   :  { %v22563_v32 = vpop.f32.mrb[15].mxu1  ;;  %16426 = vmatmul.mubr.msk.f32.gmra.mrb[120].mxu1 %vm279_vm1, %v13067_v22  ;;  %17297 = vmatmul.mubr.msk.f32.gmra.mrb[54].mxu0 %vm279_vm1, %v14291_v24  ;;  %v13280_v22 = vld [vmem:[%s23577_s0 + $0x409] sm:$0xff]  ;;  %v14308_v24 = vld [vmem:[%s23577_s0 + $0x3f2] sm:$0xff] }
 0x3f6   :  { %16428 = vmatprep.mubr.msk.f32.mxu1 %vm279_vm1, %v13068_v26  ;;  %17299 = vmatprep.mubr.msk.f32.mxu0 %vm279_vm1, %v14292_v28 }
 0x3f8   :  { %v22581_v42 = vpop.f32.mrb[16].mxu1 }
 0x3f9   :  { %v22583_v47 = vpop.f32.mrb[17].mxu1  ;;  %16429 = vmatmul.mubr.msk.f32.gmra.mrb[122].mxu1 %vm279_vm1, %v13069_v34  ;;  %17300 = vmatmul.mubr.msk.f32.gmra.mrb[56].mxu0 %vm279_vm1, %v14293_v36  ;;  %v13281_v34 = vld [vmem:[%s23577_s0 + $0x411] sm:$0xff]  ;;  %v14309_v36 = vld [vmem:[%s23577_s0 + $0x3fa] sm:$0xff] }
 0x3fa   :  { %16431 = vmatprep.mubr.msk.f32.mxu1 %vm279_vm1, %v13070_v38  ;;  %17302 = vmatprep.mubr.msk.f32.mxu0 %vm279_vm1, %v14294_v40  ;;  %v13282_v38 = vld [vmem:[%s23577_s0 + $0x421] sm:$0xff]  ;;  %v14310_v40 = vld [vmem:[%s23577_s0 + $0x40a] sm:$0xff] }
 0x3fc   :  { %v22601_v50 = vpop.f32.mrb[18].mxu1 }
 0x3fd   :  { %v22603_v52 = vpop.f32.mrb[19].mxu1  ;;  %16432 = vmatmul.mubr.msk.f32.gmra.mrb[124].mxu1 %vm279_vm1, %v13071_v12  ;;  %17303 = vmatmul.mubr.msk.f32.gmra.mrb[58].mxu0 %vm279_vm1, %v14295_v44 }
 0x3fe   :  { %16434 = vmatprep.mubr.msk.f32.mxu1 %vm279_vm1, %v13072_v46  ;;  %17305 = vmatprep.mubr.msk.f32.mxu0 %vm279_vm1, %v14296_v48  ;;  %v13283_v46 = vld [vmem:[%s23577_s0 + $0x429] sm:$0xff]  ;;  %v14311_v48 = vld [vmem:[%s23577_s0 + $0x412] sm:$0xff] }
 0x400   :  { %v22621_v62 = vpop.f32.mrb[20].mxu1 }
 0x401   :  { %v22623_v16 = vpop.f32.mrb[21].mxu1  ;;  %16435 = vmatmul.mubr.msk.f32.gmra.mrb[126].mxu1 %vm279_vm1, %v13073_v54  ;;  %17306 = vmatmul.mubr.msk.f32.gmra.mrb[60].mxu0 %vm279_vm1, %v14297_v56  ;;  %v13284_v54 = vld [vmem:[%s23577_s0 + $0x439] sm:$0xff]  ;;  %v14312_v56 = vld [vmem:[%s23577_s0 + $0x422] sm:$0xff] }
 0x402   :  { %16538 = vmatprep.mubr.msk.f32.mxu1 %vm279_vm1, %v13270_v58  ;;  %17308 = vmatprep.mubr.msk.f32.mxu0 %vm279_vm1, %v14298_v60 }
 0x404   :  { %v22641_v8 = vpop.f32.mrb[22].mxu1 }
 0x405   :  { %v22643_v19 = vpop.f32.mrb[23].mxu1  ;;  %16539 = vmatmul.mubr.msk.f32.vlgmr.msra.gmra.mrb[66].mxu1 %vm279_vm1, %v13271_v0  ;;  %17309 = vmatmul.mubr.msk.f32.gmra.mrb[62].mxu0 %vm279_vm1, %v14299_v2  ;;  %v13285_v0 = vld [vmem:[%s23577_s0 + $0x441] sm:$0xff]  ;;  %v14313_v2 = vld [vmem:[%s23577_s0 + $0x42a] sm:$0xff] }
 0x406   :  { %16541 = vmatprep.mubr.msk.f32.mxu1 %vm279_vm1, %v13272_v4  ;;  %17311 = vmatprep.mubr.msk.f32.mxu0 %vm279_vm1, %v14300_v14  ;;  %v13286_v4 = vld [vmem:[%s23577_s0 + $0x451] sm:$0xff]  ;;  %v14314_v14 = vld [vmem:[%s23577_s0 + $0x43a] sm:$0xff] }
 0x408   :  { %v22661_v37 = vpop.f32.mrb[24].mxu1 }
 0x409   :  { %v22663_v41 = vpop.f32.mrb[25].mxu1  ;;  %16542 = vmatmul.mubr.msk.f32.gmra.mrb[68].mxu1 %vm279_vm1, %v13273_v17  ;;  %17312 = vmatmul.mubr.msk.f32.gmra.mrb[64].mxu0 %vm279_vm1, %v14301_v21 }
 0x40a   :  { %16544 = vmatprep.mubr.msk.f32.mxu1 %vm279_vm1, %v13274_v7  ;;  %17314 = vmatprep.mubr.msk.f32.mxu0 %vm279_vm1, %v14302_v25  ;;  %v13287_v7 = vld [vmem:[%s23577_s0 + $0x459] sm:$0xff]  ;;  %v14315_v25 = vld [vmem:[%s23577_s0 + $0x442] sm:$0xff] }
 0x40c   :  { %v22681_v5 = vpop.f32.mrb[26].mxu1 }
 0x40d   :  { %v22683_v9 = vpop.f32.mrb[27].mxu1  ;;  %16545 = vmatmul.mubr.msk.f32.gmra.mrb[70].mxu1 %vm279_vm1, %v13275_v45  ;;  %17315 = vmatmul.mubr.msk.f32.gmra.mrb[66].mxu0 %vm279_vm1, %v14303_v49  ;;  %v13288_v45 = vld [vmem:[%s23577_s0 + $0x469] sm:$0xff]  ;;  %v14316_v49 = vld [vmem:[%s23577_s0 + $0x452] sm:$0xff] }
 0x40e   :  { %16547 = vmatprep.mubr.msk.f32.mxu1 %vm279_vm1, %v13276_v61  ;;  %17317 = vmatprep.mubr.msk.f32.mxu0 %vm279_vm1, %v14304_v1 }
 0x410   :  { %v22701_v59 = vpop.f32.mrb[28].mxu1 }
 0x411   :  { %v22703_v55 = vpop.f32.mrb[29].mxu1  ;;  %16548 = vmatmul.mubr.msk.f32.gmra.mrb[72].mxu1 %vm279_vm1, %v13277_v15  ;;  %17318 = vmatmul.mubr.msk.f32.gmra.mrb[68].mxu0 %vm279_vm1, %v14305_v18  ;;  %v13289_v15 = vld [vmem:[%s23577_s0 + $0x471] sm:$0xff]  ;;  %v14317_v18 = vld [vmem:[%s23577_s0 + $0x45a] sm:$0xff] }
 0x412   :  { %16550 = vmatprep.mubr.msk.f32.mxu1 %vm279_vm1, %v13278_v27  ;;  %17320 = vmatprep.mubr.msk.f32.mxu0 %vm279_vm1, %v14306_v35  ;;  %v13290_v27 = vld [vmem:[%s23577_s0 + $0x481] sm:$0xff]  ;;  %v14318_v35 = vld [vmem:[%s23577_s0 + $0x46a] sm:$0xff] }
 0x414   :  { %v22721_v26 = vpop.f32.mrb[30].mxu1 }
 0x415   :  { %v22723_v28 = vpop.f32.mrb[31].mxu1  ;;  %16551 = vmatmul.mubr.msk.f32.gmra.mrb[74].mxu1 %vm279_vm1, %v13279_v3  ;;  %17321 = vmatmul.mubr.msk.f32.gmra.mrb[70].mxu0 %vm279_vm1, %v14307_v10 }
 0x416   :  { %16553 = vmatprep.mubr.msk.f32.mxu1 %vm279_vm1, %v13280_v22  ;;  %17323 = vmatprep.mubr.msk.f32.mxu0 %vm279_vm1, %v14308_v24  ;;  %v13291_v22 = vld [vmem:[%s23577_s0 + $0x489] sm:$0xff]  ;;  %v14319_v24 = vld [vmem:[%s23577_s0 + $0x472] sm:$0xff] }
 0x418   :  { %v22741_v12 = vpop.f32.mrb[32].mxu1 }
 0x419   :  { %v22743_v44 = vpop.f32.mrb[33].mxu1  ;;  %16554 = vmatmul.mubr.msk.f32.gmra.mrb[76].mxu1 %vm279_vm1, %v13281_v34  ;;  %17324 = vmatmul.mubr.msk.f32.gmra.mrb[72].mxu0 %vm279_vm1, %v14309_v36  ;;  %v13292_v34 = vld [vmem:[%s23577_s0 + $0x499] sm:$0xff]  ;;  %v14320_v36 = vld [vmem:[%s23577_s0 + $0x482] sm:$0xff] }
 0x41a   :  { %16556 = vmatprep.mubr.msk.f32.mxu1 %vm279_vm1, %v13282_v38  ;;  %17326 = vmatprep.mubr.msk.f32.mxu0 %vm279_vm1, %v14310_v40 }
 0x41c   :  { %v22761_v58 = vpop.f32.mrb[34].mxu1 }
 0x41d   :  { %v22763_v60 = vpop.f32.mrb[35].mxu1  ;;  %16557 = vmatmul.mubr.msk.f32.gmra.mrb[78].mxu1 %vm279_vm1, %v13283_v46  ;;  %17327 = vmatmul.mubr.msk.f32.gmra.mrb[74].mxu0 %vm279_vm1, %v14311_v48  ;;  %v13293_v46 = vld [vmem:[%s23577_s0 + $0x4a1] sm:$0xff]  ;;  %v14321_v48 = vld [vmem:[%s23577_s0 + $0x48a] sm:$0xff] }
 0x41e   :  { %16559 = vmatprep.mubr.msk.f32.mxu1 %vm279_vm1, %v13284_v54  ;;  %17329 = vmatprep.mubr.msk.f32.mxu0 %vm279_vm1, %v14312_v56  ;;  %v13294_v54 = vld [vmem:[%s23577_s0 + $0x4b1] sm:$0xff]  ;;  %v14322_v56 = vld [vmem:[%s23577_s0 + $0x49a] sm:$0xff] }
 0x420   :  { %v22781_v17 = vpop.f32.mrb[36].mxu1 }
 0x421   :  { %v22783_v21 = vpop.f32.mrb[37].mxu1  ;;  %16560 = vmatmul.mubr.msk.f32.gmra.mrb[80].mxu1 %vm279_vm1, %v13285_v0  ;;  %17330 = vmatmul.mubr.msk.f32.gmra.mrb[76].mxu0 %vm279_vm1, %v14313_v2 }
 0x422   :  { %16562 = vmatprep.mubr.msk.f32.mxu1 %vm279_vm1, %v13286_v4  ;;  %17332 = vmatprep.mubr.msk.f32.mxu0 %vm279_vm1, %v14314_v14  ;;  %v13295_v4 = vld [vmem:[%s23577_s0 + $0x4b9] sm:$0xff]  ;;  %v14323_v14 = vld [vmem:[%s23577_s0 + $0x4a2] sm:$0xff] }
 0x424   :  { %v22801_v61 = vpop.f32.mrb[38].mxu1 }
 0x425   :  { %v22803_v1 = vpop.f32.mrb[39].mxu1  ;;  %16563 = vmatmul.mubr.msk.f32.gmra.mrb[82].mxu1 %vm279_vm1, %v13287_v7  ;;  %17333 = vmatmul.mubr.msk.f32.gmra.mrb[78].mxu0 %vm279_vm1, %v14315_v25  ;;  %v13296_v7 = vld [vmem:[%s23577_s0 + $0x4c9] sm:$0xff]  ;;  %v14324_v25 = vld [vmem:[%s23577_s0 + $0x4b2] sm:$0xff] }
 0x426   :  { %16565 = vmatprep.mubr.msk.f32.mxu1 %vm279_vm1, %v13288_v45  ;;  %17335 = vmatprep.mubr.msk.f32.mxu0 %vm279_vm1, %v14316_v49 }
 0x428   :  { %v22821_v3 = vpop.f32.mrb[40].mxu1 }
 0x429   :  { %v22823_v10 = vpop.f32.mrb[41].mxu1  ;;  %16566 = vmatmul.mubr.msk.f32.gmra.mrb[84].mxu1 %vm279_vm1, %v13289_v15  ;;  %17336 = vmatmul.mubr.msk.f32.gmra.mrb[80].mxu0 %vm279_vm1, %v14317_v18  ;;  %v13297_v15 = vld [vmem:[%s23577_s0 + $0x4d1] sm:$0xff]  ;;  %v14325_v18 = vld [vmem:[%s23577_s0 + $0x4ba] sm:$0xff] }
 0x42a   :  { %16568 = vmatprep.mubr.msk.f32.mxu1 %vm279_vm1, %v13290_v27  ;;  %17338 = vmatprep.mubr.msk.f32.mxu0 %vm279_vm1, %v14318_v35  ;;  %v13298_v27 = vld [vmem:[%s23577_s0 + $0x4e1] sm:$0xff]  ;;  %v14326_v35 = vld [vmem:[%s23577_s0 + $0x4ca] sm:$0xff] }
 0x42c   :  { %v22841_v38 = vpop.f32.mrb[42].mxu1 }
 0x42d   :  { %v22843_v40 = vpop.f32.mrb[43].mxu1  ;;  %16569 = vmatmul.mubr.msk.f32.gmra.mrb[86].mxu1 %vm279_vm1, %v13291_v22  ;;  %17339 = vmatmul.mubr.msk.f32.gmra.mrb[82].mxu0 %vm279_vm1, %v14319_v24 }
 0x42e   :  { %16571 = vmatprep.mubr.msk.f32.mxu1 %vm279_vm1, %v13292_v34  ;;  %17341 = vmatprep.mubr.msk.f32.mxu0 %vm279_vm1, %v14320_v36  ;;  %v13299_v34 = vld [vmem:[%s23577_s0 + $0x4e9] sm:$0xff]  ;;  %v14327_v36 = vld [vmem:[%s23577_s0 + $0x4d2] sm:$0xff] }
 0x430   :  { %v22861_v0 = vpop.f32.mrb[44].mxu1 }
 0x431   :  { %v22863_v2 = vpop.f32.mrb[45].mxu1  ;;  %16572 = vmatmul.mubr.msk.f32.gmra.mrb[88].mxu1 %vm279_vm1, %v13293_v46  ;;  %17342 = vmatmul.mubr.msk.f32.gmra.mrb[84].mxu0 %vm279_vm1, %v14321_v48  ;;  %v13300_v46 = vld [vmem:[%s23577_s0 + $0x529] sm:$0xff] }
 0x432   :  { %16574 = vmatprep.mubr.msk.f32.mxu1 %vm279_vm1, %v13294_v54  ;;  %17344 = vmatprep.mubr.msk.f32.mxu0 %vm279_vm1, %v14322_v56  ;;  %v14328_v48 = vld [vmem:[%s23577_s0 + $0x4e2] sm:$0xff] }
 0x434   :  { %v22881_v45 = vpop.f32.mrb[46].mxu1 }
 0x435   :  { %v22883_v49 = vpop.f32.mrb[47].mxu1  ;;  %16575 = vmatmul.mubr.msk.f32.gmra.mrb[90].mxu1 %vm279_vm1, %v13295_v4  ;;  %17345 = vmatmul.mubr.msk.f32.gmra.mrb[86].mxu0 %vm279_vm1, %v14323_v14  ;;  %v13301_v4 = vld [vmem:[%s23577_s0 + $0x531] sm:$0xff] }
 0x436   :  { %16577 = vmatprep.mubr.msk.f32.mxu1 %vm279_vm1, %v13296_v7  ;;  %17347 = vmatprep.mubr.msk.f32.mxu0 %vm279_vm1, %v14324_v25  ;;  %v14329_v14 = vld [vmem:[%s23577_s0 + $0x4ea] sm:$0xff]  ;;  %v13302_v7 = vld [vmem:[%s23577_s0 + $0x541] sm:$0xff] }
 0x437   :  { %v14330_v25 = vld [vmem:[%s23577_s0 + $0x4fa] sm:$0xff] }
 0x438   :  { %v22901_v22 = vpop.f32.mrb[48].mxu1 }
 0x439   :  { %v22903_v24 = vpop.f32.mrb[49].mxu1  ;;  %16578 = vmatmul.mubr.msk.f32.gmra.mrb[92].mxu1 %vm279_vm1, %v13297_v15  ;;  %17348 = vmatmul.mubr.msk.f32.gmra.mrb[88].mxu0 %vm279_vm1, %v14325_v18 }
 0x43a   :  { %16580 = vmatprep.mubr.msk.f32.mxu1 %vm279_vm1, %v13298_v27  ;;  %17350 = vmatprep.mubr.msk.f32.mxu0 %vm279_vm1, %v14326_v35  ;;  %v13303_v27 = vld [vmem:[%s23577_s0 + $0x549] sm:$0xff] }
 0x43b   :  { %v14331_v35 = vld [vmem:[%s23577_s0 + $0x502] sm:$0xff] }
 0x43c   :  { %v22921_v54 = vpop.f32.mrb[50].mxu1 }
 0x43d   :  { %23582 = vst [vmem:[#allocation2_spill] sm:$0xff] %v22921_v54  ;;  %v22923_v56 = vpop.f32.mrb[51].mxu1  ;;  %16581 = vmatmul.mubr.msk.f32.gmra.mrb[94].mxu1 %vm279_vm1, %v13299_v34  ;;  %17351 = vmatmul.mubr.msk.f32.gmra.mrb[90].mxu0 %vm279_vm1, %v14327_v36  ;;  %v13304_v34 = vld [vmem:[%s23577_s0 + $0x559] sm:$0xff]  ;;  %v14332_v36 = vld [vmem:[%s23577_s0 + $0x542] sm:$0xff] }
 0x43e   :  { %23583 = vst [vmem:[#allocation3_spill] sm:$0xff] %v22923_v56  ;;  %16583 = vmatprep.mubr.msk.f32.mxu1 %vm279_vm1, %v13300_v46  ;;  %17353 = vmatprep.mubr.msk.f32.mxu0 %vm279_vm1, %v14328_v48 }
 0x440   :  { %v22941_v15 = vpop.f32.mrb[52].mxu1 }
 0x441   :  { %23584 = vst [vmem:[#allocation4_spill] sm:$0xff] %v22941_v15  ;;  %v22943_v18 = vpop.f32.mrb[53].mxu1  ;;  %16584 = vmatmul.mubr.msk.f32.gmra.mrb[96].mxu1 %vm279_vm1, %v13301_v4  ;;  %17354 = vmatmul.mubr.msk.f32.gmra.mrb[92].mxu0 %vm279_vm1, %v14329_v14  ;;  %v13305_v4 = vld [vmem:[%s23577_s0 + $0x561] sm:$0xff]  ;;  %v14333_v14 = vld [vmem:[%s23577_s0 + $0x54a] sm:$0xff] }
 0x442   :  { %23585 = vst [vmem:[#allocation5_spill] sm:$0xff] %v22943_v18  ;;  %16586 = vmatprep.mubr.msk.f32.mxu1 %vm279_vm1, %v13302_v7  ;;  %17356 = vmatprep.mubr.msk.f32.mxu0 %vm279_vm1, %v14330_v25  ;;  %v13306_v7 = vld [vmem:[%s23577_s0 + $0x571] sm:$0xff]  ;;  %v14334_v25 = vld [vmem:[%s23577_s0 + $0x55a] sm:$0xff] }
 0x443   :  { %v14345_v18 = vld [vmem:[%s23577_s0 + $0x5da] sm:$0xff] }
 0x444   :  { %v22961_v46 = vpop.f32.mrb[54].mxu1 }
 0x445   :  { %23586 = vst [vmem:[#allocation6_spill] sm:$0xff] %v22961_v46  ;;  %v22963_v48 = vpop.f32.mrb[55].mxu1  ;;  %16587 = vmatmul.mubr.msk.f32.gmra.mrb[98].mxu1 %vm279_vm1, %v13303_v27  ;;  %17357 = vmatmul.mubr.msk.f32.gmra.mrb[94].mxu0 %vm279_vm1, %v14331_v35  ;;  %v13317_v46 = vld [vmem:[%s23577_s0 + $0x5f1] sm:$0xff] }
 0x446   :  { %23587 = vst [vmem:[#allocation7_spill] sm:$0xff] %v22963_v48  ;;  %16589 = vmatprep.mubr.msk.f32.mxu1 %vm279_vm1, %v13304_v34  ;;  %17359 = vmatprep.mubr.msk.f32.mxu0 %vm279_vm1, %v14332_v36  ;;  %v13307_v34 = vld [vmem:[%s23577_s0 + $0x579] sm:$0xff]  ;;  %v14335_v36 = vld [vmem:[%s23577_s0 + $0x562] sm:$0xff] }
 0x448   :  { %v22981_v27 = vpop.f32.mrb[56].mxu1 }
 0x449   :  { %23588 = vst [vmem:[#allocation8_spill] sm:$0xff] %v22981_v27  ;;  %v22983_v35 = vpop.f32.mrb[57].mxu1  ;;  %16590 = vmatmul.mubr.msk.f32.gmra.mrb[100].mxu1 %vm279_vm1, %v13305_v4  ;;  %17360 = vmatmul.mubr.msk.f32.gmra.mrb[96].mxu0 %vm279_vm1, %v14333_v14  ;;  %v14336_v4 = vld [vmem:[%s23577_s0 + $0x572] sm:$0xff]  ;;  %v14337_v27 = vld [vmem:[%s23577_s0 + $0x57a] sm:$0xff] }
 0x44a   :  { %23589 = vst [vmem:[#allocation9_spill] sm:$0xff] %v22983_v35  ;;  %16592 = vmatprep.mubr.msk.f32.mxu1 %vm279_vm1, %v13306_v7  ;;  %17362 = vmatprep.mubr.msk.f32.mxu0 %vm279_vm1, %v14334_v25  ;;  %v13308_v35 = vld [vmem:[%s23577_s0 + $0x589] sm:$0xff]  ;;  %v13309_v25 = vld [vmem:[%s23577_s0 + $0x591] sm:$0xff] }
 0x44c   :  { %v23001_v14 = vpop.f32.mrb[58].mxu1 }
 0x44d   :  { %23590 = vst [vmem:[#allocation10_spill] sm:$0xff] %v23001_v14  ;;  %v23003_v7 = vpop.f32.mrb[59].mxu1  ;;  %16593 = vmatmul.mubr.msk.f32.gmra.mrb[102].mxu1 %vm279_vm1, %v13307_v34  ;;  %17363 = vmatmul.mubr.msk.f32.gmra.mrb[98].mxu0 %vm279_vm1, %v14335_v36  ;;  %v14338_v34 = vld [vmem:[%s23577_s0 + $0x58a] sm:$0xff]  ;;  %v14339_v14 = vld [vmem:[%s23577_s0 + $0x592] sm:$0xff] }
 0x44e   :  { %23591 = vst [vmem:[#allocation11_spill] sm:$0xff] %v23003_v7  ;;  %16595 = vmatprep.mubr.msk.f32.mxu1 %vm279_vm1, %v13308_v35  ;;  %17365 = vmatprep.mubr.msk.f32.mxu0 %vm279_vm1, %v14336_v4  ;;  %v13310_v7 = vld [vmem:[%s23577_s0 + $0x5a1] sm:$0xff]  ;;  %v13311_v4 = vld [vmem:[%s23577_s0 + $0x5a9] sm:$0xff] }
 0x450   :  { %v23021_v36 = vpop.f32.mrb[60].mxu1 }
 0x451   :  { %23592 = vst [vmem:[#allocation12_spill] sm:$0xff] %v23021_v36  ;;  %v23023_v35 = vpop.f32.mrb[61].mxu1  ;;  %16596 = vmatmul.mubr.msk.f32.gmra.mrb[104].mxu1 %vm279_vm1, %v13309_v25  ;;  %17366 = vmatmul.mubr.msk.f32.gmra.mrb[100].mxu0 %vm279_vm1, %v14337_v27  ;;  %v14340_v27 = vld [vmem:[%s23577_s0 + $0x5a2] sm:$0xff]  ;;  %v14341_v36 = vld [vmem:[%s23577_s0 + $0x5aa] sm:$0xff] }
 0x452   :  { %23593 = vst [vmem:[#allocation13_spill] sm:$0xff] %v23023_v35  ;;  %16598 = vmatprep.mubr.msk.f32.mxu1 %vm279_vm1, %v13310_v7  ;;  %17368 = vmatprep.mubr.msk.f32.mxu0 %vm279_vm1, %v14338_v34  ;;  %v13312_v35 = vld [vmem:[%s23577_s0 + $0x5b9] sm:$0xff]  ;;  %v13313_v34 = vld [vmem:[%s23577_s0 + $0x5c1] sm:$0xff] }
 0x454   :  { %v23041_v25 = vpop.f32.mrb[62].mxu1 }
 0x455   :  { %23594 = vst [vmem:[#allocation14_spill] sm:$0xff] %v23041_v25  ;;  %v23043_v7 = vpop.f32.mrb[63].mxu1  ;;  %16599 = vmatmul.mubr.msk.f32.gmra.mrb[106].mxu1 %vm279_vm1, %v13311_v4  ;;  %17369 = vmatmul.mubr.msk.f32.gmra.mrb[102].mxu0 %vm279_vm1, %v14339_v14  ;;  %v14342_v14 = vld [vmem:[%s23577_s0 + $0x5ba] sm:$0xff]  ;;  %v14343_v25 = vld [vmem:[%s23577_s0 + $0x5c2] sm:$0xff] }
 0x456   :  { %23595 = vst [vmem:[#allocation15_spill] sm:$0xff] %v23043_v7  ;;  %16601 = vmatprep.mubr.msk.f32.mxu1 %vm279_vm1, %v13312_v35  ;;  %17371 = vmatprep.mubr.msk.f32.mxu0 %vm279_vm1, %v14340_v27  ;;  %v13314_v7 = vld [vmem:[%s23577_s0 + $0x5d1] sm:$0xff]  ;;  %v13315_v27 = vld [vmem:[%s23577_s0 + $0x5d9] sm:$0xff] }
 0x458   :  { %v23061_v4 = vpop.f32.mrb[64].mxu1 }
 0x459   :  { %23596 = vst [vmem:[#allocation16_spill] sm:$0xff] %v23061_v4  ;;  %v23063_v35 = vpop.f32.mrb[65].mxu1  ;;  %16602 = vmatmul.mubr.msk.f32.gmra.mrb[108].mxu1 %vm279_vm1, %v13313_v34  ;;  %17372 = vmatmul.mubr.msk.f32.gmra.mrb[104].mxu0 %vm279_vm1, %v14341_v36  ;;  %v14344_v36 = vld [vmem:[%s23577_s0 + $0x5d2] sm:$0xff] }
 0x45a   :  { %23597 = vst [vmem:[#allocation17_spill] sm:$0xff] %v23063_v35  ;;  %16604 = vmatprep.mubr.msk.f32.mxu1 %vm279_vm1, %v13314_v7  ;;  %17374 = vmatprep.mubr.msk.f32.mxu0 %vm279_vm1, %v14342_v14  ;;  %v13316_v35 = vld [vmem:[%s23577_s0 + $0x5e9] sm:$0xff]  ;;  %v23084_v7 = vld [vmem:[%s23578_s2] ss:$0 sm:$0xff] }
 0x45c   :  { %v17217_v34 = vpop.f32.mrb[0].mxu0 }
 0x45d   :  { %v17419_v14 = vadd.f32 %v17217_v34, %v22421_v31  ;;  %16605 = vmatmul.mubr.msk.f32.gmra.mrb[110].mxu1 %vm279_vm1, %v13315_v27  ;;  %v11150_v4 = vpop.f32.mrb[1].mxu0  ;;  %17375 = vmatmul.mubr.msk.f32.gmra.mrb[106].mxu0 %vm279_vm1, %v14343_v25  ;;  %v13318_v25 = vld [vmem:[%s23577_s0 + $0x601] sm:$0xff] }
 0x45e   :  { %v17420_v48 = vadd.f32 %v11150_v4, %v22423_v6  ;;  %16607 = vmatprep.mubr.msk.f32.mxu1 %vm279_vm1, %v13316_v35  ;;  %17377 = vmatprep.mubr.msk.f32.mxu0 %vm279_vm1, %v14344_v36  ;;  %v14346_v6 = vld [vmem:[%s23577_s0 + $0x5ea] sm:$0xff] }
 0x45f   :  { %v11925_v31 = vadd.f32 %v17419_v14, %v23084_v7 }
 0x460   :  { %v11924_v4 = vadd.f32 %v17420_v48, %v23084_v7  ;;  %v17220_v35 = vpop.f32.mrb[2].mxu0  ;;  %v13319_v48 = vld [vmem:[%s23577_s0 + $0x609] sm:$0xff] }
 0x461   :  { %v12053_v27 = vmax.f32 %v11925_v31, 0.0  ;;  %v17421_v36 = vadd.f32 %v17220_v35, %v22441_v39  ;;  %16608 = vmatmul.mubr.msk.f32.gmra.mrb[112].mxu1 %vm279_vm1, %v13317_v46  ;;  %v11160_v34 = vpop.f32.mrb[3].mxu0  ;;  %17378 = vmatmul.mubr.msk.f32.gmra.mrb[108].mxu0 %vm279_vm1, %v14345_v18  ;;  %v14347_v39 = vld [vmem:[%s23577_s0 + $0x5f2] sm:$0xff]  ;;  %v14348_v18 = vld [vmem:[%s23577_s0 + $0x602] sm:$0xff] }
 0x462   :  { %v12052_v14 = vmax.f32 %v11924_v4, 0.0  ;;  %v17422_v15 = vadd.f32 %v11160_v34, %v22443_v63  ;;  %16610 = vmatprep.mubr.msk.f32.mxu1 %vm279_vm1, %v13318_v25  ;;  %17380 = vmatprep.mubr.msk.f32.mxu0 %vm279_vm1, %v14346_v6  ;;  %v13320_v63 = vld [vmem:[%s23577_s0 + $0x619] sm:$0xff] }
 0x463   :  { %v12182_v46 = vsel %vm12180_vm2, %v12053_v27, 0.0  ;;  %v11927_v31 = vadd.f32 %v17421_v36, %v23084_v7 }
 0x464   :  { %v12181_v25 = vsel %vm12180_vm2, %v12052_v14, 0.0  ;;  %v11926_v6 = vadd.f32 %v17422_v15, %v23084_v7  ;;  %v17223_v4 = vpop.f32.mrb[4].mxu0  ;;  %v13321_v15 = vld [vmem:[%s23577_s0 + $0x621] sm:$0xff] }
 0x465   :  { %v12183_v35 = vadd.f32 %v12182_v46, %v12181_v25  ;;  %v17423_v34 = vadd.f32 %v17223_v4, %v22461_v29  ;;  %16611 = vmatmul.mubr.msk.f32.gmra.mrb[114].mxu1 %vm279_vm1, %v13319_v48  ;;  %v11170_v27 = vpop.f32.mrb[5].mxu0  ;;  %17381 = vmatmul.mubr.msk.f32.gmra.mrb[110].mxu0 %vm279_vm1, %v14347_v39  ;;  %v12055_v36 = vmax.f32 %v11927_v31, 0.0  ;;  %v14349_v29 = vld [vmem:[%s23577_s0 + $0x60a] sm:$0xff] }
 0x466   :  { %v12054_v56 = vmax.f32 %v11926_v6, 0.0  ;;  %v17424_v54 = vadd.f32 %v11170_v27, %v22463_v33  ;;  %16613 = vmatprep.mubr.msk.f32.mxu1 %vm279_vm1, %v13320_v63  ;;  %17383 = vmatprep.mubr.msk.f32.mxu0 %vm279_vm1, %v14348_v18  ;;  %v13322_v48 = vld [vmem:[%s23577_s0 + $0x631] sm:$0xff]  ;;  %v14350_v33 = vld [vmem:[%s23577_s0 + $0x61a] sm:$0xff] }
 0x467   :  { %v11929_v14 = vadd.f32 %v17423_v34, %v23084_v7  ;;  %v12186_v6 = vsel %vm12180_vm2, %v12055_v36, 0.0  ;;  %v13324_v36 = vld [vmem:[%s23577_s0 + $0x649] sm:$0xff] }
 0x468   :  { %v12184_v39 = vsel %vm12180_vm2, %v12054_v56, 0.0  ;;  %v11928_v46 = vadd.f32 %v17424_v54, %v23084_v7  ;;  %v17226_v31 = vpop.f32.mrb[6].mxu0  ;;  %v13323_v54 = vld [vmem:[%s23577_s0 + $0x639] sm:$0xff] }
 0x469   :  { %v12185_v63 = vadd.f32 %v12184_v39, %v12183_v35  ;;  %v17425_v18 = vadd.f32 %v17226_v31, %v22481_v53  ;;  %16614 = vmatmul.mubr.msk.f32.gmra.mrb[116].mxu1 %vm279_vm1, %v13321_v15  ;;  %v11180_v25 = vpop.f32.mrb[7].mxu0  ;;  %17384 = vmatmul.mubr.msk.f32.gmra.mrb[112].mxu0 %vm279_vm1, %v14349_v29  ;;  %v12057_v4 = vmax.f32 %v11929_v14, 0.0  ;;  %v14351_v53 = vld [vmem:[%s23577_s0 + $0x622] sm:$0xff] }
 0x46a   :  { %v12056_v34 = vmax.f32 %v11928_v46, 0.0  ;;  %v17426_v27 = vadd.f32 %v11180_v25, %v22483_v57  ;;  %16616 = vmatprep.mubr.msk.f32.mxu1 %vm279_vm1, %v13322_v48  ;;  %17386 = vmatprep.mubr.msk.f32.mxu0 %vm279_vm1, %v14350_v33  ;;  %v14352_v57 = vld [vmem:[%s23577_s0 + $0x632] sm:$0xff] }
 0x46b   :  { %v12187_v56 = vadd.f32 %v12186_v6, %v12185_v63  ;;  %v11931_v35 = vadd.f32 %v17425_v18, %v23084_v7  ;;  %v12190_v46 = vsel %vm12180_vm2, %v12057_v4, 0.0  ;;  %v13325_v25 = vld [vmem:[%s23577_s0 + $0x651] sm:$0xff]  ;;  %v13326_v4 = vld [vmem:[%s23577_s0 + $0x661] sm:$0xff] }
 0x46c   :  { %v12188_v15 = vsel %vm12180_vm2, %v12056_v34, 0.0  ;;  %v11930_v29 = vadd.f32 %v17426_v27, %v23084_v7  ;;  %v17229_v14 = vpop.f32.mrb[8].mxu0 }
 0x46d   :  { %v12189_v48 = vadd.f32 %v12188_v15, %v12187_v56  ;;  %v17427_v33 = vadd.f32 %v17229_v14, %v22501_v11  ;;  %16617 = vmatmul.mubr.msk.f32.gmra.mrb[118].mxu1 %vm279_vm1, %v13323_v54  ;;  %v11190_v39 = vpop.f32.mrb[9].mxu0  ;;  %17387 = vmatmul.mubr.msk.f32.gmra.mrb[114].mxu0 %vm279_vm1, %v14351_v53  ;;  %v12059_v31 = vmax.f32 %v11931_v35, 0.0  ;;  %v14353_v11 = vld [vmem:[%s23577_s0 + $0x63a] sm:$0xff] }
 0x46e   :  { %v12058_v63 = vmax.f32 %v11930_v29, 0.0  ;;  %v17428_v18 = vadd.f32 %v11190_v39, %v22503_v13  ;;  %16619 = vmatprep.mubr.msk.f32.mxu1 %vm279_vm1, %v13324_v36  ;;  %17389 = vmatprep.mubr.msk.f32.mxu0 %vm279_vm1, %v14352_v57  ;;  %v14354_v13 = vld [vmem:[%s23577_s0 + $0x64a] sm:$0xff] }
 0x46f   :  { %v12191_v6 = vadd.f32 %v12190_v46, %v12189_v48  ;;  %v11933_v34 = vadd.f32 %v17427_v33, %v23084_v7  ;;  %v12194_v57 = vsel %vm12180_vm2, %v12059_v31, 0.0  ;;  %v13327_v48 = vld [vmem:[%s23577_s0 + $0x669] sm:$0xff]  ;;  %v13328_v46 = vld [vmem:[%s23577_s0 + $0x679] sm:$0xff] }
 0x470   :  { %v12192_v27 = vsel %vm12180_vm2, %v12058_v63, 0.0  ;;  %v11932_v54 = vadd.f32 %v17428_v18, %v23084_v7  ;;  %v17232_v53 = vpop.f32.mrb[10].mxu0 }
 0x471   :  { %v12193_v56 = vadd.f32 %v12192_v27, %v12191_v6  ;;  %v17429_v35 = vadd.f32 %v17232_v53, %v22521_v43  ;;  %16620 = vmatmul.mubr.msk.f32.gmra.mrb[120].mxu1 %vm279_vm1, %v13325_v25  ;;  %v11200_v36 = vpop.f32.mrb[11].mxu0  ;;  %17390 = vmatmul.mubr.msk.f32.gmra.mrb[116].mxu0 %vm279_vm1, %v14353_v11  ;;  %v12061_v15 = vmax.f32 %v11933_v34, 0.0  ;;  %v14355_v43 = vld [vmem:[%s23577_s0 + $0x652] sm:$0xff] }
 0x472   :  { %v12060_v29 = vmax.f32 %v11932_v54, 0.0  ;;  %v17430_v14 = vadd.f32 %v11200_v36, %v22523_v51  ;;  %16622 = vmatprep.mubr.msk.f32.mxu1 %vm279_vm1, %v13326_v4  ;;  %17392 = vmatprep.mubr.msk.f32.mxu0 %vm279_vm1, %v14354_v13  ;;  %v14356_v51 = vld [vmem:[%s23577_s0 + $0x662] sm:$0xff] }
 0x473   :  { %v12195_v33 = vadd.f32 %v12194_v57, %v12193_v56  ;;  %v11935_v39 = vadd.f32 %v17429_v35, %v23084_v7  ;;  %v12198_v34 = vsel %vm12180_vm2, %v12061_v15, 0.0  ;;  %v13329_v54 = vld [vmem:[%s23577_s0 + $0x681] sm:$0xff]  ;;  %v13330_v35 = vld [vmem:[%s23577_s0 + $0x691] sm:$0xff] }
 0x474   :  { %v12196_v31 = vsel %vm12180_vm2, %v12060_v29, 0.0  ;;  %v11934_v63 = vadd.f32 %v17430_v14, %v23084_v7  ;;  %v17235_v18 = vpop.f32.mrb[12].mxu0 }
 0x475   :  { %v12197_v25 = vadd.f32 %v12196_v31, %v12195_v33  ;;  %v17431_v11 = vadd.f32 %v17235_v18, %v22541_v20  ;;  %16623 = vmatmul.mubr.msk.f32.gmra.mrb[122].mxu1 %vm279_vm1, %v13327_v48  ;;  %v11210_v6 = vpop.f32.mrb[13].mxu0  ;;  %17393 = vmatmul.mubr.msk.f32.gmra.mrb[118].mxu0 %vm279_vm1, %v14355_v43  ;;  %v12063_v4 = vmax.f32 %v11935_v39, 0.0  ;;  %v14357_v20 = vld [vmem:[%s23577_s0 + $0x66a] sm:$0xff]  ;;  %v14360_v18 = vld [vmem:[%s23577_s0 + $0x692] sm:$0xff] }
 0x476   :  { %v12062_v13 = vmax.f32 %v11934_v63, 0.0  ;;  %v17432_v27 = vadd.f32 %v11210_v6, %v22543_v23  ;;  %16625 = vmatprep.mubr.msk.f32.mxu1 %vm279_vm1, %v13328_v46  ;;  %17395 = vmatprep.mubr.msk.f32.mxu0 %vm279_vm1, %v14356_v51  ;;  %v14358_v23 = vld [vmem:[%s23577_s0 + $0x67a] sm:$0xff] }
 0x477   :  { %v12199_v53 = vadd.f32 %v12198_v34, %v12197_v25  ;;  %v11937_v56 = vadd.f32 %v17431_v11, %v23084_v7  ;;  %v12202_v43 = vsel %vm12180_vm2, %v12063_v4, 0.0  ;;  %v13331_v51 = vld [vmem:[%s23577_s0 + $0x699] sm:$0xff] }
 0x478   :  { %v12200_v36 = vsel %vm12180_vm2, %v12062_v13, 0.0  ;;  %v11936_v57 = vadd.f32 %v17432_v27, %v23084_v7  ;;  %v17238_v15 = vpop.f32.mrb[14].mxu0 }
 0x479   :  { %v12201_v29 = vadd.f32 %v12200_v36, %v12199_v53  ;;  %v17433_v14 = vadd.f32 %v17238_v15, %v22561_v30  ;;  %16626 = vmatmul.mubr.msk.f32.gmra.mrb[124].mxu1 %vm279_vm1, %v13329_v54  ;;  %v11220_v48 = vpop.f32.mrb[15].mxu0  ;;  %17396 = vmatmul.mubr.msk.f32.gmra.mrb[120].mxu0 %vm279_vm1, %v14357_v20  ;;  %v12065_v33 = vmax.f32 %v11937_v56, 0.0  ;;  %v14359_v30 = vld [vmem:[%s23577_s0 + $0x682] sm:$0xff]  ;;  %v14361_v53 = vld [vmem:[%s23577_s0 + $0x69a] sm:$0xff]  ;;  %v18448_v15 = vmov 0.0|0.0  }
 0x47a   :  { %v12064_v39 = vmax.f32 %v11936_v57, 0.0  ;;  %v17434_v46 = vadd.f32 %v11220_v48, %v22563_v32  ;;  %16628 = vmatprep.mubr.msk.f32.mxu1 %vm279_vm1, %v13330_v35  ;;  %17398 = vmatprep.mubr.msk.f32.mxu0 %vm279_vm1, %v14358_v23  ;;  %v14362_v35 = vld [vmem:[%s23577_s0 + $0x6aa] sm:$0xff] }
 0x47b   :  { %v12203_v31 = vadd.f32 %v12202_v43, %v12201_v29  ;;  %v11939_v63 = vadd.f32 %v17433_v14, %v23084_v7  ;;  %v12206_v13 = vsel %vm12180_vm2, %v12065_v33, 0.0  ;;  %17414 = vmatprep.subr.bf16.mxu1 %v18448_v15 }
 0x47c   :  { %v12204_v32 = vsel %vm12180_vm2, %v12064_v39, 0.0  ;;  %v11938_v25 = vadd.f32 %v17434_v46, %v23084_v7  ;;  %v17241_v11 = vpop.f32.mrb[16].mxu0  ;;  %v14363_v46 = vld [vmem:[%s23577_s0 + $0x6b2] sm:$0xff] }
 0x47d   :  { %v12205_v6 = vadd.f32 %v12204_v32, %v12203_v31  ;;  %v17435_v34 = vadd.f32 %v17241_v11, %v22581_v42  ;;  %16629 = vmatmul.mubr.msk.f32.gmra.mrb[126].mxu1 %vm279_vm1, %v13331_v51  ;;  %v11230_v4 = vpop.f32.mrb[17].mxu0  ;;  %17399 = vmatmul.mubr.msk.f32.gmra.mrb[122].mxu0 %vm279_vm1, %v14359_v30  ;;  %v12067_v27 = vmax.f32 %v11939_v63, 0.0  ;;  %v12461_v51 = vld [vmem:[%s23579_s3] sm:$0xff] }
 0x47e   :  { %v12066_v54 = vmax.f32 %v11938_v25, 0.0  ;;  %v17436_v20 = vadd.f32 %v11230_v4, %v22583_v47  ;;  %17401 = vmatprep.mubr.msk.f32.mxu0 %vm279_vm1, %v14360_v18 }
 0x47f   :  { %v12207_v56 = vadd.f32 %v12206_v13, %v12205_v6  ;;  %v11941_v42 = vadd.f32 %v17435_v34, %v23084_v7  ;;  %v12210_v48 = vsel %vm12180_vm2, %v12067_v27, 0.0 }
 0x480   :  { %v12208_v23 = vsel %vm12180_vm2, %v12066_v54, 0.0  ;;  %v11940_v36 = vadd.f32 %v17436_v20, %v23084_v7  ;;  %v17244_v57 = vpop.f32.mrb[18].mxu0 }
 0x481   :  { %v12209_v47 = vadd.f32 %v12208_v23, %v12207_v56  ;;  %v17437_v29 = vadd.f32 %v17244_v57, %v22601_v50  ;;  %v11240_v14 = vpop.f32.mrb[19].mxu0  ;;  %17402 = vmatmul.mubr.msk.f32.gmra.mrb[124].mxu0 %vm279_vm1, %v14361_v53  ;;  %v12069_v43 = vmax.f32 %v11941_v42, 0.0  ;;  %v12462_v50 = vld [vmem:[%s23579_s3 + $0x8] sm:$0xff] }
 0x482   :  { %v12068_v33 = vmax.f32 %v11940_v36, 0.0  ;;  %v17438_v39 = vadd.f32 %v11240_v14, %v22603_v52  ;;  %17404 = vmatprep.mubr.msk.f32.mxu0 %vm279_vm1, %v14362_v35  ;;  %v17415_v63 = vpack.c.bf16 %v12462_v50, %v12461_v51 }
 0x483   :  { %v12211_v30 = vadd.f32 %v12210_v48, %v12209_v47  ;;  %v11943_v31 = vadd.f32 %v17437_v29, %v23084_v7  ;;  %v12214_v34 = vsel %vm12180_vm2, %v12069_v43, 0.0 }
 0x484   :  { %v12212_v52 = vsel %vm12180_vm2, %v12068_v33, 0.0  ;;  %v11942_v18 = vadd.f32 %v17438_v39, %v23084_v7  ;;  %v17247_v32 = vpop.f32.mrb[20].mxu0  ;;  %17416 = vmatpush3.bf16.msra.mxu1 %v17415_v63 }
 0x485   :  { %v12213_v25 = vadd.f32 %v12212_v52, %v12211_v30  ;;  %v17439_v11 = vadd.f32 %v17247_v32, %v22621_v62  ;;  %v11250_v6 = vpop.f32.mrb[21].mxu0  ;;  %17405 = vmatmul.mubr.msk.f32.gmra.mrb[126].mxu0 %vm279_vm1, %v14363_v46  ;;  %v12071_v4 = vmax.f32 %v11943_v31, 0.0 }
 0x486   :  { %v12070_v13 = vmax.f32 %v11942_v18, 0.0  ;;  %v17440_v27 = vadd.f32 %v11250_v6, %v22623_v16 }
 0x487   :  { %v12215_v54 = vadd.f32 %v12214_v34, %v12213_v25  ;;  %v11945_v20 = vadd.f32 %v17439_v11, %v23084_v7  ;;  %v12218_v36 = vsel %vm12180_vm2, %v12071_v4, 0.0 }
 0x488   :  { %v12216_v53 = vsel %vm12180_vm2, %v12070_v13, 0.0  ;;  %v11944_v56 = vadd.f32 %v17440_v27, %v23084_v7  ;;  %v17250_v42 = vpop.f32.mrb[22].mxu0 }
 0x489   :  { %v12217_v35 = vadd.f32 %v12216_v53, %v12215_v54  ;;  %v17441_v62 = vadd.f32 %v17250_v42, %v22641_v8  ;;  %v11260_v23 = vpop.f32.mrb[23].mxu0  ;;  %v12073_v57 = vmax.f32 %v11945_v20, 0.0 }
 0x48a   :  { %v12072_v15 = vmax.f32 %v11944_v56, 0.0  ;;  %v17442_v47 = vadd.f32 %v11260_v23, %v22643_v19 }
 0x48b   :  { %v12219_v29 = vadd.f32 %v12218_v36, %v12217_v35  ;;  %v11947_v16 = vadd.f32 %v17441_v62, %v23084_v7  ;;  %v12222_v8 = vsel %vm12180_vm2, %v12073_v57, 0.0 }
 0x48c   :  { %v12220_v14 = vsel %vm12180_vm2, %v12072_v15, 0.0  ;;  %v11946_v48 = vadd.f32 %v17442_v47, %v23084_v7  ;;  %v17253_v43 = vpop.f32.mrb[24].mxu0 }
 0x48d   :  { %v12221_v33 = vadd.f32 %v12220_v14, %v12219_v29  ;;  %v17443_v39 = vadd.f32 %v17253_v43, %v22661_v37  ;;  %v11270_v46 = vpop.f32.mrb[25].mxu0  ;;  %v12075_v51 = vmax.f32 %v11947_v16, 0.0 }
 0x48e   :  { %v12074_v50 = vmax.f32 %v11946_v48, 0.0  ;;  %v17444_v30 = vadd.f32 %v11270_v46, %v22663_v41 }
 0x48f   :  { %v12223_v31 = vadd.f32 %v12222_v8, %v12221_v33  ;;  %v11949_v19 = vadd.f32 %v17443_v39, %v23084_v7  ;;  %v12226_v37 = vsel %vm12180_vm2, %v12075_v51, 0.0 }
 0x490   :  { %v12224_v63 = vsel %vm12180_vm2, %v12074_v50, 0.0  ;;  %v11948_v52 = vadd.f32 %v17444_v30, %v23084_v7  ;;  %v17256_v18 = vpop.f32.mrb[26].mxu0 }
 0x491   :  { %v12225_v32 = vadd.f32 %v12224_v63, %v12223_v31  ;;  %v17445_v25 = vadd.f32 %v17256_v18, %v22681_v5  ;;  %v11280_v11 = vpop.f32.mrb[27].mxu0  ;;  %v12077_v6 = vmax.f32 %v11949_v19, 0.0 }
 0x492   :  { %v12076_v34 = vmax.f32 %v11948_v52, 0.0  ;;  %v17446_v4 = vadd.f32 %v11280_v11, %v22683_v9 }
 0x493   :  { %v12227_v13 = vadd.f32 %v12226_v37, %v12225_v32  ;;  %v11951_v41 = vadd.f32 %v17445_v25, %v23084_v7  ;;  %v12230_v5 = vsel %vm12180_vm2, %v12077_v6, 0.0 }
 0x494   :  { %v12228_v27 = vsel %vm12180_vm2, %v12076_v34, 0.0  ;;  %v11950_v54 = vadd.f32 %v17446_v4, %v23084_v7  ;;  %v17259_v20 = vpop.f32.mrb[28].mxu0 }
 0x495   :  { %v12229_v53 = vadd.f32 %v12228_v27, %v12227_v13  ;;  %v17447_v56 = vadd.f32 %v17259_v20, %v22701_v59  ;;  %v11290_v42 = vpop.f32.mrb[29].mxu0  ;;  %v12079_v35 = vmax.f32 %v11951_v41, 0.0 }
 0x496   :  { %v12078_v62 = vmax.f32 %v11950_v54, 0.0  ;;  %v17448_v23 = vadd.f32 %v11290_v42, %v22703_v55 }
 0x497   :  { %v12231_v36 = vadd.f32 %v12230_v5, %v12229_v53  ;;  %v11953_v9 = vadd.f32 %v17447_v56, %v23084_v7  ;;  %v12234_v59 = vsel %vm12180_vm2, %v12079_v35, 0.0 }
 0x498   :  { %v12232_v57 = vsel %vm12180_vm2, %v12078_v62, 0.0  ;;  %v11952_v15 = vadd.f32 %v17448_v23, %v23084_v7  ;;  %v17262_v47 = vpop.f32.mrb[30].mxu0 }
 0x499   :  { %v12233_v29 = vadd.f32 %v12232_v57, %v12231_v36  ;;  %v17449_v16 = vadd.f32 %v17262_v47, %v22721_v26  ;;  %v11300_v14 = vpop.f32.mrb[31].mxu0  ;;  %v12081_v48 = vmax.f32 %v11953_v9, 0.0 }
 0x49a   :  { %v12080_v43 = vmax.f32 %v11952_v15, 0.0  ;;  %v17450_v33 = vadd.f32 %v11300_v14, %v22723_v28 }
 0x49b   :  { %v12235_v39 = vadd.f32 %v12234_v59, %v12233_v29  ;;  %v11955_v55 = vadd.f32 %v17449_v16, %v23084_v7  ;;  %v12238_v26 = vsel %vm12180_vm2, %v12081_v48, 0.0 }
 0x49c   :  { %v12236_v46 = vsel %vm12180_vm2, %v12080_v43, 0.0  ;;  %v11954_v8 = vadd.f32 %v17450_v33, %v23084_v7  ;;  %v17265_v51 = vpop.f32.mrb[32].mxu0 }
 0x49d   :  { %v12237_v50 = vadd.f32 %v12236_v46, %v12235_v39  ;;  %v17451_v30 = vadd.f32 %v17265_v51, %v22741_v12  ;;  %v11310_v31 = vpop.f32.mrb[33].mxu0  ;;  %v12083_v19 = vmax.f32 %v11955_v55, 0.0 }
 0x49e   :  { %v12082_v63 = vmax.f32 %v11954_v8, 0.0  ;;  %v17452_v52 = vadd.f32 %v11310_v31, %v22743_v44 }
 0x49f   :  { %v12239_v18 = vadd.f32 %v12238_v26, %v12237_v50  ;;  %v11957_v28 = vadd.f32 %v17451_v30, %v23084_v7  ;;  %v12242_v4 = vsel %vm12180_vm2, %v12083_v19, 0.0 }
 0x4a0   :  { %v12240_v32 = vsel %vm12180_vm2, %v12082_v63, 0.0  ;;  %v11956_v25 = vadd.f32 %v17452_v52, %v23084_v7  ;;  %v17268_v11 = vpop.f32.mrb[34].mxu0 }
 0x4a1   :  { %v12241_v37 = vadd.f32 %v12240_v32, %v12239_v18  ;;  %v12085_v6 = vmax.f32 %v11957_v28, 0.0  ;;  %v17453_v34 = vadd.f32 %v17268_v11, %v22761_v58  ;;  %v11320_v12 = vpop.f32.mrb[35].mxu0 }
 0x4a2   :  { %v12084_v13 = vmax.f32 %v11956_v25, 0.0  ;;  %v17454_v41 = vadd.f32 %v11320_v12, %v22763_v60 }
 0x4a3   :  { %v23334_v27 = vadd.f32 %v12242_v4, %v12241_v37  ;;  %v12251_v44 = vsel %vm12180_vm2, %v12085_v6, 0.0  ;;  %v11959_v54 = vadd.f32 %v17453_v34, %v23084_v7 }
 0x4a4   :  { %v12250_v20 = vsel %vm12180_vm2, %v12084_v13, 0.0  ;;  %v11958_v53 = vadd.f32 %v17454_v41, %v23084_v7  ;;  %v17271_v56 = vpop.f32.mrb[36].mxu0 }
 0x4a5   :  { %v12252_v42 = vadd.f32 %v12251_v44, %v12250_v20  ;;  %v17455_v58 = vadd.f32 %v17271_v56, %v22781_v17  ;;  %v11330_v5 = vpop.f32.mrb[37].mxu0  ;;  %v12087_v35 = vmax.f32 %v11959_v54, 0.0 }
 0x4a6   :  { %v12086_v62 = vmax.f32 %v11958_v53, 0.0  ;;  %v17456_v23 = vadd.f32 %v11330_v5, %v22783_v21 }
 0x4a7   :  { %v11961_v60 = vadd.f32 %v17455_v58, %v23084_v7  ;;  %v12255_v16 = vsel %vm12180_vm2, %v12087_v35, 0.0 }
 0x4a8   :  { %v12253_v36 = vsel %vm12180_vm2, %v12086_v62, 0.0  ;;  %v11960_v9 = vadd.f32 %v17456_v23, %v23084_v7  ;;  %v17274_v57 = vpop.f32.mrb[38].mxu0 }
 0x4a9   :  { %v12254_v15 = vadd.f32 %v12253_v36, %v12252_v42  ;;  %v17457_v47 = vadd.f32 %v17274_v57, %v22801_v61  ;;  %v11340_v29 = vpop.f32.mrb[39].mxu0  ;;  %v12089_v14 = vmax.f32 %v11961_v60, 0.0 }
 0x4aa   :  { %v12088_v17 = vmax.f32 %v11960_v9, 0.0  ;;  %v17458_v59 = vadd.f32 %v11340_v29, %v22803_v1 }
 0x4ab   :  { %v12256_v48 = vadd.f32 %v12255_v16, %v12254_v15  ;;  %v11963_v21 = vadd.f32 %v17457_v47, %v23084_v7  ;;  %v12259_v61 = vsel %vm12180_vm2, %v12089_v14, 0.0 }
 0x4ac   :  { %v12257_v43 = vsel %vm12180_vm2, %v12088_v17, 0.0  ;;  %v11962_v33 = vadd.f32 %v17458_v59, %v23084_v7  ;;  %v17277_v39 = vpop.f32.mrb[40].mxu0 }
 0x4ad   :  { %v12258_v55 = vadd.f32 %v12257_v43, %v12256_v48  ;;  %v17459_v46 = vadd.f32 %v17277_v39, %v22821_v3  ;;  %v11350_v8 = vpop.f32.mrb[41].mxu0  ;;  %v12091_v51 = vmax.f32 %v11963_v21, 0.0 }
 0x4ae   :  { %v12090_v50 = vmax.f32 %v11962_v33, 0.0  ;;  %v17460_v30 = vadd.f32 %v11350_v8, %v22823_v10 }
 0x4af   :  { %v12260_v31 = vadd.f32 %v12259_v61, %v12258_v55  ;;  %v11965_v1 = vadd.f32 %v17459_v46, %v23084_v7  ;;  %v12263_v3 = vsel %vm12180_vm2, %v12091_v51, 0.0  ;;  %v23598_v46 = vld [vmem:[#allocation2_spill] sm:$0xff] }
 0x4b0   :  { %v12261_v26 = vsel %vm12180_vm2, %v12090_v50, 0.0  ;;  %v11964_v19 = vadd.f32 %v17460_v30, %v23084_v7  ;;  %v17280_v63 = vpop.f32.mrb[42].mxu0  ;;  %v23599_v30 = vld [vmem:[#allocation3_spill] sm:$0xff] }
 0x4b1   :  { %v12262_v52 = vadd.f32 %v12261_v26, %v12260_v31  ;;  %v17461_v18 = vadd.f32 %v17280_v63, %v22841_v38  ;;  %v11360_v28 = vpop.f32.mrb[43].mxu0  ;;  %v12093_v32 = vmax.f32 %v11965_v1, 0.0 }
 0x4b2   :  { %v12092_v25 = vmax.f32 %v11964_v19, 0.0  ;;  %v17462_v11 = vadd.f32 %v11360_v28, %v22843_v40 }
 0x4b3   :  { %v12264_v37 = vadd.f32 %v12263_v3, %v12262_v52  ;;  %v11967_v10 = vadd.f32 %v17461_v18, %v23084_v7  ;;  %v12267_v38 = vsel %vm12180_vm2, %v12093_v32, 0.0  ;;  %v23600_v18 = vld [vmem:[#allocation4_spill] sm:$0xff] }
 0x4b4   :  { %v12265_v6 = vsel %vm12180_vm2, %v12092_v25, 0.0  ;;  %v11966_v34 = vadd.f32 %v17462_v11, %v23084_v7  ;;  %v17283_v12 = vpop.f32.mrb[44].mxu0 }
 0x4b5   :  { %v12266_v4 = vadd.f32 %v12265_v6, %v12264_v37  ;;  %v17463_v13 = vadd.f32 %v17283_v12, %v22861_v0  ;;  %v11370_v41 = vpop.f32.mrb[45].mxu0  ;;  %v12095_v44 = vmax.f32 %v11967_v10, 0.0  ;;  %v23601_v37 = vld [vmem:[#allocation5_spill] sm:$0xff] }
 0x4b6   :  { %v12094_v54 = vmax.f32 %v11966_v34, 0.0  ;;  %v17464_v20 = vadd.f32 %v11370_v41, %v22863_v2 }
 0x4b7   :  { %v12268_v53 = vadd.f32 %v12267_v38, %v12266_v4  ;;  %v11969_v40 = vadd.f32 %v17463_v13, %v23084_v7  ;;  %v12271_v0 = vsel %vm12180_vm2, %v12095_v44, 0.0  ;;  %v23602_v38 = vld [vmem:[#allocation6_spill] sm:$0xff] }
 0x4b8   :  { %v12269_v56 = vsel %vm12180_vm2, %v12094_v54, 0.0  ;;  %v11968_v42 = vadd.f32 %v17464_v20, %v23084_v7  ;;  %v17286_v58 = vpop.f32.mrb[46].mxu0 }
 0x4b9   :  { %v12270_v5 = vadd.f32 %v12269_v56, %v12268_v53  ;;  %v17465_v35 = vadd.f32 %v17286_v58, %v22881_v45  ;;  %v11380_v62 = vpop.f32.mrb[47].mxu0  ;;  %v12097_v23 = vmax.f32 %v11969_v40, 0.0  ;;  %v23603_v56 = vld [vmem:[#allocation7_spill] sm:$0xff] }
 0x4ba   :  { %v12096_v60 = vmax.f32 %v11968_v42, 0.0  ;;  %v17466_v36 = vadd.f32 %v11380_v62, %v22883_v49 }
 0x4bb   :  { %v12272_v9 = vadd.f32 %v12271_v0, %v12270_v5  ;;  %v11971_v2 = vadd.f32 %v17465_v35, %v23084_v7  ;;  %v12275_v45 = vsel %vm12180_vm2, %v12097_v23, 0.0 }
 0x4bc   :  { %v12273_v57 = vsel %vm12180_vm2, %v12096_v60, 0.0  ;;  %v11970_v15 = vadd.f32 %v17466_v36, %v23084_v7  ;;  %v17289_v47 = vpop.f32.mrb[48].mxu0  ;;  %v23604_v60 = vld [vmem:[#allocation8_spill] sm:$0xff] }
 0x4bd   :  { %v12274_v29 = vadd.f32 %v12273_v57, %v12272_v9  ;;  %v17467_v16 = vadd.f32 %v17289_v47, %v22901_v22  ;;  %v11390_v14 = vpop.f32.mrb[49].mxu0  ;;  %v12099_v17 = vmax.f32 %v11971_v2, 0.0  ;;  %v23605_v47 = vld [vmem:[#allocation9_spill] sm:$0xff] }
 0x4be   :  { %v12098_v59 = vmax.f32 %v11970_v15, 0.0  ;;  %v17468_v48 = vadd.f32 %v11390_v14, %v22903_v24 }
 0x4bf   :  { %v12276_v21 = vadd.f32 %v12275_v45, %v12274_v29  ;;  %v11973_v49 = vadd.f32 %v17467_v16, %v23084_v7  ;;  %v12279_v22 = vsel %vm12180_vm2, %v12099_v17, 0.0 }
 0x4c0   :  { %v12277_v43 = vsel %vm12180_vm2, %v12098_v59, 0.0  ;;  %v11972_v33 = vadd.f32 %v17468_v48, %v23084_v7  ;;  %v17292_v39 = vpop.f32.mrb[50].mxu0 }
 0x4c1   :  { %v12278_v55 = vadd.f32 %v12277_v43, %v12276_v21  ;;  %v17469_v8 = vadd.f32 %v17292_v39, %v23598_v46  ;;  %v11400_v61 = vpop.f32.mrb[51].mxu0  ;;  %v12101_v51 = vmax.f32 %v11973_v49, 0.0  ;;  %v23606_v21 = vld [vmem:[#allocation10_spill] sm:$0xff]  ;;  %v23607_v46 = vld [vmem:[#allocation11_spill] sm:$0xff] }
 0x4c2   :  { %v12100_v50 = vmax.f32 %v11972_v33, 0.0  ;;  %v17470_v31 = vadd.f32 %v11400_v61, %v23599_v30 }
 0x4c3   :  { %v12280_v1 = vadd.f32 %v12279_v22, %v12278_v55  ;;  %v11975_v24 = vadd.f32 %v17469_v8, %v23084_v7  ;;  %v12283_v32 = vsel %vm12180_vm2, %v12101_v51, 0.0 }
 0x4c4   :  { %v12281_v26 = vsel %vm12180_vm2, %v12100_v50, 0.0  ;;  %v11974_v19 = vadd.f32 %v17470_v31, %v23084_v7  ;;  %v17295_v63 = vpop.f32.mrb[52].mxu0 }
 0x4c5   :  { %v12282_v52 = vadd.f32 %v12281_v26, %v12280_v1  ;;  %v17471_v28 = vadd.f32 %v17295_v63, %v23600_v18  ;;  %v11410_v3 = vpop.f32.mrb[53].mxu0  ;;  %v12103_v25 = vmax.f32 %v11975_v24, 0.0  ;;  %v23608_v1 = vld [vmem:[#allocation12_spill] sm:$0xff]  ;;  %v23609_v18 = vld [vmem:[#allocation13_spill] sm:$0xff] }
 0x4c6   :  { %v12102_v11 = vmax.f32 %v11974_v19, 0.0  ;;  %v17472_v10 = vadd.f32 %v11410_v3, %v23601_v37 }
 0x4c7   :  { %v12284_v6 = vadd.f32 %v12283_v32, %v12282_v52  ;;  %v11977_v34 = vadd.f32 %v17471_v28, %v23084_v7  ;;  %v12287_v20 = vsel %vm12180_vm2, %v12103_v25, 0.0  ;;  %v12244_v25 = vrot.slane %v23334_v27, 4 }
 0x4c8   :  { %v12285_v12 = vsel %vm12180_vm2, %v12102_v11, 0.0  ;;  %v11976_v4 = vadd.f32 %v17472_v10, %v23084_v7  ;;  %v17298_v13 = vpop.f32.mrb[54].mxu0 }
 0x4c9   :  { %v12286_v41 = vadd.f32 %v12285_v12, %v12284_v6  ;;  %v17473_v44 = vadd.f32 %v17298_v13, %v23602_v38  ;;  %v11420_v54 = vpop.f32.mrb[55].mxu0  ;;  %v12105_v53 = vmax.f32 %v11977_v34, 0.0  ;;  %v23610_v12 = vld [vmem:[#allocation14_spill] sm:$0xff] }
 0x4ca   :  { %v12104_v40 = vmax.f32 %v11976_v4, 0.0  ;;  %v17474_v42 = vadd.f32 %v11420_v54, %v23603_v56 }
 0x4cb   :  { %v12288_v58 = vadd.f32 %v12287_v20, %v12286_v41  ;;  %v11979_v5 = vadd.f32 %v17473_v44, %v23084_v7  ;;  %v12291_v2 = vsel %vm12180_vm2, %v12105_v53, 0.0  ;;  %v23611_v20 = vld [vmem:[#allocation15_spill] sm:$0xff] }
 0x4cc   :  { %v12289_v35 = vsel %vm12180_vm2, %v12104_v40, 0.0  ;;  %v11978_v62 = vadd.f32 %v17474_v42, %v23084_v7  ;;  %v17301_v0 = vpop.f32.mrb[56].mxu0  ;;  %v12245_v42 = vadd.f32 %v12244_v25, %v23334_v27 }
 0x4cd   :  { %v12290_v23 = vadd.f32 %v12289_v35, %v12288_v58  ;;  %v17475_v36 = vadd.f32 %v17301_v0, %v23604_v60  ;;  %v11430_v9 = vpop.f32.mrb[57].mxu0  ;;  %v12107_v57 = vmax.f32 %v11979_v5, 0.0 }
 0x4ce   :  { %v12106_v15 = vmax.f32 %v11978_v62, 0.0  ;;  %v17476_v29 = vadd.f32 %v11430_v9, %v23605_v47  ;;  %v23613_v47 = vld [vmem:[#allocation17_spill] sm:$0xff] }
 0x4cf   :  { %v12292_v16 = vadd.f32 %v12291_v2, %v12290_v23  ;;  %v11981_v14 = vadd.f32 %v17475_v36, %v23084_v7  ;;  %v12295_v33 = vsel %vm12180_vm2, %v12107_v57, 0.0  ;;  %v23612_v23 = vld [vmem:[#allocation16_spill] sm:$0xff] }
 0x4d0   :  { %v12293_v45 = vsel %vm12180_vm2, %v12106_v15, 0.0  ;;  %v11980_v17 = vadd.f32 %v17476_v29, %v23084_v7  ;;  %v17304_v59 = vpop.f32.mrb[58].mxu0 }
 0x4d1   :  { %v12294_v48 = vadd.f32 %v12293_v45, %v12292_v16  ;;  %v17477_v49 = vadd.f32 %v17304_v59, %v23606_v21  ;;  %v11440_v43 = vpop.f32.mrb[59].mxu0  ;;  %v12109_v39 = vmax.f32 %v11981_v14, 0.0  ;;  %v12246_v14 = vrot.slane %v12245_v42, 2 }
 0x4d2   :  { %v12108_v55 = vmax.f32 %v11980_v17, 0.0  ;;  %v17478_v8 = vadd.f32 %v11440_v43, %v23607_v46 }
 0x4d3   :  { %v12296_v61 = vadd.f32 %v12295_v33, %v12294_v48  ;;  %v11983_v22 = vadd.f32 %v17477_v49, %v23084_v7  ;;  %v12299_v19 = vsel %vm12180_vm2, %v12109_v39, 0.0 }
 0x4d4   :  { %v12297_v51 = vsel %vm12180_vm2, %v12108_v55, 0.0  ;;  %v11982_v50 = vadd.f32 %v17478_v8, %v23084_v7  ;;  %v17307_v30 = vpop.f32.mrb[60].mxu0 }
 0x4d5   :  { %v12298_v31 = vadd.f32 %v12297_v51, %v12296_v61  ;;  %v17479_v24 = vadd.f32 %v17307_v30, %v23608_v1  ;;  %v11450_v26 = vpop.f32.mrb[61].mxu0  ;;  %v12111_v63 = vmax.f32 %v11983_v22, 0.0 }
 0x4d6   :  { %v12110_v52 = vmax.f32 %v11982_v50, 0.0  ;;  %v17480_v28 = vadd.f32 %v11450_v26, %v23609_v18  ;;  %v12247_v50 = vadd.f32 %v12246_v14, %v12245_v42 }
 0x4d7   :  { %v12300_v3 = vadd.f32 %v12299_v19, %v12298_v31  ;;  %v11985_v32 = vadd.f32 %v17479_v24, %v23084_v7  ;;  %v12303_v38 = vsel %vm12180_vm2, %v12111_v63, 0.0 }
 0x4d8   :  { %v12301_v11 = vsel %vm12180_vm2, %v12110_v52, 0.0  ;;  %v11984_v37 = vadd.f32 %v17480_v28, %v23084_v7  ;;  %v16540_v10 = vpop.f32.mrb[66].mxu1  ;;  %v17310_v6 = vpop.f32.mrb[62].mxu0 }
 0x4d9   :  { %v12302_v34 = vadd.f32 %v12301_v11, %v12300_v3  ;;  %v17481_v4 = vadd.f32 %v17310_v6, %v23610_v12  ;;  %v6079_v13 = vpop.f32.mrb[67].mxu1  ;;  %v11460_v41 = vpop.f32.mrb[63].mxu0  ;;  %v12113_v44 = vmax.f32 %v11985_v32, 0.0 }
 0x4da   :  { %v12112_v54 = vmax.f32 %v11984_v37, 0.0  ;;  %v17482_v53 = vadd.f32 %v11460_v41, %v23611_v20  ;;  %v12248_v37 = vrot.slane %v12247_v50, 1 }
 0x4db   :  { %v12304_v40 = vadd.f32 %v12303_v38, %v12302_v34  ;;  %v11987_v56 = vadd.f32 %v17481_v4, %v23084_v7  ;;  %v12307_v2 = vsel %vm12180_vm2, %v12113_v44, 0.0 }
 0x4dc   :  { %v12305_v58 = vsel %vm12180_vm2, %v12112_v54, 0.0  ;;  %v11986_v5 = vadd.f32 %v17482_v53, %v23084_v7  ;;  %v16543_v35 = vpop.f32.mrb[68].mxu1  ;;  %v17313_v62 = vpop.f32.mrb[64].mxu0 }
 0x4dd   :  { %v12306_v0 = vadd.f32 %v12305_v58, %v12304_v40  ;;  %v17483_v60 = vadd.f32 %v17313_v62, %v23612_v23  ;;  %v6089_v36 = vpop.f32.mrb[69].mxu1  ;;  %v11470_v9 = vpop.f32.mrb[65].mxu0  ;;  %v12115_v57 = vmax.f32 %v11987_v56, 0.0  ;;  %v23443_v58 = vld [vmem:[%s23578_s2] ss:$0 sm:$0xff] }
 0x4de   :  { %v12114_v15 = vmax.f32 %v11986_v5, 0.0  ;;  %v17484_v29 = vadd.f32 %v11470_v9, %v23613_v47  ;;  %v12249_v5 = vadd.f32 %v12248_v37, %v12247_v50 }
 0x4df   :  { %v12308_v16 = vadd.f32 %v12307_v2, %v12306_v0  ;;  %v11989_v27 = vadd.f32 %v17483_v60, %v23084_v7  ;;  %v12311_v55 = vsel %vm12180_vm2, %v12115_v57, 0.0 }
 0x4e0   :  { %v12309_v45 = vsel %vm12180_vm2, %v12114_v15, 0.0  ;;  %v11988_v17 = vadd.f32 %v17484_v29, %v23084_v7  ;;  %v16546_v59 = vpop.f32.mrb[70].mxu1  ;;  %v17316_v48 = vpop.f32.mrb[66].mxu0 }
 0x4e1   :  { %v12310_v21 = vadd.f32 %v12309_v45, %v12308_v16  ;;  %v12117_v49 = vmax.f32 %v11989_v27, 0.0  ;;  %v17485_v43 = vadd.f32 %v17316_v48, %v16540_v10  ;;  %v6099_v33 = vpop.f32.mrb[71].mxu1  ;;  %v11480_v39 = vpop.f32.mrb[67].mxu0 }
 0x4e2   :  { %v12116_v46 = vmax.f32 %v11988_v17, 0.0  ;;  %v17486_v8 = vadd.f32 %v11480_v39, %v6079_v13  ;;  %v18450_v17 = vmov 0.0  }
 0x4e3   :  { %v12312_v61 = vadd.f32 %v12311_v55, %v12310_v21  ;;  %v12320_v22 = vsel %vm12180_vm2, %v12117_v49, 0.0  ;;  %v11991_v51 = vadd.f32 %v17485_v43, %v23084_v7  ;;  %17411 = vmatprep.mubr.msk.f32.mxu1 %vm18449_vm3, %v18450_v17  ;;  %v12457_v43 = vmul.f32 0.00390625, %v12249_v5 }
 0x4e4   :  { %v12319_v30 = vsel %vm12180_vm2, %v12116_v46, 0.0  ;;  %v11990_v31 = vadd.f32 %v17486_v8, %v23084_v7  ;;  %v16549_v1 = vpop.f32.mrb[72].mxu1  ;;  %v17319_v24 = vpop.f32.mrb[68].mxu0 }
 0x4e5   :  { %v12313_v26 = vrot.slane %v12312_v61, 4  ;;  %v12321_v19 = vadd.f32 %v12320_v22, %v12319_v30  ;;  %v17487_v63 = vadd.f32 %v17319_v24, %v16543_v35  ;;  %v6109_v52 = vpop.f32.mrb[73].mxu1  ;;  %v11490_v18 = vpop.f32.mrb[69].mxu0  ;;  %v12119_v28 = vmax.f32 %v11991_v51, 0.0 }
 0x4e6   :  { %v12118_v3 = vmax.f32 %v11990_v31, 0.0  ;;  %v17488_v32 = vadd.f32 %v11490_v18, %v6089_v36 }
 0x4e7   :  { %v12314_v25 = vadd.f32 %v12313_v26, %v12312_v61  ;;  %v11993_v11 = vadd.f32 %v17487_v63, %v23084_v7  ;;  %v12324_v20 = vsel %vm12180_vm2, %v12119_v28, 0.0 }
 0x4e8   :  { %v12322_v10 = vsel %vm12180_vm2, %v12118_v3, 0.0  ;;  %v11992_v6 = vadd.f32 %v17488_v32, %v23084_v7  ;;  %v16552_v34 = vpop.f32.mrb[74].mxu1  ;;  %v17322_v12 = vpop.f32.mrb[70].mxu0 }
 0x4e9   :  { %v12315_v4 = vrot.slane %v12314_v25, 2  ;;  %v12323_v13 = vadd.f32 %v12322_v10, %v12321_v19  ;;  %v12121_v41 = vmax.f32 %v11993_v11, 0.0  ;;  %v17489_v38 = vadd.f32 %v17322_v12, %v16546_v59  ;;  %v6119_v44 = vpop.f32.mrb[75].mxu1  ;;  %v11500_v54 = vpop.f32.mrb[71].mxu0 }
 0x4ea   :  { %v12120_v53 = vmax.f32 %v11992_v6, 0.0  ;;  %v17490_v40 = vadd.f32 %v11500_v54, %v6099_v33 }
 0x4eb   :  { %v12316_v56 = vadd.f32 %v12315_v4, %v12314_v25  ;;  %v12325_v42 = vadd.f32 %v12324_v20, %v12323_v13  ;;  %v11995_v7 = vadd.f32 %v23443_v58, %v17489_v38  ;;  %v12328_v35 = vsel %vm12180_vm2, %v12121_v41, 0.0 }
 0x4ec   :  { %v12326_v62 = vsel %vm12180_vm2, %v12120_v53, 0.0  ;;  %v11994_v0 = vadd.f32 %v23443_v58, %v17490_v40  ;;  %v16555_v23 = vpop.f32.mrb[76].mxu1  ;;  %v17325_v60 = vpop.f32.mrb[72].mxu0 }
 0x4ed   :  { %v12317_v36 = vrot.slane %v12316_v56, 1  ;;  %v12327_v9 = vadd.f32 %v12326_v62, %v12325_v42  ;;  %v12123_v2 = vmax.f32 %v11995_v7, 0.0  ;;  %v17491_v57 = vadd.f32 %v17325_v60, %v16549_v1  ;;  %v6129_v15 = vpop.f32.mrb[77].mxu1  ;;  %v11510_v47 = vpop.f32.mrb[73].mxu0 }
 0x4ee   :  { %v12122_v29 = vmax.f32 %v11994_v0, 0.0  ;;  %v17492_v16 = vadd.f32 %v11510_v47, %v6109_v52 }
 0x4ef   :  { %v12318_v27 = vadd.f32 %v12317_v36, %v12316_v56  ;;  %v12329_v14 = vadd.f32 %v12328_v35, %v12327_v9  ;;  %v11997_v45 = vadd.f32 %v23443_v58, %v17491_v57  ;;  %v12332_v61 = vsel %vm12180_vm2, %v12123_v2, 0.0 }
 0x4f0   :  { %v12330_v59 = vsel %vm12180_vm2, %v12122_v29, 0.0  ;;  %v11996_v48 = vadd.f32 %v23443_v58, %v17492_v16  ;;  %v16558_v21 = vpop.f32.mrb[78].mxu1  ;;  %v17328_v49 = vpop.f32.mrb[74].mxu0 }
 0x4f1   :  { %v12458_v33 = vmul.f32 0.00390625, %v12318_v27  ;;  %v12331_v39 = vadd.f32 %v12330_v59, %v12329_v14  ;;  %v17493_v55 = vadd.f32 %v17328_v49, %v16552_v34  ;;  %v6139_v46 = vpop.f32.mrb[79].mxu1  ;;  %v11520_v8 = vpop.f32.mrb[75].mxu0  ;;  %v12125_v22 = vmax.f32 %v11997_v45, 0.0 }
 0x4f2   :  { %v12124_v51 = vmax.f32 %v11996_v48, 0.0  ;;  %v17494_v50 = vadd.f32 %v11520_v8, %v6119_v44 }
 0x4f3   :  { %v12333_v30 = vadd.f32 %v12332_v61, %v12331_v39  ;;  %v11999_v31 = vadd.f32 %v23443_v58, %v17493_v55  ;;  %v23454_v1 = vsel %vm12474_vm4, %v12458_v33, %v12457_v43  ;;  %v12336_v32 = vsel %vm12180_vm2, %v12125_v22, 0.0 }
 0x4f4   :  { %v12334_v24 = vsel %vm12180_vm2, %v12124_v51, 0.0  ;;  %v11998_v26 = vadd.f32 %v23443_v58, %v17494_v50  ;;  %v16561_v19 = vpop.f32.mrb[80].mxu1  ;;  %v17331_v63 = vpop.f32.mrb[76].mxu0 }
 0x4f5   :  { %v12335_v52 = vadd.f32 %v12334_v24, %v12333_v30  ;;  %v17495_v18 = vadd.f32 %v17331_v63, %v16555_v23  ;;  %v6149_v28 = vpop.f32.mrb[81].mxu1  ;;  %v11530_v3 = vpop.f32.mrb[77].mxu0  ;;  %v12127_v25 = vmax.f32 %v11999_v31, 0.0 }
 0x4f6   :  { %v12126_v11 = vmax.f32 %v11998_v26, 0.0  ;;  %v17496_v37 = vadd.f32 %v11530_v3, %v6129_v15 }
 0x4f7   :  { %v12337_v10 = vadd.f32 %v12336_v32, %v12335_v52  ;;  %v12001_v6 = vadd.f32 %v23443_v58, %v17495_v18  ;;  %v12340_v20 = vsel %vm12180_vm2, %v12127_v25, 0.0 }
 0x4f8   :  { %v12338_v34 = vsel %vm12180_vm2, %v12126_v11, 0.0  ;;  %v12000_v12 = vadd.f32 %v23443_v58, %v17496_v37  ;;  %v16564_v4 = vpop.f32.mrb[82].mxu1  ;;  %v17334_v13 = vpop.f32.mrb[78].mxu0 }
 0x4f9   :  { %v12339_v41 = vadd.f32 %v12338_v34, %v12337_v10  ;;  %v17497_v38 = vadd.f32 %v17334_v13, %v16558_v21  ;;  %v6159_v44 = vpop.f32.mrb[83].mxu1  ;;  %v11540_v54 = vpop.f32.mrb[79].mxu0  ;;  %v12129_v53 = vmax.f32 %v12001_v6, 0.0 }
 0x4fa   :  { %v12128_v40 = vmax.f32 %v12000_v12, 0.0  ;;  %v17498_v56 = vadd.f32 %v11540_v54, %v6139_v46 }
 0x4fb   :  { %v12341_v42 = vadd.f32 %v12340_v20, %v12339_v41  ;;  %v12003_v7 = vadd.f32 %v23443_v58, %v17497_v38  ;;  %v12344_v2 = vsel %vm12180_vm2, %v12129_v53, 0.0 }
 0x4fc   :  { %v12342_v5 = vsel %vm12180_vm2, %v12128_v40, 0.0  ;;  %v12002_v35 = vadd.f32 %v23443_v58, %v17498_v56  ;;  %v16567_v62 = vpop.f32.mrb[84].mxu1  ;;  %v17337_v0 = vpop.f32.mrb[80].mxu0 }
 0x4fd   :  { %v12343_v23 = vadd.f32 %v12342_v5, %v12341_v42  ;;  %v17499_v60 = vadd.f32 %v17337_v0, %v16561_v19  ;;  %v6169_v36 = vpop.f32.mrb[85].mxu1  ;;  %v11550_v9 = vpop.f32.mrb[81].mxu0  ;;  %v12131_v57 = vmax.f32 %v12003_v7, 0.0 }
 0x4fe   :  { %v12130_v15 = vmax.f32 %v12002_v35, 0.0  ;;  %v17500_v47 = vadd.f32 %v11550_v9, %v6149_v28 }
 0x4ff   :  { %v12345_v29 = vadd.f32 %v12344_v2, %v12343_v23  ;;  %v12005_v16 = vadd.f32 %v23443_v58, %v17499_v60  ;;  %v12348_v43 = vsel %vm12180_vm2, %v12131_v57, 0.0 }
 0x500   :  { %v12346_v27 = vsel %vm12180_vm2, %v12130_v15, 0.0  ;;  %v12004_v14 = vadd.f32 %v23443_v58, %v17500_v47  ;;  %v16570_v45 = vpop.f32.mrb[86].mxu1  ;;  %v17340_v17 = vpop.f32.mrb[82].mxu0 }
 0x501   :  { %v12347_v59 = vadd.f32 %v12346_v27, %v12345_v29  ;;  %v17501_v48 = vadd.f32 %v17340_v17, %v16564_v4  ;;  %v6179_v21 = vpop.f32.mrb[87].mxu1  ;;  %v11560_v49 = vpop.f32.mrb[83].mxu0  ;;  %v12133_v33 = vmax.f32 %v12005_v16, 0.0 }
 0x502   :  { %v12132_v39 = vmax.f32 %v12004_v14, 0.0  ;;  %v17502_v55 = vadd.f32 %v11560_v49, %v6159_v44 }
 0x503   :  { %v12349_v46 = vadd.f32 %v12348_v43, %v12347_v59  ;;  %v12007_v8 = vadd.f32 %v23443_v58, %v17501_v48  ;;  %v12352_v19 = vsel %vm12180_vm2, %v12133_v33, 0.0 }
 0x504   :  { %v12350_v61 = vsel %vm12180_vm2, %v12132_v39, 0.0  ;;  %v12006_v22 = vadd.f32 %v23443_v58, %v17502_v55  ;;  %v16573_v51 = vpop.f32.mrb[88].mxu1  ;;  %v17343_v50 = vpop.f32.mrb[84].mxu0 }
 0x505   :  { %v12351_v30 = vadd.f32 %v12350_v61, %v12349_v46  ;;  %v17503_v31 = vadd.f32 %v17343_v50, %v16567_v62  ;;  %v6189_v24 = vpop.f32.mrb[89].mxu1  ;;  %v11570_v26 = vpop.f32.mrb[85].mxu0  ;;  %v12135_v63 = vmax.f32 %v12007_v8, 0.0 }
 0x506   :  { %v12134_v52 = vmax.f32 %v12006_v22, 0.0  ;;  %v17504_v18 = vadd.f32 %v11570_v26, %v6169_v36 }
 0x507   :  { %v12353_v28 = vadd.f32 %v12352_v19, %v12351_v30  ;;  %v12009_v3 = vadd.f32 %v23443_v58, %v17503_v31  ;;  %v12356_v4 = vsel %vm12180_vm2, %v12135_v63, 0.0 }
 0x508   :  { %v12354_v32 = vsel %vm12180_vm2, %v12134_v52, 0.0  ;;  %v12008_v25 = vadd.f32 %v23443_v58, %v17504_v18  ;;  %v16576_v11 = vpop.f32.mrb[90].mxu1  ;;  %v17346_v37 = vpop.f32.mrb[86].mxu0 }
 0x509   :  { %v12355_v10 = vadd.f32 %v12354_v32, %v12353_v28  ;;  %v17505_v6 = vadd.f32 %v17346_v37, %v16570_v45  ;;  %v6199_v34 = vpop.f32.mrb[91].mxu1  ;;  %v11580_v12 = vpop.f32.mrb[87].mxu0  ;;  %v12137_v13 = vmax.f32 %v12009_v3, 0.0 }
 0x50a   :  { %v12136_v41 = vmax.f32 %v12008_v25, 0.0  ;;  %v17506_v38 = vadd.f32 %v11580_v12, %v6179_v21 }
 0x50b   :  { %v12357_v44 = vadd.f32 %v12356_v4, %v12355_v10  ;;  %v12011_v54 = vadd.f32 %v23443_v58, %v17505_v6  ;;  %v12360_v62 = vsel %vm12180_vm2, %v12137_v13, 0.0 }
 0x50c   :  { %v12358_v20 = vsel %vm12180_vm2, %v12136_v41, 0.0  ;;  %v12010_v53 = vadd.f32 %v23443_v58, %v17506_v38  ;;  %v16579_v40 = vpop.f32.mrb[92].mxu1  ;;  %v17349_v56 = vpop.f32.mrb[88].mxu0 }
 0x50d   :  { %v12359_v42 = vadd.f32 %v12358_v20, %v12357_v44  ;;  %v17507_v7 = vadd.f32 %v17349_v56, %v16573_v51  ;;  %v6209_v5 = vpop.f32.mrb[93].mxu1  ;;  %v11590_v35 = vpop.f32.mrb[89].mxu0  ;;  %v12139_v0 = vmax.f32 %v12011_v54, 0.0 }
 0x50e   :  { %v12138_v23 = vmax.f32 %v12010_v53, 0.0  ;;  %v17508_v60 = vadd.f32 %v11590_v35, %v6189_v24 }
 0x50f   :  { %v12361_v36 = vadd.f32 %v12360_v62, %v12359_v42  ;;  %v12013_v9 = vadd.f32 %v23443_v58, %v17507_v7  ;;  %v12364_v45 = vsel %vm12180_vm2, %v12139_v0, 0.0 }
 0x510   :  { %v12362_v2 = vsel %vm12180_vm2, %v12138_v23, 0.0  ;;  %v12012_v57 = vadd.f32 %v23443_v58, %v17508_v60  ;;  %v16582_v15 = vpop.f32.mrb[94].mxu1  ;;  %v17352_v47 = vpop.f32.mrb[90].mxu0 }
 0x511   :  { %v12363_v29 = vadd.f32 %v12362_v2, %v12361_v36  ;;  %v17509_v16 = vadd.f32 %v17352_v47, %v16576_v11  ;;  %v6219_v27 = vpop.f32.mrb[95].mxu1  ;;  %v11600_v14 = vpop.f32.mrb[91].mxu0  ;;  %v12141_v17 = vmax.f32 %v12013_v9, 0.0 }
 0x512   :  { %v12140_v59 = vmax.f32 %v12012_v57, 0.0  ;;  %v17510_v48 = vadd.f32 %v11600_v14, %v6199_v34 }
 0x513   :  { %v12365_v21 = vadd.f32 %v12364_v45, %v12363_v29  ;;  %v12015_v49 = vadd.f32 %v23443_v58, %v17509_v16  ;;  %v12368_v51 = vsel %vm12180_vm2, %v12141_v17, 0.0 }
 0x514   :  { %v12366_v43 = vsel %vm12180_vm2, %v12140_v59, 0.0  ;;  %v12014_v33 = vadd.f32 %v23443_v58, %v17510_v48  ;;  %v16585_v39 = vpop.f32.mrb[96].mxu1  ;;  %v17355_v55 = vpop.f32.mrb[92].mxu0 }
 0x515   :  { %v12367_v46 = vadd.f32 %v12366_v43, %v12365_v21  ;;  %v17511_v8 = vadd.f32 %v17355_v55, %v16579_v40  ;;  %v6229_v61 = vpop.f32.mrb[97].mxu1  ;;  %v11610_v22 = vpop.f32.mrb[93].mxu0  ;;  %v12143_v50 = vmax.f32 %v12015_v49, 0.0 }
 0x516   :  { %v12142_v30 = vmax.f32 %v12014_v33, 0.0  ;;  %v17512_v31 = vadd.f32 %v11610_v22, %v6209_v5 }
 0x517   :  { %v12369_v24 = vadd.f32 %v12368_v51, %v12367_v46  ;;  %v12017_v26 = vadd.f32 %v23443_v58, %v17511_v8  ;;  %v12372_v11 = vsel %vm12180_vm2, %v12143_v50, 0.0 }
 0x518   :  { %v12370_v19 = vsel %vm12180_vm2, %v12142_v30, 0.0  ;;  %v12016_v63 = vadd.f32 %v23443_v58, %v17512_v31  ;;  %v16588_v52 = vpop.f32.mrb[98].mxu1  ;;  %v17358_v18 = vpop.f32.mrb[94].mxu0 }
 0x519   :  { %v12371_v28 = vadd.f32 %v12370_v19, %v12369_v24  ;;  %v17513_v3 = vadd.f32 %v17358_v18, %v16582_v15  ;;  %v6239_v32 = vpop.f32.mrb[99].mxu1  ;;  %v11620_v25 = vpop.f32.mrb[95].mxu0  ;;  %v12145_v37 = vmax.f32 %v12017_v26, 0.0 }
 0x51a   :  { %v12144_v10 = vmax.f32 %v12016_v63, 0.0  ;;  %v17514_v6 = vadd.f32 %v11620_v25, %v6219_v27 }
 0x51b   :  { %v12373_v34 = vadd.f32 %v12372_v11, %v12371_v28  ;;  %v12019_v12 = vadd.f32 %v23443_v58, %v17513_v3  ;;  %v12376_v40 = vsel %vm12180_vm2, %v12145_v37, 0.0 }
 0x51c   :  { %v12374_v4 = vsel %vm12180_vm2, %v12144_v10, 0.0  ;;  %v12018_v13 = vadd.f32 %v23443_v58, %v17514_v6  ;;  %v16591_v41 = vpop.f32.mrb[100].mxu1  ;;  %v17361_v38 = vpop.f32.mrb[96].mxu0 }
 0x51d   :  { %v12375_v44 = vadd.f32 %v12374_v4, %v12373_v34  ;;  %v17515_v54 = vadd.f32 %v17361_v38, %v16585_v39  ;;  %v6249_v20 = vpop.f32.mrb[101].mxu1  ;;  %v11630_v53 = vpop.f32.mrb[97].mxu0  ;;  %v12147_v56 = vmax.f32 %v12019_v12, 0.0 }
 0x51e   :  { %v12146_v42 = vmax.f32 %v12018_v13, 0.0  ;;  %v17516_v7 = vadd.f32 %v11630_v53, %v6229_v61 }
 0x51f   :  { %v12377_v5 = vadd.f32 %v12376_v40, %v12375_v44  ;;  %v12021_v35 = vadd.f32 %v23443_v58, %v17515_v54  ;;  %v12380_v47 = vsel %vm12180_vm2, %v12147_v56, 0.0 }
 0x520   :  { %v12378_v62 = vsel %vm12180_vm2, %v12146_v42, 0.0  ;;  %v12020_v0 = vadd.f32 %v23443_v58, %v17516_v7  ;;  %v16594_v23 = vpop.f32.mrb[102].mxu1  ;;  %v17364_v60 = vpop.f32.mrb[98].mxu0 }
 0x521   :  { %v12379_v36 = vadd.f32 %v12378_v62, %v12377_v5  ;;  %v12149_v9 = vmax.f32 %v12021_v35, 0.0  ;;  %v17517_v2 = vadd.f32 %v17364_v60, %v16588_v52  ;;  %v6259_v57 = vpop.f32.mrb[103].mxu1  ;;  %v11640_v15 = vpop.f32.mrb[99].mxu0 }
 0x522   :  { %v12148_v29 = vmax.f32 %v12020_v0, 0.0  ;;  %v17518_v16 = vadd.f32 %v11640_v15, %v6239_v32 }
 0x523   :  { %v12381_v27 = vadd.f32 %v12380_v47, %v12379_v36  ;;  %v12389_v14 = vsel %vm12180_vm2, %v12149_v9, 0.0  ;;  %v12023_v45 = vadd.f32 %v23443_v58, %v17517_v2 }
 0x524   :  { %v12388_v17 = vsel %vm12180_vm2, %v12148_v29, 0.0  ;;  %v12022_v59 = vadd.f32 %v23443_v58, %v17518_v16  ;;  %v16597_v48 = vpop.f32.mrb[104].mxu1  ;;  %v17367_v21 = vpop.f32.mrb[100].mxu0 }
 0x525   :  { %v12382_v49 = vrot.slane %v12381_v27, 4  ;;  %v12390_v43 = vadd.f32 %v12389_v14, %v12388_v17  ;;  %v17519_v33 = vadd.f32 %v17367_v21, %v16591_v41  ;;  %v6269_v39 = vpop.f32.mrb[105].mxu1  ;;  %v11650_v55 = vpop.f32.mrb[101].mxu0  ;;  %v12151_v46 = vmax.f32 %v12023_v45, 0.0 }
 0x526   :  { %v12150_v8 = vmax.f32 %v12022_v59, 0.0  ;;  %v17520_v61 = vadd.f32 %v11650_v55, %v6249_v20 }
 0x527   :  { %v12383_v22 = vadd.f32 %v12382_v49, %v12381_v27  ;;  %v12025_v51 = vadd.f32 %v23443_v58, %v17519_v33  ;;  %v12393_v28 = vsel %vm12180_vm2, %v12151_v46, 0.0 }
 0x528   :  { %v12391_v50 = vsel %vm12180_vm2, %v12150_v8, 0.0  ;;  %v12024_v30 = vadd.f32 %v23443_v58, %v17520_v61  ;;  %v16600_v31 = vpop.f32.mrb[106].mxu1  ;;  %v17370_v24 = vpop.f32.mrb[102].mxu0 }
 0x529   :  { %v12384_v26 = vrot.slane %v12383_v22, 2  ;;  %v12392_v19 = vadd.f32 %v12391_v50, %v12390_v43  ;;  %v17521_v63 = vadd.f32 %v17370_v24, %v16594_v23  ;;  %v6279_v52 = vpop.f32.mrb[107].mxu1  ;;  %v11660_v18 = vpop.f32.mrb[103].mxu0  ;;  %v12153_v3 = vmax.f32 %v12025_v51, 0.0 }
 0x52a   :  { %v12152_v32 = vmax.f32 %v12024_v30, 0.0  ;;  %v17522_v25 = vadd.f32 %v11660_v18, %v6259_v57 }
 0x52b   :  { %v12385_v11 = vadd.f32 %v12384_v26, %v12383_v22  ;;  %v12394_v37 = vadd.f32 %v12393_v28, %v12392_v19  ;;  %v12027_v10 = vadd.f32 %v23443_v58, %v17521_v63  ;;  %v12397_v20 = vsel %vm12180_vm2, %v12153_v3, 0.0 }
 0x52c   :  { %v12395_v6 = vsel %vm12180_vm2, %v12152_v32, 0.0  ;;  %v12026_v34 = vadd.f32 %v23443_v58, %v17522_v25  ;;  %v16603_v12 = vpop.f32.mrb[108].mxu1  ;;  %v17373_v4 = vpop.f32.mrb[104].mxu0 }
 0x52d   :  { %v12386_v13 = vrot.slane %v12385_v11, 1  ;;  %v12396_v41 = vadd.f32 %v12395_v6, %v12394_v37  ;;  %v17523_v38 = vadd.f32 %v17373_v4, %v16597_v48  ;;  %v6289_v44 = vpop.f32.mrb[109].mxu1  ;;  %v11670_v54 = vpop.f32.mrb[105].mxu0  ;;  %v12155_v53 = vmax.f32 %v12027_v10, 0.0 }
 0x52e   :  { %v12154_v40 = vmax.f32 %v12026_v34, 0.0  ;;  %v17524_v56 = vadd.f32 %v11670_v54, %v6269_v39 }
 0x52f   :  { %v12387_v42 = vadd.f32 %v12386_v13, %v12385_v11  ;;  %v12398_v7 = vadd.f32 %v12397_v20, %v12396_v41  ;;  %v12029_v5 = vadd.f32 %v23443_v58, %v17523_v38  ;;  %v12401_v15 = vsel %vm12180_vm2, %v12155_v53, 0.0 }
 0x530   :  { %v12399_v35 = vsel %vm12180_vm2, %v12154_v40, 0.0  ;;  %v12028_v62 = vadd.f32 %v23443_v58, %v17524_v56  ;;  %v16606_v0 = vpop.f32.mrb[110].mxu1  ;;  %v17376_v23 = vpop.f32.mrb[106].mxu0 }
 0x531   :  { %v12459_v60 = vmul.f32 0.00390625, %v12387_v42  ;;  %v12400_v36 = vadd.f32 %v12399_v35, %v12398_v7  ;;  %v17525_v9 = vadd.f32 %v17376_v23, %v16600_v31  ;;  %v6299_v2 = vpop.f32.mrb[111].mxu1  ;;  %v11680_v57 = vpop.f32.mrb[107].mxu0  ;;  %v12157_v47 = vmax.f32 %v12029_v5, 0.0 }
 0x532   :  { %v12156_v29 = vmax.f32 %v12028_v62, 0.0  ;;  %v17526_v16 = vadd.f32 %v11680_v57, %v6279_v52 }
 0x533   :  { %v12402_v27 = vadd.f32 %v12401_v15, %v12400_v36  ;;  %v12031_v14 = vadd.f32 %v23443_v58, %v17525_v9  ;;  %v23521_v45 = vsel %vm12476_vm5, %v12459_v60, %v23454_v1  ;;  %v12405_v55 = vsel %vm12180_vm2, %v12157_v47, 0.0 }
 0x534   :  { %v12403_v17 = vsel %vm12180_vm2, %v12156_v29, 0.0  ;;  %v12030_v59 = vadd.f32 %v23443_v58, %v17526_v16  ;;  %v16609_v48 = vpop.f32.mrb[112].mxu1  ;;  %v17379_v21 = vpop.f32.mrb[108].mxu0 }
 0x535   :  { %v12404_v49 = vadd.f32 %v12403_v17, %v12402_v27  ;;  %v17527_v43 = vadd.f32 %v17379_v21, %v16603_v12  ;;  %v6309_v33 = vpop.f32.mrb[113].mxu1  ;;  %v11690_v39 = vpop.f32.mrb[109].mxu0  ;;  %v12159_v46 = vmax.f32 %v12031_v14, 0.0 }
 0x536   :  { %v12158_v8 = vmax.f32 %v12030_v59, 0.0  ;;  %v17528_v61 = vadd.f32 %v11690_v39, %v6289_v44 }
 0x537   :  { %v12406_v22 = vadd.f32 %v12405_v55, %v12404_v49  ;;  %v12033_v51 = vadd.f32 %v23443_v58, %v17527_v43  ;;  %v12409_v52 = vsel %vm12180_vm2, %v12159_v46, 0.0 }
 0x538   :  { %v12407_v1 = vsel %vm12180_vm2, %v12158_v8, 0.0  ;;  %v12032_v50 = vadd.f32 %v23443_v58, %v17528_v61  ;;  %v16612_v30 = vpop.f32.mrb[114].mxu1  ;;  %v17382_v31 = vpop.f32.mrb[110].mxu0 }
 0x539   :  { %v12408_v24 = vadd.f32 %v12407_v1, %v12406_v22  ;;  %v17529_v26 = vadd.f32 %v17382_v31, %v16606_v0  ;;  %v6319_v19 = vpop.f32.mrb[115].mxu1  ;;  %v11700_v63 = vpop.f32.mrb[111].mxu0  ;;  %v12161_v18 = vmax.f32 %v12033_v51, 0.0 }
 0x53a   :  { %v12160_v28 = vmax.f32 %v12032_v50, 0.0  ;;  %v17530_v3 = vadd.f32 %v11700_v63, %v6299_v2 }
 0x53b   :  { %v12410_v32 = vadd.f32 %v12409_v52, %v12408_v24  ;;  %v12035_v25 = vadd.f32 %v23443_v58, %v17529_v26  ;;  %v12413_v41 = vsel %vm12180_vm2, %v12161_v18, 0.0 }
 0x53c   :  { %v12411_v11 = vsel %vm12180_vm2, %v12160_v28, 0.0  ;;  %v12034_v37 = vadd.f32 %v23443_v58, %v17530_v3  ;;  %v16615_v10 = vpop.f32.mrb[116].mxu1  ;;  %v17385_v6 = vpop.f32.mrb[112].mxu0 }
 0x53d   :  { %v12412_v34 = vadd.f32 %v12411_v11, %v12410_v32  ;;  %v17531_v12 = vadd.f32 %v17385_v6, %v16609_v48  ;;  %v6329_v4 = vpop.f32.mrb[117].mxu1  ;;  %v11710_v13 = vpop.f32.mrb[113].mxu0  ;;  %v12163_v38 = vmax.f32 %v12035_v25, 0.0 }
 0x53e   :  { %v12162_v44 = vmax.f32 %v12034_v37, 0.0  ;;  %v17532_v54 = vadd.f32 %v11710_v13, %v6309_v33 }
 0x53f   :  { %v12414_v20 = vadd.f32 %v12413_v41, %v12412_v34  ;;  %v12037_v53 = vadd.f32 %v23443_v58, %v17531_v12  ;;  %v12417_v23 = vsel %vm12180_vm2, %v12163_v38, 0.0 }
 0x540   :  { %v12415_v40 = vsel %vm12180_vm2, %v12162_v44, 0.0  ;;  %v12036_v56 = vadd.f32 %v23443_v58, %v17532_v54  ;;  %v16618_v42 = vpop.f32.mrb[118].mxu1  ;;  %v17388_v7 = vpop.f32.mrb[114].mxu0 }
 0x541   :  { %v12416_v5 = vadd.f32 %v12415_v40, %v12414_v20  ;;  %v17533_v35 = vadd.f32 %v17388_v7, %v16612_v30  ;;  %v6339_v62 = vpop.f32.mrb[119].mxu1  ;;  %v11720_v0 = vpop.f32.mrb[115].mxu0  ;;  %v12165_v60 = vmax.f32 %v12037_v53, 0.0 }
 0x542   :  { %v12164_v36 = vmax.f32 %v12036_v56, 0.0  ;;  %v17534_v9 = vadd.f32 %v11720_v0, %v6319_v19 }
 0x543   :  { %v12418_v2 = vadd.f32 %v12417_v23, %v12416_v5  ;;  %v12039_v57 = vadd.f32 %v23443_v58, %v17533_v35  ;;  %v12421_v48 = vsel %vm12180_vm2, %v12165_v60, 0.0 }
 0x544   :  { %v12419_v15 = vsel %vm12180_vm2, %v12164_v36, 0.0  ;;  %v12038_v47 = vadd.f32 %v23443_v58, %v17534_v9  ;;  %v16621_v29 = vpop.f32.mrb[120].mxu1  ;;  %v17391_v16 = vpop.f32.mrb[116].mxu0 }
 0x545   :  { %v12420_v27 = vadd.f32 %v12419_v15, %v12418_v2  ;;  %v17535_v14 = vadd.f32 %v17391_v16, %v16615_v10  ;;  %v6349_v17 = vpop.f32.mrb[121].mxu1  ;;  %v11730_v59 = vpop.f32.mrb[117].mxu0  ;;  %v12167_v21 = vmax.f32 %v12039_v57, 0.0 }
 0x546   :  { %v12166_v49 = vmax.f32 %v12038_v47, 0.0  ;;  %v17536_v43 = vadd.f32 %v11730_v59, %v6329_v4 }
 0x547   :  { %v12422_v33 = vadd.f32 %v12421_v48, %v12420_v27  ;;  %v12041_v39 = vadd.f32 %v23443_v58, %v17535_v14  ;;  %v12425_v30 = vsel %vm12180_vm2, %v12167_v21, 0.0 }
 0x548   :  { %v12423_v55 = vsel %vm12180_vm2, %v12166_v49, 0.0  ;;  %v12040_v46 = vadd.f32 %v23443_v58, %v17536_v43  ;;  %v16624_v8 = vpop.f32.mrb[122].mxu1  ;;  %v17394_v61 = vpop.f32.mrb[118].mxu0 }
 0x549   :  { %v12424_v22 = vadd.f32 %v12423_v55, %v12422_v33  ;;  %v17537_v51 = vadd.f32 %v17394_v61, %v16618_v42  ;;  %v6359_v1 = vpop.f32.mrb[123].mxu1  ;;  %v11740_v50 = vpop.f32.mrb[119].mxu0  ;;  %v12169_v31 = vmax.f32 %v12041_v39, 0.0 }
 0x54a   :  { %v12168_v24 = vmax.f32 %v12040_v46, 0.0  ;;  %v17538_v26 = vadd.f32 %v11740_v50, %v6339_v62 }
 0x54b   :  { %v12426_v19 = vadd.f32 %v12425_v30, %v12424_v22  ;;  %v12043_v63 = vadd.f32 %v23443_v58, %v17537_v51  ;;  %v12429_v10 = vsel %vm12180_vm2, %v12169_v31, 0.0 }
 0x54c   :  { %v12427_v52 = vsel %vm12180_vm2, %v12168_v24, 0.0  ;;  %v12042_v18 = vadd.f32 %v23443_v58, %v17538_v26  ;;  %v16627_v28 = vpop.f32.mrb[124].mxu1  ;;  %v17397_v3 = vpop.f32.mrb[120].mxu0 }
 0x54d   :  { %v12428_v32 = vadd.f32 %v12427_v52, %v12426_v19  ;;  %v17539_v25 = vadd.f32 %v17397_v3, %v16621_v29  ;;  %v6369_v11 = vpop.f32.mrb[125].mxu1  ;;  %v11750_v37 = vpop.f32.mrb[121].mxu0  ;;  %v12171_v6 = vmax.f32 %v12043_v63, 0.0 }
 0x54e   :  { %v12170_v34 = vmax.f32 %v12042_v18, 0.0  ;;  %v17540_v12 = vadd.f32 %v11750_v37, %v6349_v17 }
 0x54f   :  { %v12430_v4 = vadd.f32 %v12429_v10, %v12428_v32  ;;  %v12045_v13 = vadd.f32 %v23443_v58, %v17539_v25  ;;  %v12433_v42 = vsel %vm12180_vm2, %v12171_v6, 0.0  ;;  %v14495_v10 = vld [vmem:[%s23580_s4] ss:$0 sm:$0xff] }
 0x550   :  { %v12431_v41 = vsel %vm12180_vm2, %v12170_v34, 0.0  ;;  %v12044_v38 = vadd.f32 %v23443_v58, %v17540_v12  ;;  %v16630_v44 = vpop.f32.mrb[126].mxu1  ;;  %v17400_v54 = vpop.f32.mrb[122].mxu0 }
 0x551   :  { %v12432_v20 = vadd.f32 %v12431_v41, %v12430_v4  ;;  %v17541_v53 = vadd.f32 %v17400_v54, %v16624_v8  ;;  %v6379_v40 = vpop.f32.mrb[127].mxu1  ;;  %v11760_v56 = vpop.f32.mrb[123].mxu0  ;;  %v12173_v7 = vmax.f32 %v12045_v13, 0.0 }
 0x552   :  { %v12172_v5 = vmax.f32 %v12044_v38, 0.0  ;;  %v17542_v35 = vadd.f32 %v11760_v56, %v6359_v1 }
 0x553   :  { %v12434_v62 = vadd.f32 %v12433_v42, %v12432_v20  ;;  %v12047_v0 = vadd.f32 %v23443_v58, %v17541_v53  ;;  %v12437_v15 = vsel %vm12180_vm2, %v12173_v7, 0.0 }
 0x554   :  { %v12435_v23 = vsel %vm12180_vm2, %v12172_v5, 0.0  ;;  %v12046_v60 = vadd.f32 %v23443_v58, %v17542_v35  ;;  %v17403_v36 = vpop.f32.mrb[124].mxu0 }
 0x555   :  { %v12436_v9 = vadd.f32 %v12435_v23, %v12434_v62  ;;  %v17543_v2 = vadd.f32 %v17403_v36, %v16627_v28  ;;  %v11770_v57 = vpop.f32.mrb[125].mxu0  ;;  %v12175_v47 = vmax.f32 %v12047_v0, 0.0 }
 0x556   :  { %v12174_v29 = vmax.f32 %v12046_v60, 0.0  ;;  %v17544_v16 = vadd.f32 %v11770_v57, %v6369_v11 }
 0x557   :  { %v12438_v27 = vadd.f32 %v12437_v15, %v12436_v9  ;;  %v12049_v14 = vadd.f32 %v23443_v58, %v17543_v2  ;;  %v12441_v33 = vsel %vm12180_vm2, %v12175_v47, 0.0 }
 0x558   :  { %v12439_v17 = vsel %vm12180_vm2, %v12174_v29, 0.0  ;;  %v12048_v59 = vadd.f32 %v23443_v58, %v17544_v16  ;;  %v17406_v48 = vpop.f32.mrb[126].mxu0 }
 0x559   :  { %v12440_v21 = vadd.f32 %v12439_v17, %v12438_v27  ;;  %v17545_v49 = vadd.f32 %v17406_v48, %v16630_v44  ;;  %v11780_v43 = vpop.f32.mrb[127].mxu0  ;;  %v12177_v39 = vmax.f32 %v12049_v14, 0.0 }
 0x55a   :  { %v12176_v55 = vmax.f32 %v12048_v59, 0.0  ;;  %v17546_v46 = vadd.f32 %v11780_v43, %v6379_v40 }
 0x55b   :  { %v12442_v8 = vadd.f32 %v12441_v33, %v12440_v21  ;;  %v12051_v61 = vadd.f32 %v23443_v58, %v17545_v49  ;;  %v12445_v50 = vsel %vm12180_vm2, %v12177_v39, 0.0 }
 0x55c   :  { %v12443_v22 = vsel %vm12180_vm2, %v12176_v55, 0.0  ;;  %v12050_v51 = vadd.f32 %v23443_v58, %v17546_v46 }
 0x55d   :  { %v12444_v1 = vadd.f32 %v12443_v22, %v12442_v8  ;;  %v12179_v30 = vmax.f32 %v12051_v61, 0.0 }
 0x55e   :  { %v12178_v31 = vmax.f32 %v12050_v51, 0.0 }
 0x55f   :  { %v12446_v24 = vadd.f32 %v12445_v50, %v12444_v1  ;;  %v12449_v63 = vsel %vm12180_vm2, %v12179_v30, 0.0 }
 0x560   :  { %v12447_v26 = vsel %vm12180_vm2, %v12178_v31, 0.0 }
 0x561   :  { %v12448_v19 = vadd.f32 %v12447_v26, %v12446_v24 }
 0x563   :  { %v12450_v52 = vadd.f32 %v12449_v63, %v12448_v19 }
 0x565   :  { %v12451_v18 = vrot.slane %v12450_v52, 4 }
 0x567   :  { %v12452_v28 = vadd.f32 %v12451_v18, %v12450_v52 }
 0x569   :  { %v12453_v3 = vrot.slane %v12452_v28, 2 }
 0x56b   :  { %v12454_v32 = vadd.f32 %v12453_v3, %v12452_v28 }
 0x56d   :  { %v12455_v25 = vrot.slane %v12454_v32, 1 }
 0x56f   :  { %v12456_v11 = vadd.f32 %v12455_v25, %v12454_v32 }
 0x571   :  { %v12460_v58 = vmul.f32 0.00390625, %v12456_v11 }
 0x573   :  { %v12479_v37 = vsel %vm12478_vm6, %v12460_v58, %v23521_v45 }
 0x574   :  { %17412 = vmatmul.mubr.msk.f32.vlgmr.msra.gmra.mrb[128].mxu1 %vm12180_vm2, %v12479_v37 }
 0x647   :  { %v12548_v6 = vpop.f32.mrb[128].mxu1 }
 0x648   :  { %v12549_v34 = vadd.f32 %v14495_v10, %v12548_v6  ;;  %v17413_v12 = vpop.f32.mrb[129].mxu1 }
 0x64a   :  { %12552 = vst [vmem:[%s23581_s5] sm:$0xf] %v12549_v34 }

</bundles_post_ra>
